<compile_context>
chip_gen: v7x
topology: tpu7x:2x2x1
jax: 0.10.0
libtpu: 0.0.40
codegen_flags: <defaults>
</compile_context>

<pallas_src>
import functools
import math

import jax
import jax.numpy as jnp
from jax.experimental import pallas as pl
from jax.experimental.pallas import tpu as pltpu

_EPS = 1e-6


def _compute_vmem_limit():
    """Generation-aware VMEM budget: ~3/4 of physical VMEM, capped at 100 MiB."""
    try:
        cap = int(pltpu.get_tpu_info().vmem_capacity_bytes)
    except Exception:
        cap = 64 * 1024 * 1024  # conservative (v7x-sized) fallback
    return min((cap * 3) // 4, 100 * 1024 * 1024)


_VMEM_LIMIT = _compute_vmem_limit()


def _pick_tile(n, cap):
    """Largest power-of-two tile <= cap that divides n exactly (else n)."""
    if n <= cap:
        return n
    t = cap
    while t > 8:
        if n % t == 0:
            return t
        t //= 2
    return n


def _layernorm(z, gamma, beta, eps):
    # Single-pass statistics (E[x], E[x^2]); PyTorch biased-variance semantics.
    mu = jnp.mean(z, axis=-1, keepdims=True)
    mu2 = jnp.mean(z * z, axis=-1, keepdims=True)
    var = jnp.maximum(mu2 - mu * mu, 0.0)
    return (z - mu) * jax.lax.rsqrt(var + eps) * gamma + beta


# ---------------------------------------------------------------------------
# Fused transformer sub-block kernel:
#   y  = LayerNorm1(x_q + OutProj(MHA(x_q, x_kv, x_kv)))
#   if with_ffn:
#       y = LayerNorm2(y + W2 @ relu(W1 @ y + b1) + b2)
# Grid = (batch, query-tile).  Weights VMEM-resident via constant index maps.
# ---------------------------------------------------------------------------

def _fused_block_kernel(*refs, num_heads, eps, causal, with_ffn):
    if with_ffn:
        (xq_ref, xkv_ref, wq_ref, bq_ref, wkv_ref, bkv_ref,
         wo_ref, bo_ref, g1_ref, be1_ref,
         w1_ref, fb1_ref, w2_ref, fb2_ref, g2_ref, be2_ref, o_ref) = refs
    else:
        (xq_ref, xkv_ref, wq_ref, bq_ref, wkv_ref, bkv_ref,
         wo_ref, bo_ref, g1_ref, be1_ref, o_ref) = refs

    qi = pl.program_id(1)
    xq = xq_ref[0]                                    # [tq, D]  f32
    xkv = xkv_ref[0]                                  # [Skv, D] f32
    tq, D = xq.shape
    Skv = xkv.shape[0]
    dh = D // num_heads
    scale = 1.0 / math.sqrt(dh)

    # Fused Q and KV projections: bf16 MXU operands, f32 accumulation.
    q = jnp.dot(xq.astype(jnp.bfloat16), wq_ref[...],
                preferred_element_type=jnp.float32) + bq_ref[...]       # [tq, D]
    kv = jnp.dot(xkv.astype(jnp.bfloat16), wkv_ref[...],
                 preferred_element_type=jnp.float32) + bkv_ref[...]     # [Skv, 2D]

    # Fold the 1/sqrt(dh) scale into q, then cast all operands to bf16 once.
    qb = (q * scale).astype(jnp.bfloat16)
    kb = kv[:, :D].astype(jnp.bfloat16)
    vb = kv[:, D:].astype(jnp.bfloat16)

    # In-kernel causal (look-ahead) mask: no resident mask array, no mask DMA.
    if causal:
        row = qi * tq + jax.lax.broadcasted_iota(jnp.int32, (tq, Skv), 0)
        col = jax.lax.broadcasted_iota(jnp.int32, (tq, Skv), 1)
        neg_mask = jnp.where(col > row, jnp.float32(-1e30), jnp.float32(0.0))

    # Per-head attention with bf16 score / context matmuls; contexts are
    # concatenated into one [tq, D] tile so the output projection is a single
    # K=D matmul (full MXU contraction fill) instead of num_heads K=dh pushes.
    # TODO(synk): for very long Skv, tile Skv flash-style with running max/sum.
    ctx_parts = []
    for h in range(num_heads):
        lo = h * dh
        qh = qb[:, lo:lo + dh]                        # [tq, dh]  bf16
        kh = kb[:, lo:lo + dh]                        # [Skv, dh] bf16
        vh = vb[:, lo:lo + dh]                        # [Skv, dh] bf16
        s = jax.lax.dot_general(qh, kh, (((1,), (1,)), ((), ())),
                                preferred_element_type=jnp.float32)     # [tq,Skv]
        if causal:
            s = s + neg_mask
        s = s - jnp.max(s, axis=-1, keepdims=True)
        p = jnp.exp(s)
        p = p * pl.reciprocal(jnp.sum(p, axis=-1, keepdims=True), approx=True)
        ctx_parts.append(jnp.dot(p.astype(jnp.bfloat16), vh,
                                 preferred_element_type=jnp.float32))   # [tq,dh]
    ctx = jnp.concatenate(ctx_parts, axis=-1)                           # [tq, D]

    attn_out = jnp.dot(ctx.astype(jnp.bfloat16), wo_ref[...],
                       preferred_element_type=jnp.float32) + bo_ref[...]

    # Residual + LayerNorm1.
    y = _layernorm(xq + attn_out, g1_ref[...], be1_ref[...], eps)

    if with_ffn:
        # FFN + residual + LayerNorm2 fused on the VMEM-resident activations.
        h1 = jnp.dot(y.astype(jnp.bfloat16), w1_ref[...],
                     preferred_element_type=jnp.float32) + fb1_ref[...]
        h1 = jnp.maximum(h1, 0.0)
        f = jnp.dot(h1.astype(jnp.bfloat16), w2_ref[...],
                    preferred_element_type=jnp.float32) + fb2_ref[...]
        y = _layernorm(y + f, g2_ref[...], be2_ref[...], eps)

    o_ref[0] = y


def fused_block(x_q, x_kv, p, num_heads, *, causal=False, with_ffn=False,
                eps=_EPS):
    B, Sq, D = x_q.shape
    Skv = x_kv.shape[1]
    tq = _pick_tile(Sq, 256)
    n_qt = Sq // tq

    # Weight specs use constant index maps -> VMEM-resident across the grid.
    # TODO(synk): at large d_model/dff on v7x, mark these pl.Buffered(1) or
    # tile the dff axis; at this model's shapes (128/256 bf16) they are tiny.
    in_specs = [
        pl.BlockSpec((1, tq, D), lambda b, qi: (b, qi, 0)),    # x_q
        pl.BlockSpec((1, Skv, D), lambda b, qi: (b, 0, 0)),    # x_kv
        pl.BlockSpec((D, D), lambda b, qi: (0, 0)),            # wq   (bf16)
        pl.BlockSpec((1, D), lambda b, qi: (0, 0)),            # bq
        pl.BlockSpec((D, 2 * D), lambda b, qi: (0, 0)),        # wkv  (bf16)
        pl.BlockSpec((1, 2 * D), lambda b, qi: (0, 0)),        # bkv
        pl.BlockSpec((D, D), lambda b, qi: (0, 0)),            # wo   (bf16)
        pl.BlockSpec((1, D), lambda b, qi: (0, 0)),            # bo
        pl.BlockSpec((1, D), lambda b, qi: (0, 0)),            # ln1 gamma
        pl.BlockSpec((1, D), lambda b, qi: (0, 0)),            # ln1 beta
    ]
    args = [x_q, x_kv, p["wq"], p["bq"], p["wkv"], p["bkv"],
            p["wo"], p["bo"], p["ln1_g"], p["ln1_b"]]
    if with_ffn:
        F = p["w1"].shape[1]
        in_specs += [
            pl.BlockSpec((D, F), lambda b, qi: (0, 0)),        # w1 (bf16)
            pl.BlockSpec((1, F), lambda b, qi: (0, 0)),        # b1
            pl.BlockSpec((F, D), lambda b, qi: (0, 0)),        # w2 (bf16)
            pl.BlockSpec((1, D), lambda b, qi: (0, 0)),        # b2
            pl.BlockSpec((1, D), lambda b, qi: (0, 0)),        # ln2 gamma
            pl.BlockSpec((1, D), lambda b, qi: (0, 0)),        # ln2 beta
        ]
        args += [p["w1"], p["b1"], p["w2"], p["b2"], p["ln2_g"], p["ln2_b"]]

    return pl.pallas_call(
        functools.partial(_fused_block_kernel, num_heads=num_heads, eps=eps,
                          causal=causal, with_ffn=with_ffn),
        grid=(B, n_qt),
        out_shape=jax.ShapeDtypeStruct((B, Sq, D), jnp.float32),
        in_specs=in_specs,
        out_specs=pl.BlockSpec((1, tq, D), lambda b, qi: (b, qi, 0)),
        compiler_params=pltpu.CompilerParams(
            dimension_semantics=("parallel", "parallel"),
            vmem_limit_bytes=_VMEM_LIMIT),
    )(*args)


# ---------------------------------------------------------------------------
# Final vocab projection: (M, N, K)-tiled matmul + bias.  Accumulates directly
# into the VMEM-resident f32 output block (no scratch), bias added on last k.
# ---------------------------------------------------------------------------

def _matmul_bias_kernel(x_ref, w_ref, b_ref, o_ref):
    k = pl.program_id(2)

    @pl.when(k == 0)
    def _():
        o_ref[...] = jnp.zeros_like(o_ref)

    o_ref[...] += jnp.dot(x_ref[...], w_ref[...],
                          preferred_element_type=jnp.float32)

    @pl.when(k == pl.num_programs(2) - 1)
    def _():
        o_ref[...] += b_ref[...]


def final_projection(x, w, b):
    M, K = x.shape
    N = w.shape[1]

    # Cast activations to bf16 ONCE in the wrapper (halves x HBM traffic and
    # removes per-j recast passes inside the kernel).
    x_b = x.astype(jnp.bfloat16)

    # Pad the vocab axis to a lane-dense multiple of 128 so the output block
    # stays bounded (tn <= 1024) and stores are unmasked; slice afterwards.
    Np = ((N + 127) // 128) * 128
    if Np != N:
        w = jnp.pad(w, ((0, 0), (0, Np - N)))
        b = jnp.pad(b, ((0, 0), (0, Np - N)))

    tm = _pick_tile(M, 256)
    tn = _pick_tile(Np, 1024)
    tk = _pick_tile(K, 512)

    out = pl.pallas_call(
        _matmul_bias_kernel,
        grid=(M // tm, Np // tn, K // tk),
        out_shape=jax.ShapeDtypeStruct((M, Np), jnp.float32),
        in_specs=[pl.BlockSpec((tm, tk), lambda i, j, k: (i, k)),
                  pl.BlockSpec((tk, tn), lambda i, j, k: (k, j)),
                  pl.BlockSpec((1, tn), lambda i, j, k: (0, j))],
        out_specs=pl.BlockSpec((tm, tn), lambda i, j, k: (i, j)),
        compiler_params=pltpu.CompilerParams(
            dimension_semantics=("parallel", "parallel", "arbitrary"),
            vmem_limit_bytes=_VMEM_LIMIT),
    )(x_b, w, b)
    return out[:, :N] if Np != N else out


# ---------------------------------------------------------------------------
# Model glue (embedding gathers, layer stacking).
# The reference module applies: encoder self-attn with mask=None, decoder
# self-attn with the look-ahead (causal) mask, cross-attn with mask=None,
# and no positional encoding / embedding scaling.
# ---------------------------------------------------------------------------

def transformer_forward(params, inp, tar, *, num_heads):
    enc = params["enc_emb"][inp]                     # [B, S, D] gather (JAX glue)
    for lp in params["enc_layers"]:
        enc = fused_block(enc, enc, lp, num_heads, causal=False, with_ffn=True)

    dec = params["dec_emb"][tar]                     # [B, T, D]
    for lp in params["dec_layers"]:
        dec = fused_block(dec, dec, lp["self_attn"], num_heads,
                          causal=True, with_ffn=False)
        dec = fused_block(dec, enc, lp["cross_attn"], num_heads,
                          causal=False, with_ffn=True)

    B, T, D = dec.shape
    logits = final_projection(dec.reshape(B * T, D), params["wf"], params["bf"])
    return logits.reshape(B, T, -1)


# ---------------------------------------------------------------------------
# Deterministic parameter initialization (shapes from the module __init__).
# Matmul weights stored bf16 (MXU inputs); biases / LN params / embeddings f32.
# ---------------------------------------------------------------------------

def init_params(key, num_layers, d_model, dff, in_vocab, tgt_vocab):
    it = iter(jax.random.split(key, 1024))

    def w(shape, scale=0.02, dtype=jnp.float32):
        return (scale * jax.random.normal(next(it), shape)).astype(dtype)

    def attn_ln_p():
        return dict(
            wq=w((d_model, d_model), dtype=jnp.bfloat16), bq=w((1, d_model)),
            wkv=w((d_model, 2 * d_model), dtype=jnp.bfloat16),
            bkv=w((1, 2 * d_model)),
            wo=w((d_model, d_model), dtype=jnp.bfloat16), bo=w((1, d_model)),
            ln1_g=jnp.ones((1, d_model), jnp.float32),
            ln1_b=jnp.zeros((1, d_model), jnp.float32))

    def ffn_p():
        return dict(
            w1=w((d_model, dff), dtype=jnp.bfloat16), b1=w((1, dff)),
            w2=w((dff, d_model), dtype=jnp.bfloat16), b2=w((1, d_model)),
            ln2_g=jnp.ones((1, d_model), jnp.float32),
            ln2_b=jnp.zeros((1, d_model), jnp.float32))

    def enc_layer():
        p = attn_ln_p()
        p.update(ffn_p())
        return p

    def dec_layer():
        cross = attn_ln_p()
        cross.update(ffn_p())
        return {"self_attn": attn_ln_p(), "cross_attn": cross}

    return dict(
        enc_emb=w((in_vocab, d_model), scale=1.0),   # nn.Embedding ~ N(0, 1)
        dec_emb=w((tgt_vocab, d_model), scale=1.0),
        enc_layers=[enc_layer() for _ in range(num_layers)],
        dec_layers=[dec_layer() for _ in range(num_layers)],
        wf=w((d_model, tgt_vocab), dtype=jnp.bfloat16),
        bf=w((1, tgt_vocab)),
    )


# ---------------------------------------------------------------------------

if __name__ == "__main__":
    # Small shapes consistent with the module: d_model=128, heads=8, dff=256,
    # tiny vocab (len(vocab)+2), short sequences, 2 layers.
    NUM_LAYERS = 2
    D_MODEL = 128
    NUM_HEADS = 8
    DFF = 256
    VOCAB = 24            # input_vocab_size == target_vocab_size
    B, S, T = 2, 8, 8

    key = jax.random.PRNGKey(0)
    kp, ki, kt = jax.random.split(key, 3)
    params = init_params(kp, NUM_LAYERS, D_MODEL, DFF, VOCAB, VOCAB)
    inp = jax.random.randint(ki, (B, S), 0, VOCAB, dtype=jnp.int32)
    tar = jax.random.randint(kt, (B, T), 0, VOCAB, dtype=jnp.int32)

    fwd = jax.jit(functools.partial(transformer_forward, num_heads=NUM_HEADS))
    out = fwd(params, inp, tar)
    jax.block_until_ready(out)
    assert out.shape == (B, T, VOCAB), out.shape
    assert bool(jnp.all(jnp.isfinite(out)))
    print("KERNEL_OK")
</pallas_src>

<mosaic_0001>
module attributes {stable_mosaic.version = 11 : i64} {
  func.func @_fused_block_kernel(%arg0: i32, %arg1: i32, %arg2: memref<1x8x128xf32, #tpu.memory_space<vmem>>, %arg3: memref<1x8x128xf32, #tpu.memory_space<vmem>>, %arg4: memref<128x128xbf16, #tpu.memory_space<vmem>>, %arg5: memref<1x128xf32, #tpu.memory_space<vmem>>, %arg6: memref<128x256xbf16, #tpu.memory_space<vmem>>, %arg7: memref<1x256xf32, #tpu.memory_space<vmem>>, %arg8: memref<128x128xbf16, #tpu.memory_space<vmem>>, %arg9: memref<1x128xf32, #tpu.memory_space<vmem>>, %arg10: memref<1x128xf32, #tpu.memory_space<vmem>>, %arg11: memref<1x128xf32, #tpu.memory_space<vmem>>, %arg12: memref<1x8x128xf32, #tpu.memory_space<vmem>>) attributes {dimension_semantics = [#tpu.dimension_semantics<parallel>, #tpu.dimension_semantics<parallel>], iteration_bounds = array<i64: 2, 1>, scalar_prefetch = 0 : i64, scratch_operands = 0 : i64, tpu.core_type = #tpu.core_type<tc>, window_params = [{transform_indices = @transform_0, window_bounds = array<i64: 1, 8, 128>}, {transform_indices = @transform_1, window_bounds = array<i64: 1, 8, 128>}, {pipeline_mode = #tpu.pipeline_mode<synchronous>, transform_indices = @transform_2, window_bounds = array<i64: 128, 128>}, {pipeline_mode = #tpu.pipeline_mode<synchronous>, transform_indices = @transform_3, window_bounds = array<i64: 1, 128>}, {pipeline_mode = #tpu.pipeline_mode<synchronous>, transform_indices = @transform_4, window_bounds = array<i64: 128, 256>}, {pipeline_mode = #tpu.pipeline_mode<synchronous>, transform_indices = @transform_5, window_bounds = array<i64: 1, 256>}, {pipeline_mode = #tpu.pipeline_mode<synchronous>, transform_indices = @transform_6, window_bounds = array<i64: 128, 128>}, {pipeline_mode = #tpu.pipeline_mode<synchronous>, transform_indices = @transform_7, window_bounds = array<i64: 1, 128>}, {pipeline_mode = #tpu.pipeline_mode<synchronous>, transform_indices = @transform_8, window_bounds = array<i64: 1, 128>}, {pipeline_mode = #tpu.pipeline_mode<synchronous>, transform_indices = @transform_9, window_bounds = array<i64: 1, 128>}, {transform_indices = @transform_10, window_bounds = array<i64: 1, 8, 128>}]} {
    %c0 = arith.constant 0 : index
    %c0_0 = arith.constant 0 : index
    %c0_1 = arith.constant 0 : index
    %0 = vector.load %arg2[%c0, %c0_0, %c0_1] : memref<1x8x128xf32, #tpu.memory_space<vmem>>, vector<1x8x128xf32>
    %1 = vector.shape_cast %0 : vector<1x8x128xf32> to vector<8x128xf32>
    %c0_2 = arith.constant 0 : index
    %c0_3 = arith.constant 0 : index
    %c0_4 = arith.constant 0 : index
    %2 = vector.load %arg3[%c0_2, %c0_3, %c0_4] : memref<1x8x128xf32, #tpu.memory_space<vmem>>, vector<1x8x128xf32>
    %3 = vector.shape_cast %2 : vector<1x8x128xf32> to vector<8x128xf32>
    %4 = arith.truncf %1 : vector<8x128xf32> to vector<8x128xbf16>
    %c0_5 = arith.constant 0 : index
    %c0_6 = arith.constant 0 : index
    %5 = vector.load %arg4[%c0_5, %c0_6] : memref<128x128xbf16, #tpu.memory_space<vmem>>, vector<128x128xbf16>
    %cst = arith.constant dense<0.000000e+00> : vector<8x128xf32>
    %6 = tpu.matmul %4, %5, %cst {dimension_numbers = #tpu.dot_dimension_numbers<[1], [0], [0], [1], [0, 0, 1, 1], [], []>} : vector<8x128xbf16>, vector<128x128xbf16>, vector<8x128xf32> -> vector<8x128xf32>
    %c0_7 = arith.constant 0 : index
    %c0_8 = arith.constant 0 : index
    %7 = vector.load %arg5[%c0_7, %c0_8] : memref<1x128xf32, #tpu.memory_space<vmem>>, vector<1x128xf32>
    %8 = vector.broadcast %7 : vector<1x128xf32> to vector<8x128xf32>
    %9 = arith.addf %6, %8 : vector<8x128xf32>
    %10 = arith.truncf %3 : vector<8x128xf32> to vector<8x128xbf16>
    %c0_9 = arith.constant 0 : index
    %c0_10 = arith.constant 0 : index
    %11 = vector.load %arg6[%c0_9, %c0_10] : memref<128x256xbf16, #tpu.memory_space<vmem>>, vector<128x256xbf16>
    %cst_11 = arith.constant dense<0.000000e+00> : vector<8x256xf32>
    %12 = tpu.matmul %10, %11, %cst_11 {dimension_numbers = #tpu.dot_dimension_numbers<[1], [0], [0], [1], [0, 0, 1, 1], [], []>} : vector<8x128xbf16>, vector<128x256xbf16>, vector<8x256xf32> -> vector<8x256xf32>
    %c0_12 = arith.constant 0 : index
    %c0_13 = arith.constant 0 : index
    %13 = vector.load %arg7[%c0_12, %c0_13] : memref<1x256xf32, #tpu.memory_space<vmem>>, vector<1x256xf32>
    %14 = vector.broadcast %13 : vector<1x256xf32> to vector<8x256xf32>
    %15 = arith.addf %12, %14 : vector<8x256xf32>
    %cst_14 = arith.constant 2.500000e-01 : f32
    %16 = vector.broadcast %cst_14 : f32 to vector<8x128xf32>
    %17 = arith.mulf %9, %16 : vector<8x128xf32>
    %18 = arith.truncf %17 : vector<8x128xf32> to vector<8x128xbf16>
    %19 = vector.extract_strided_slice %15 {offsets = [0, 0], sizes = [8, 128], strides = [1, 1]} : vector<8x256xf32> to vector<8x128xf32>
    %20 = arith.truncf %19 : vector<8x128xf32> to vector<8x128xbf16>
    %21 = vector.extract_strided_slice %15 {offsets = [0, 128], sizes = [8, 128], strides = [1, 1]} : vector<8x256xf32> to vector<8x128xf32>
    %22 = arith.truncf %21 : vector<8x128xf32> to vector<8x128xbf16>
    %c8_i32 = arith.constant 8 : i32
    %23 = arith.muli %arg1, %c8_i32 : i32
    %24 = tpu.iota {dimensions = array<i32: 0>} : vector<8x8xi32>
    %25 = vector.broadcast %23 : i32 to vector<8x8xi32>
    %26 = arith.addi %25, %24 : vector<8x8xi32>
    %27 = tpu.iota {dimensions = array<i32: 1>} : vector<8x8xi32>
    %28 = arith.cmpi sgt, %27, %26 : vector<8x8xi32>
    %cst_15 = arith.constant -1.000000e+30 : f32
    %cst_16 = arith.constant 0.000000e+00 : f32
    %29 = vector.broadcast %cst_15 : f32 to vector<8x8xf32>
    %30 = vector.broadcast %cst_16 : f32 to vector<8x8xf32>
    %31 = arith.select %28, %29, %30 : vector<8x8xi1>, vector<8x8xf32>
    %32 = vector.extract_strided_slice %18 {offsets = [0, 0], sizes = [8, 16], strides = [1, 1]} : vector<8x128xbf16> to vector<8x16xbf16>
    %33 = vector.extract_strided_slice %20 {offsets = [0, 0], sizes = [8, 16], strides = [1, 1]} : vector<8x128xbf16> to vector<8x16xbf16>
    %34 = vector.extract_strided_slice %22 {offsets = [0, 0], sizes = [8, 16], strides = [1, 1]} : vector<8x128xbf16> to vector<8x16xbf16>
    %cst_17 = arith.constant dense<0.000000e+00> : vector<8x8xf32>
    %35 = tpu.matmul %32, %33, %cst_17 {dimension_numbers = #tpu.dot_dimension_numbers<[1], [1], [0], [0], [0, 0, 1, 0], [], []>} : vector<8x16xbf16>, vector<8x16xbf16>, vector<8x8xf32> -> vector<8x8xf32>
    %36 = arith.addf %35, %31 : vector<8x8xf32>
    %cst_18 = arith.constant dense<0xFF800000> : vector<8xf32>
    %37 = vector.multi_reduction <maximumf>, %36, %cst_18 [1] : vector<8x8xf32> to vector<8xf32>
    %38 = vector.shape_cast %37 : vector<8xf32> to vector<8x1xf32>
    %39 = vector.broadcast %38 : vector<8x1xf32> to vector<8x8xf32>
    %40 = arith.subf %36, %39 : vector<8x8xf32>
    %41 = math.exp %40 : vector<8x8xf32>
    %cst_19 = arith.constant dense<0.000000e+00> : vector<8xf32>
    %42 = vector.multi_reduction <add>, %41, %cst_19 [1] : vector<8x8xf32> to vector<8xf32>
    %43 = vector.shape_cast %42 : vector<8xf32> to vector<8x1xf32>
    %44 = tpu.reciprocal %43 {approx = true} : vector<8x1xf32> -> vector<8x1xf32>
    %45 = vector.broadcast %44 : vector<8x1xf32> to vector<8x8xf32>
    %46 = arith.mulf %41, %45 : vector<8x8xf32>
    %47 = arith.truncf %46 : vector<8x8xf32> to vector<8x8xbf16>
    %cst_20 = arith.constant dense<0.000000e+00> : vector<8x16xf32>
    %48 = tpu.matmul %47, %34, %cst_20 {dimension_numbers = #tpu.dot_dimension_numbers<[1], [0], [0], [1], [0, 0, 1, 1], [], []>} : vector<8x8xbf16>, vector<8x16xbf16>, vector<8x16xf32> -> vector<8x16xf32>
    %49 = vector.extract_strided_slice %18 {offsets = [0, 16], sizes = [8, 16], strides = [1, 1]} : vector<8x128xbf16> to vector<8x16xbf16>
    %50 = vector.extract_strided_slice %20 {offsets = [0, 16], sizes = [8, 16], strides = [1, 1]} : vector<8x128xbf16> to vector<8x16xbf16>
    %51 = vector.extract_strided_slice %22 {offsets = [0, 16], sizes = [8, 16], strides = [1, 1]} : vector<8x128xbf16> to vector<8x16xbf16>
    %cst_21 = arith.constant dense<0.000000e+00> : vector<8x8xf32>
    %52 = tpu.matmul %49, %50, %cst_21 {dimension_numbers = #tpu.dot_dimension_numbers<[1], [1], [0], [0], [0, 0, 1, 0], [], []>} : vector<8x16xbf16>, vector<8x16xbf16>, vector<8x8xf32> -> vector<8x8xf32>
    %53 = arith.addf %52, %31 : vector<8x8xf32>
    %cst_22 = arith.constant dense<0xFF800000> : vector<8xf32>
    %54 = vector.multi_reduction <maximumf>, %53, %cst_22 [1] : vector<8x8xf32> to vector<8xf32>
    %55 = vector.shape_cast %54 : vector<8xf32> to vector<8x1xf32>
    %56 = vector.broadcast %55 : vector<8x1xf32> to vector<8x8xf32>
    %57 = arith.subf %53, %56 : vector<8x8xf32>
    %58 = math.exp %57 : vector<8x8xf32>
    %cst_23 = arith.constant dense<0.000000e+00> : vector<8xf32>
    %59 = vector.multi_reduction <add>, %58, %cst_23 [1] : vector<8x8xf32> to vector<8xf32>
    %60 = vector.shape_cast %59 : vector<8xf32> to vector<8x1xf32>
    %61 = tpu.reciprocal %60 {approx = true} : vector<8x1xf32> -> vector<8x1xf32>
    %62 = vector.broadcast %61 : vector<8x1xf32> to vector<8x8xf32>
    %63 = arith.mulf %58, %62 : vector<8x8xf32>
    %64 = arith.truncf %63 : vector<8x8xf32> to vector<8x8xbf16>
    %cst_24 = arith.constant dense<0.000000e+00> : vector<8x16xf32>
    %65 = tpu.matmul %64, %51, %cst_24 {dimension_numbers = #tpu.dot_dimension_numbers<[1], [0], [0], [1], [0, 0, 1, 1], [], []>} : vector<8x8xbf16>, vector<8x16xbf16>, vector<8x16xf32> -> vector<8x16xf32>
    %66 = vector.extract_strided_slice %18 {offsets = [0, 32], sizes = [8, 16], strides = [1, 1]} : vector<8x128xbf16> to vector<8x16xbf16>
    %67 = vector.extract_strided_slice %20 {offsets = [0, 32], sizes = [8, 16], strides = [1, 1]} : vector<8x128xbf16> to vector<8x16xbf16>
    %68 = vector.extract_strided_slice %22 {offsets = [0, 32], sizes = [8, 16], strides = [1, 1]} : vector<8x128xbf16> to vector<8x16xbf16>
    %cst_25 = arith.constant dense<0.000000e+00> : vector<8x8xf32>
    %69 = tpu.matmul %66, %67, %cst_25 {dimension_numbers = #tpu.dot_dimension_numbers<[1], [1], [0], [0], [0, 0, 1, 0], [], []>} : vector<8x16xbf16>, vector<8x16xbf16>, vector<8x8xf32> -> vector<8x8xf32>
    %70 = arith.addf %69, %31 : vector<8x8xf32>
    %cst_26 = arith.constant dense<0xFF800000> : vector<8xf32>
    %71 = vector.multi_reduction <maximumf>, %70, %cst_26 [1] : vector<8x8xf32> to vector<8xf32>
    %72 = vector.shape_cast %71 : vector<8xf32> to vector<8x1xf32>
    %73 = vector.broadcast %72 : vector<8x1xf32> to vector<8x8xf32>
    %74 = arith.subf %70, %73 : vector<8x8xf32>
    %75 = math.exp %74 : vector<8x8xf32>
    %cst_27 = arith.constant dense<0.000000e+00> : vector<8xf32>
    %76 = vector.multi_reduction <add>, %75, %cst_27 [1] : vector<8x8xf32> to vector<8xf32>
    %77 = vector.shape_cast %76 : vector<8xf32> to vector<8x1xf32>
    %78 = tpu.reciprocal %77 {approx = true} : vector<8x1xf32> -> vector<8x1xf32>
    %79 = vector.broadcast %78 : vector<8x1xf32> to vector<8x8xf32>
    %80 = arith.mulf %75, %79 : vector<8x8xf32>
    %81 = arith.truncf %80 : vector<8x8xf32> to vector<8x8xbf16>
    %cst_28 = arith.constant dense<0.000000e+00> : vector<8x16xf32>
    %82 = tpu.matmul %81, %68, %cst_28 {dimension_numbers = #tpu.dot_dimension_numbers<[1], [0], [0], [1], [0, 0, 1, 1], [], []>} : vector<8x8xbf16>, vector<8x16xbf16>, vector<8x16xf32> -> vector<8x16xf32>
    %83 = vector.extract_strided_slice %18 {offsets = [0, 48], sizes = [8, 16], strides = [1, 1]} : vector<8x128xbf16> to vector<8x16xbf16>
    %84 = vector.extract_strided_slice %20 {offsets = [0, 48], sizes = [8, 16], strides = [1, 1]} : vector<8x128xbf16> to vector<8x16xbf16>
    %85 = vector.extract_strided_slice %22 {offsets = [0, 48], sizes = [8, 16], strides = [1, 1]} : vector<8x128xbf16> to vector<8x16xbf16>
    %cst_29 = arith.constant dense<0.000000e+00> : vector<8x8xf32>
    %86 = tpu.matmul %83, %84, %cst_29 {dimension_numbers = #tpu.dot_dimension_numbers<[1], [1], [0], [0], [0, 0, 1, 0], [], []>} : vector<8x16xbf16>, vector<8x16xbf16>, vector<8x8xf32> -> vector<8x8xf32>
    %87 = arith.addf %86, %31 : vector<8x8xf32>
    %cst_30 = arith.constant dense<0xFF800000> : vector<8xf32>
    %88 = vector.multi_reduction <maximumf>, %87, %cst_30 [1] : vector<8x8xf32> to vector<8xf32>
    %89 = vector.shape_cast %88 : vector<8xf32> to vector<8x1xf32>
    %90 = vector.broadcast %89 : vector<8x1xf32> to vector<8x8xf32>
    %91 = arith.subf %87, %90 : vector<8x8xf32>
    %92 = math.exp %91 : vector<8x8xf32>
    %cst_31 = arith.constant dense<0.000000e+00> : vector<8xf32>
    %93 = vector.multi_reduction <add>, %92, %cst_31 [1] : vector<8x8xf32> to vector<8xf32>
    %94 = vector.shape_cast %93 : vector<8xf32> to vector<8x1xf32>
    %95 = tpu.reciprocal %94 {approx = true} : vector<8x1xf32> -> vector<8x1xf32>
    %96 = vector.broadcast %95 : vector<8x1xf32> to vector<8x8xf32>
    %97 = arith.mulf %92, %96 : vector<8x8xf32>
    %98 = arith.truncf %97 : vector<8x8xf32> to vector<8x8xbf16>
    %cst_32 = arith.constant dense<0.000000e+00> : vector<8x16xf32>
    %99 = tpu.matmul %98, %85, %cst_32 {dimension_numbers = #tpu.dot_dimension_numbers<[1], [0], [0], [1], [0, 0, 1, 1], [], []>} : vector<8x8xbf16>, vector<8x16xbf16>, vector<8x16xf32> -> vector<8x16xf32>
    %100 = vector.extract_strided_slice %18 {offsets = [0, 64], sizes = [8, 16], strides = [1, 1]} : vector<8x128xbf16> to vector<8x16xbf16>
    %101 = vector.extract_strided_slice %20 {offsets = [0, 64], sizes = [8, 16], strides = [1, 1]} : vector<8x128xbf16> to vector<8x16xbf16>
    %102 = vector.extract_strided_slice %22 {offsets = [0, 64], sizes = [8, 16], strides = [1, 1]} : vector<8x128xbf16> to vector<8x16xbf16>
    %cst_33 = arith.constant dense<0.000000e+00> : vector<8x8xf32>
    %103 = tpu.matmul %100, %101, %cst_33 {dimension_numbers = #tpu.dot_dimension_numbers<[1], [1], [0], [0], [0, 0, 1, 0], [], []>} : vector<8x16xbf16>, vector<8x16xbf16>, vector<8x8xf32> -> vector<8x8xf32>
    %104 = arith.addf %103, %31 : vector<8x8xf32>
    %cst_34 = arith.constant dense<0xFF800000> : vector<8xf32>
    %105 = vector.multi_reduction <maximumf>, %104, %cst_34 [1] : vector<8x8xf32> to vector<8xf32>
    %106 = vector.shape_cast %105 : vector<8xf32> to vector<8x1xf32>
    %107 = vector.broadcast %106 : vector<8x1xf32> to vector<8x8xf32>
    %108 = arith.subf %104, %107 : vector<8x8xf32>
    %109 = math.exp %108 : vector<8x8xf32>
    %cst_35 = arith.constant dense<0.000000e+00> : vector<8xf32>
    %110 = vector.multi_reduction <add>, %109, %cst_35 [1] : vector<8x8xf32> to vector<8xf32>
    %111 = vector.shape_cast %110 : vector<8xf32> to vector<8x1xf32>
    %112 = tpu.reciprocal %111 {approx = true} : vector<8x1xf32> -> vector<8x1xf32>
    %113 = vector.broadcast %112 : vector<8x1xf32> to vector<8x8xf32>
    %114 = arith.mulf %109, %113 : vector<8x8xf32>
    %115 = arith.truncf %114 : vector<8x8xf32> to vector<8x8xbf16>
    %cst_36 = arith.constant dense<0.000000e+00> : vector<8x16xf32>
    %116 = tpu.matmul %115, %102, %cst_36 {dimension_numbers = #tpu.dot_dimension_numbers<[1], [0], [0], [1], [0, 0, 1, 1], [], []>} : vector<8x8xbf16>, vector<8x16xbf16>, vector<8x16xf32> -> vector<8x16xf32>
    %117 = vector.extract_strided_slice %18 {offsets = [0, 80], sizes = [8, 16], strides = [1, 1]} : vector<8x128xbf16> to vector<8x16xbf16>
    %118 = vector.extract_strided_slice %20 {offsets = [0, 80], sizes = [8, 16], strides = [1, 1]} : vector<8x128xbf16> to vector<8x16xbf16>
    %119 = vector.extract_strided_slice %22 {offsets = [0, 80], sizes = [8, 16], strides = [1, 1]} : vector<8x128xbf16> to vector<8x16xbf16>
    %cst_37 = arith.constant dense<0.000000e+00> : vector<8x8xf32>
    %120 = tpu.matmul %117, %118, %cst_37 {dimension_numbers = #tpu.dot_dimension_numbers<[1], [1], [0], [0], [0, 0, 1, 0], [], []>} : vector<8x16xbf16>, vector<8x16xbf16>, vector<8x8xf32> -> vector<8x8xf32>
    %121 = arith.addf %120, %31 : vector<8x8xf32>
    %cst_38 = arith.constant dense<0xFF800000> : vector<8xf32>
    %122 = vector.multi_reduction <maximumf>, %121, %cst_38 [1] : vector<8x8xf32> to vector<8xf32>
    %123 = vector.shape_cast %122 : vector<8xf32> to vector<8x1xf32>
    %124 = vector.broadcast %123 : vector<8x1xf32> to vector<8x8xf32>
    %125 = arith.subf %121, %124 : vector<8x8xf32>
    %126 = math.exp %125 : vector<8x8xf32>
    %cst_39 = arith.constant dense<0.000000e+00> : vector<8xf32>
    %127 = vector.multi_reduction <add>, %126, %cst_39 [1] : vector<8x8xf32> to vector<8xf32>
    %128 = vector.shape_cast %127 : vector<8xf32> to vector<8x1xf32>
    %129 = tpu.reciprocal %128 {approx = true} : vector<8x1xf32> -> vector<8x1xf32>
    %130 = vector.broadcast %129 : vector<8x1xf32> to vector<8x8xf32>
    %131 = arith.mulf %126, %130 : vector<8x8xf32>
    %132 = arith.truncf %131 : vector<8x8xf32> to vector<8x8xbf16>
    %cst_40 = arith.constant dense<0.000000e+00> : vector<8x16xf32>
    %133 = tpu.matmul %132, %119, %cst_40 {dimension_numbers = #tpu.dot_dimension_numbers<[1], [0], [0], [1], [0, 0, 1, 1], [], []>} : vector<8x8xbf16>, vector<8x16xbf16>, vector<8x16xf32> -> vector<8x16xf32>
    %134 = vector.extract_strided_slice %18 {offsets = [0, 96], sizes = [8, 16], strides = [1, 1]} : vector<8x128xbf16> to vector<8x16xbf16>
    %135 = vector.extract_strided_slice %20 {offsets = [0, 96], sizes = [8, 16], strides = [1, 1]} : vector<8x128xbf16> to vector<8x16xbf16>
    %136 = vector.extract_strided_slice %22 {offsets = [0, 96], sizes = [8, 16], strides = [1, 1]} : vector<8x128xbf16> to vector<8x16xbf16>
    %cst_41 = arith.constant dense<0.000000e+00> : vector<8x8xf32>
    %137 = tpu.matmul %134, %135, %cst_41 {dimension_numbers = #tpu.dot_dimension_numbers<[1], [1], [0], [0], [0, 0, 1, 0], [], []>} : vector<8x16xbf16>, vector<8x16xbf16>, vector<8x8xf32> -> vector<8x8xf32>
    %138 = arith.addf %137, %31 : vector<8x8xf32>
    %cst_42 = arith.constant dense<0xFF800000> : vector<8xf32>
    %139 = vector.multi_reduction <maximumf>, %138, %cst_42 [1] : vector<8x8xf32> to vector<8xf32>
    %140 = vector.shape_cast %139 : vector<8xf32> to vector<8x1xf32>
    %141 = vector.broadcast %140 : vector<8x1xf32> to vector<8x8xf32>
    %142 = arith.subf %138, %141 : vector<8x8xf32>
    %143 = math.exp %142 : vector<8x8xf32>
    %cst_43 = arith.constant dense<0.000000e+00> : vector<8xf32>
    %144 = vector.multi_reduction <add>, %143, %cst_43 [1] : vector<8x8xf32> to vector<8xf32>
    %145 = vector.shape_cast %144 : vector<8xf32> to vector<8x1xf32>
    %146 = tpu.reciprocal %145 {approx = true} : vector<8x1xf32> -> vector<8x1xf32>
    %147 = vector.broadcast %146 : vector<8x1xf32> to vector<8x8xf32>
    %148 = arith.mulf %143, %147 : vector<8x8xf32>
    %149 = arith.truncf %148 : vector<8x8xf32> to vector<8x8xbf16>
    %cst_44 = arith.constant dense<0.000000e+00> : vector<8x16xf32>
    %150 = tpu.matmul %149, %136, %cst_44 {dimension_numbers = #tpu.dot_dimension_numbers<[1], [0], [0], [1], [0, 0, 1, 1], [], []>} : vector<8x8xbf16>, vector<8x16xbf16>, vector<8x16xf32> -> vector<8x16xf32>
    %151 = vector.extract_strided_slice %18 {offsets = [0, 112], sizes = [8, 16], strides = [1, 1]} : vector<8x128xbf16> to vector<8x16xbf16>
    %152 = vector.extract_strided_slice %20 {offsets = [0, 112], sizes = [8, 16], strides = [1, 1]} : vector<8x128xbf16> to vector<8x16xbf16>
    %153 = vector.extract_strided_slice %22 {offsets = [0, 112], sizes = [8, 16], strides = [1, 1]} : vector<8x128xbf16> to vector<8x16xbf16>
    %cst_45 = arith.constant dense<0.000000e+00> : vector<8x8xf32>
    %154 = tpu.matmul %151, %152, %cst_45 {dimension_numbers = #tpu.dot_dimension_numbers<[1], [1], [0], [0], [0, 0, 1, 0], [], []>} : vector<8x16xbf16>, vector<8x16xbf16>, vector<8x8xf32> -> vector<8x8xf32>
    %155 = arith.addf %154, %31 : vector<8x8xf32>
    %cst_46 = arith.constant dense<0xFF800000> : vector<8xf32>
    %156 = vector.multi_reduction <maximumf>, %155, %cst_46 [1] : vector<8x8xf32> to vector<8xf32>
    %157 = vector.shape_cast %156 : vector<8xf32> to vector<8x1xf32>
    %158 = vector.broadcast %157 : vector<8x1xf32> to vector<8x8xf32>
    %159 = arith.subf %155, %158 : vector<8x8xf32>
    %160 = math.exp %159 : vector<8x8xf32>
    %cst_47 = arith.constant dense<0.000000e+00> : vector<8xf32>
    %161 = vector.multi_reduction <add>, %160, %cst_47 [1] : vector<8x8xf32> to vector<8xf32>
    %162 = vector.shape_cast %161 : vector<8xf32> to vector<8x1xf32>
    %163 = tpu.reciprocal %162 {approx = true} : vector<8x1xf32> -> vector<8x1xf32>
    %164 = vector.broadcast %163 : vector<8x1xf32> to vector<8x8xf32>
    %165 = arith.mulf %160, %164 : vector<8x8xf32>
    %166 = arith.truncf %165 : vector<8x8xf32> to vector<8x8xbf16>
    %cst_48 = arith.constant dense<0.000000e+00> : vector<8x16xf32>
    %167 = tpu.matmul %166, %153, %cst_48 {dimension_numbers = #tpu.dot_dimension_numbers<[1], [0], [0], [1], [0, 0, 1, 1], [], []>} : vector<8x8xbf16>, vector<8x16xbf16>, vector<8x16xf32> -> vector<8x16xf32>
    %168 = tpu.concatenate %48, %65, %82, %99, %116, %133, %150, %167 in 1 : vector<8x16xf32>, vector<8x16xf32>, vector<8x16xf32>, vector<8x16xf32>, vector<8x16xf32>, vector<8x16xf32>, vector<8x16xf32>, vector<8x16xf32> -> vector<8x128xf32>
    %169 = arith.truncf %168 : vector<8x128xf32> to vector<8x128xbf16>
    %c0_49 = arith.constant 0 : index
    %c0_50 = arith.constant 0 : index
    %170 = vector.load %arg8[%c0_49, %c0_50] : memref<128x128xbf16, #tpu.memory_space<vmem>>, vector<128x128xbf16>
    %cst_51 = arith.constant dense<0.000000e+00> : vector<8x128xf32>
    %171 = tpu.matmul %169, %170, %cst_51 {dimension_numbers = #tpu.dot_dimension_numbers<[1], [0], [0], [1], [0, 0, 1, 1], [], []>} : vector<8x128xbf16>, vector<128x128xbf16>, vector<8x128xf32> -> vector<8x128xf32>
    %c0_52 = arith.constant 0 : index
    %c0_53 = arith.constant 0 : index
    %172 = vector.load %arg9[%c0_52, %c0_53] : memref<1x128xf32, #tpu.memory_space<vmem>>, vector<1x128xf32>
    %173 = vector.broadcast %172 : vector<1x128xf32> to vector<8x128xf32>
    %174 = arith.addf %171, %173 : vector<8x128xf32>
    %175 = arith.addf %1, %174 : vector<8x128xf32>
    %c0_54 = arith.constant 0 : index
    %c0_55 = arith.constant 0 : index
    %176 = vector.load %arg10[%c0_54, %c0_55] : memref<1x128xf32, #tpu.memory_space<vmem>>, vector<1x128xf32>
    %c0_56 = arith.constant 0 : index
    %c0_57 = arith.constant 0 : index
    %177 = vector.load %arg11[%c0_56, %c0_57] : memref<1x128xf32, #tpu.memory_space<vmem>>, vector<1x128xf32>
    %cst_58 = arith.constant dense<0.000000e+00> : vector<8xf32>
    %178 = vector.multi_reduction <add>, %175, %cst_58 [1] : vector<8x128xf32> to vector<8xf32>
    %179 = vector.shape_cast %178 : vector<8xf32> to vector<8x1xf32>
    %cst_59 = arith.constant 1.280000e+02 : f32
    %180 = vector.broadcast %cst_59 : f32 to vector<8x1xf32>
    %181 = arith.divf %179, %180 : vector<8x1xf32>
    %182 = arith.mulf %175, %175 : vector<8x128xf32>
    %cst_60 = arith.constant dense<0.000000e+00> : vector<8xf32>
    %183 = vector.multi_reduction <add>, %182, %cst_60 [1] : vector<8x128xf32> to vector<8xf32>
    %184 = vector.shape_cast %183 : vector<8xf32> to vector<8x1xf32>
    %cst_61 = arith.constant 1.280000e+02 : f32
    %185 = vector.broadcast %cst_61 : f32 to vector<8x1xf32>
    %186 = arith.divf %184, %185 : vector<8x1xf32>
    %187 = arith.mulf %181, %181 : vector<8x1xf32>
    %188 = arith.subf %186, %187 : vector<8x1xf32>
    %cst_62 = arith.constant 0.000000e+00 : f32
    %189 = vector.broadcast %cst_62 : f32 to vector<8x1xf32>
    %190 = arith.maximumf %188, %189 : vector<8x1xf32>
    %191 = vector.broadcast %181 : vector<8x1xf32> to vector<8x128xf32>
    %192 = arith.subf %175, %191 : vector<8x128xf32>
    %cst_63 = arith.constant 9.99999997E-7 : f32
    %193 = vector.broadcast %cst_63 : f32 to vector<8x1xf32>
    %194 = arith.addf %190, %193 : vector<8x1xf32>
    %195 = math.rsqrt %194 : vector<8x1xf32>
    %196 = vector.broadcast %195 : vector<8x1xf32> to vector<8x128xf32>
    %197 = arith.mulf %192, %196 : vector<8x128xf32>
    %198 = vector.broadcast %176 : vector<1x128xf32> to vector<8x128xf32>
    %199 = arith.mulf %197, %198 : vector<8x128xf32>
    %200 = vector.broadcast %177 : vector<1x128xf32> to vector<8x128xf32>
    %201 = arith.addf %199, %200 : vector<8x128xf32>
    %c0_64 = arith.constant 0 : index
    %c0_65 = arith.constant 0 : index
    %c0_66 = arith.constant 0 : index
    %202 = vector.load %arg12[%c0_64, %c0_65, %c0_66] : memref<1x8x128xf32, #tpu.memory_space<vmem>>, vector<1x8x128xf32>
    %203 = vector.shape_cast %202 : vector<1x8x128xf32> to vector<8x128xf32>
    %204 = vector.shape_cast %201 : vector<8x128xf32> to vector<1x8x128xf32>
    tpu.vector_store %arg12[%c0_64, %c0_65, %c0_66], %204 {strides = array<i32>} : memref<1x8x128xf32, #tpu.memory_space<vmem>>, vector<1x8x128xf32>,
    return
  }
  func.func @transform_0(%arg0: i32, %arg1: i32) -> (i32, i32, i32) {
    %c0_i32 = arith.constant 0 : i32
    %c0_i32_0 = arith.constant 0 : i32
    return %arg0, %arg1, %c0_i32 : i32, i32, i32
  }
  func.func @transform_1(%arg0: i32, %arg1: i32) -> (i32, i32, i32) {
    %c0_i32 = arith.constant 0 : i32
    %c0_i32_0 = arith.constant 0 : i32
    %c0_i32_1 = arith.constant 0 : i32
    return %arg0, %c0_i32, %c0_i32_0 : i32, i32, i32
  }
  func.func @transform_2(%arg0: i32, %arg1: i32) -> (i32, i32) {
    %c0_i32 = arith.constant 0 : i32
    %c0_i32_0 = arith.constant 0 : i32
    %c0_i32_1 = arith.constant 0 : i32
    return %c0_i32, %c0_i32_0 : i32, i32
  }
  func.func @transform_3(%arg0: i32, %arg1: i32) -> (i32, i32) {
    %c0_i32 = arith.constant 0 : i32
    %c0_i32_0 = arith.constant 0 : i32
    %c0_i32_1 = arith.constant 0 : i32
    return %c0_i32, %c0_i32_0 : i32, i32
  }
  func.func @transform_4(%arg0: i32, %arg1: i32) -> (i32, i32) {
    %c0_i32 = arith.constant 0 : i32
    %c0_i32_0 = arith.constant 0 : i32
    %c0_i32_1 = arith.constant 0 : i32
    return %c0_i32, %c0_i32_0 : i32, i32
  }
  func.func @transform_5(%arg0: i32, %arg1: i32) -> (i32, i32) {
    %c0_i32 = arith.constant 0 : i32
    %c0_i32_0 = arith.constant 0 : i32
    %c0_i32_1 = arith.constant 0 : i32
    return %c0_i32, %c0_i32_0 : i32, i32
  }
  func.func @transform_6(%arg0: i32, %arg1: i32) -> (i32, i32) {
    %c0_i32 = arith.constant 0 : i32
    %c0_i32_0 = arith.constant 0 : i32
    %c0_i32_1 = arith.constant 0 : i32
    return %c0_i32, %c0_i32_0 : i32, i32
  }
  func.func @transform_7(%arg0: i32, %arg1: i32) -> (i32, i32) {
    %c0_i32 = arith.constant 0 : i32
    %c0_i32_0 = arith.constant 0 : i32
    %c0_i32_1 = arith.constant 0 : i32
    return %c0_i32, %c0_i32_0 : i32, i32
  }
  func.func @transform_8(%arg0: i32, %arg1: i32) -> (i32, i32) {
    %c0_i32 = arith.constant 0 : i32
    %c0_i32_0 = arith.constant 0 : i32
    %c0_i32_1 = arith.constant 0 : i32
    return %c0_i32, %c0_i32_0 : i32, i32
  }
  func.func @transform_9(%arg0: i32, %arg1: i32) -> (i32, i32) {
    %c0_i32 = arith.constant 0 : i32
    %c0_i32_0 = arith.constant 0 : i32
    %c0_i32_1 = arith.constant 0 : i32
    return %c0_i32, %c0_i32_0 : i32, i32
  }
  func.func @transform_10(%arg0: i32, %arg1: i32) -> (i32, i32, i32) {
    %c0_i32 = arith.constant 0 : i32
    %c0_i32_0 = arith.constant 0 : i32
    return %arg0, %arg1, %c0_i32 : i32, i32, i32
  }
}

module attributes {stable_mosaic.version = 11 : i64} {
  func.func @_fused_block_kernel(%arg0: i32, %arg1: i32, %arg2: memref<1x8x128xf32, #tpu.memory_space<vmem>>, %arg3: memref<1x8x128xf32, #tpu.memory_space<vmem>>, %arg4: memref<128x128xbf16, #tpu.memory_space<vmem>>, %arg5: memref<1x128xf32, #tpu.memory_space<vmem>>, %arg6: memref<128x256xbf16, #tpu.memory_space<vmem>>, %arg7: memref<1x256xf32, #tpu.memory_space<vmem>>, %arg8: memref<128x128xbf16, #tpu.memory_space<vmem>>, %arg9: memref<1x128xf32, #tpu.memory_space<vmem>>, %arg10: memref<1x128xf32, #tpu.memory_space<vmem>>, %arg11: memref<1x128xf32, #tpu.memory_space<vmem>>, %arg12: memref<128x256xbf16, #tpu.memory_space<vmem>>, %arg13: memref<1x256xf32, #tpu.memory_space<vmem>>, %arg14: memref<256x128xbf16, #tpu.memory_space<vmem>>, %arg15: memref<1x128xf32, #tpu.memory_space<vmem>>, %arg16: memref<1x128xf32, #tpu.memory_space<vmem>>, %arg17: memref<1x128xf32, #tpu.memory_space<vmem>>, %arg18: memref<1x8x128xf32, #tpu.memory_space<vmem>>) attributes {dimension_semantics = [#tpu.dimension_semantics<parallel>, #tpu.dimension_semantics<parallel>], iteration_bounds = array<i64: 2, 1>, scalar_prefetch = 0 : i64, scratch_operands = 0 : i64, tpu.core_type = #tpu.core_type<tc>, window_params = [{transform_indices = @transform_0, window_bounds = array<i64: 1, 8, 128>}, {transform_indices = @transform_1, window_bounds = array<i64: 1, 8, 128>}, {pipeline_mode = #tpu.pipeline_mode<synchronous>, transform_indices = @transform_2, window_bounds = array<i64: 128, 128>}, {pipeline_mode = #tpu.pipeline_mode<synchronous>, transform_indices = @transform_3, window_bounds = array<i64: 1, 128>}, {pipeline_mode = #tpu.pipeline_mode<synchronous>, transform_indices = @transform_4, window_bounds = array<i64: 128, 256>}, {pipeline_mode = #tpu.pipeline_mode<synchronous>, transform_indices = @transform_5, window_bounds = array<i64: 1, 256>}, {pipeline_mode = #tpu.pipeline_mode<synchronous>, transform_indices = @transform_6, window_bounds = array<i64: 128, 128>}, {pipeline_mode = #tpu.pipeline_mode<synchronous>, transform_indices = @transform_7, window_bounds = array<i64: 1, 128>}, {pipeline_mode = #tpu.pipeline_mode<synchronous>, transform_indices = @transform_8, window_bounds = array<i64: 1, 128>}, {pipeline_mode = #tpu.pipeline_mode<synchronous>, transform_indices = @transform_9, window_bounds = array<i64: 1, 128>}, {pipeline_mode = #tpu.pipeline_mode<synchronous>, transform_indices = @transform_10, window_bounds = array<i64: 128, 256>}, {pipeline_mode = #tpu.pipeline_mode<synchronous>, transform_indices = @transform_11, window_bounds = array<i64: 1, 256>}, {pipeline_mode = #tpu.pipeline_mode<synchronous>, transform_indices = @transform_12, window_bounds = array<i64: 256, 128>}, {pipeline_mode = #tpu.pipeline_mode<synchronous>, transform_indices = @transform_13, window_bounds = array<i64: 1, 128>}, {pipeline_mode = #tpu.pipeline_mode<synchronous>, transform_indices = @transform_14, window_bounds = array<i64: 1, 128>}, {pipeline_mode = #tpu.pipeline_mode<synchronous>, transform_indices = @transform_15, window_bounds = array<i64: 1, 128>}, {transform_indices = @transform_16, window_bounds = array<i64: 1, 8, 128>}]} {
    %c0 = arith.constant 0 : index
    %c0_0 = arith.constant 0 : index
    %c0_1 = arith.constant 0 : index
    %0 = vector.load %arg2[%c0, %c0_0, %c0_1] : memref<1x8x128xf32, #tpu.memory_space<vmem>>, vector<1x8x128xf32>
    %1 = vector.shape_cast %0 : vector<1x8x128xf32> to vector<8x128xf32>
    %c0_2 = arith.constant 0 : index
    %c0_3 = arith.constant 0 : index
    %c0_4 = arith.constant 0 : index
    %2 = vector.load %arg3[%c0_2, %c0_3, %c0_4] : memref<1x8x128xf32, #tpu.memory_space<vmem>>, vector<1x8x128xf32>
    %3 = vector.shape_cast %2 : vector<1x8x128xf32> to vector<8x128xf32>
    %4 = arith.truncf %1 : vector<8x128xf32> to vector<8x128xbf16>
    %c0_5 = arith.constant 0 : index
    %c0_6 = arith.constant 0 : index
    %5 = vector.load %arg4[%c0_5, %c0_6] : memref<128x128xbf16, #tpu.memory_space<vmem>>, vector<128x128xbf16>
    %cst = arith.constant dense<0.000000e+00> : vector<8x128xf32>
    %6 = tpu.matmul %4, %5, %cst {dimension_numbers = #tpu.dot_dimension_numbers<[1], [0], [0], [1], [0, 0, 1, 1], [], []>} : vector<8x128xbf16>, vector<128x128xbf16>, vector<8x128xf32> -> vector<8x128xf32>
    %c0_7 = arith.constant 0 : index
    %c0_8 = arith.constant 0 : index
    %7 = vector.load %arg5[%c0_7, %c0_8] : memref<1x128xf32, #tpu.memory_space<vmem>>, vector<1x128xf32>
    %8 = vector.broadcast %7 : vector<1x128xf32> to vector<8x128xf32>
    %9 = arith.addf %6, %8 : vector<8x128xf32>
    %10 = arith.truncf %3 : vector<8x128xf32> to vector<8x128xbf16>
    %c0_9 = arith.constant 0 : index
    %c0_10 = arith.constant 0 : index
    %11 = vector.load %arg6[%c0_9, %c0_10] : memref<128x256xbf16, #tpu.memory_space<vmem>>, vector<128x256xbf16>
    %cst_11 = arith.constant dense<0.000000e+00> : vector<8x256xf32>
    %12 = tpu.matmul %10, %11, %cst_11 {dimension_numbers = #tpu.dot_dimension_numbers<[1], [0], [0], [1], [0, 0, 1, 1], [], []>} : vector<8x128xbf16>, vector<128x256xbf16>, vector<8x256xf32> -> vector<8x256xf32>
    %c0_12 = arith.constant 0 : index
    %c0_13 = arith.constant 0 : index
    %13 = vector.load %arg7[%c0_12, %c0_13] : memref<1x256xf32, #tpu.memory_space<vmem>>, vector<1x256xf32>
    %14 = vector.broadcast %13 : vector<1x256xf32> to vector<8x256xf32>
    %15 = arith.addf %12, %14 : vector<8x256xf32>
    %cst_14 = arith.constant 2.500000e-01 : f32
    %16 = vector.broadcast %cst_14 : f32 to vector<8x128xf32>
    %17 = arith.mulf %9, %16 : vector<8x128xf32>
    %18 = arith.truncf %17 : vector<8x128xf32> to vector<8x128xbf16>
    %19 = vector.extract_strided_slice %15 {offsets = [0, 0], sizes = [8, 128], strides = [1, 1]} : vector<8x256xf32> to vector<8x128xf32>
    %20 = arith.truncf %19 : vector<8x128xf32> to vector<8x128xbf16>
    %21 = vector.extract_strided_slice %15 {offsets = [0, 128], sizes = [8, 128], strides = [1, 1]} : vector<8x256xf32> to vector<8x128xf32>
    %22 = arith.truncf %21 : vector<8x128xf32> to vector<8x128xbf16>
    %23 = vector.extract_strided_slice %18 {offsets = [0, 0], sizes = [8, 16], strides = [1, 1]} : vector<8x128xbf16> to vector<8x16xbf16>
    %24 = vector.extract_strided_slice %20 {offsets = [0, 0], sizes = [8, 16], strides = [1, 1]} : vector<8x128xbf16> to vector<8x16xbf16>
    %25 = vector.extract_strided_slice %22 {offsets = [0, 0], sizes = [8, 16], strides = [1, 1]} : vector<8x128xbf16> to vector<8x16xbf16>
    %cst_15 = arith.constant dense<0.000000e+00> : vector<8x8xf32>
    %26 = tpu.matmul %23, %24, %cst_15 {dimension_numbers = #tpu.dot_dimension_numbers<[1], [1], [0], [0], [0, 0, 1, 0], [], []>} : vector<8x16xbf16>, vector<8x16xbf16>, vector<8x8xf32> -> vector<8x8xf32>
    %cst_16 = arith.constant dense<0xFF800000> : vector<8xf32>
    %27 = vector.multi_reduction <maximumf>, %26, %cst_16 [1] : vector<8x8xf32> to vector<8xf32>
    %28 = vector.shape_cast %27 : vector<8xf32> to vector<8x1xf32>
    %29 = vector.broadcast %28 : vector<8x1xf32> to vector<8x8xf32>
    %30 = arith.subf %26, %29 : vector<8x8xf32>
    %31 = math.exp %30 : vector<8x8xf32>
    %cst_17 = arith.constant dense<0.000000e+00> : vector<8xf32>
    %32 = vector.multi_reduction <add>, %31, %cst_17 [1] : vector<8x8xf32> to vector<8xf32>
    %33 = vector.shape_cast %32 : vector<8xf32> to vector<8x1xf32>
    %34 = tpu.reciprocal %33 {approx = true} : vector<8x1xf32> -> vector<8x1xf32>
    %35 = vector.broadcast %34 : vector<8x1xf32> to vector<8x8xf32>
    %36 = arith.mulf %31, %35 : vector<8x8xf32>
    %37 = arith.truncf %36 : vector<8x8xf32> to vector<8x8xbf16>
    %cst_18 = arith.constant dense<0.000000e+00> : vector<8x16xf32>
    %38 = tpu.matmul %37, %25, %cst_18 {dimension_numbers = #tpu.dot_dimension_numbers<[1], [0], [0], [1], [0, 0, 1, 1], [], []>} : vector<8x8xbf16>, vector<8x16xbf16>, vector<8x16xf32> -> vector<8x16xf32>
    %39 = vector.extract_strided_slice %18 {offsets = [0, 16], sizes = [8, 16], strides = [1, 1]} : vector<8x128xbf16> to vector<8x16xbf16>
    %40 = vector.extract_strided_slice %20 {offsets = [0, 16], sizes = [8, 16], strides = [1, 1]} : vector<8x128xbf16> to vector<8x16xbf16>
    %41 = vector.extract_strided_slice %22 {offsets = [0, 16], sizes = [8, 16], strides = [1, 1]} : vector<8x128xbf16> to vector<8x16xbf16>
    %cst_19 = arith.constant dense<0.000000e+00> : vector<8x8xf32>
    %42 = tpu.matmul %39, %40, %cst_19 {dimension_numbers = #tpu.dot_dimension_numbers<[1], [1], [0], [0], [0, 0, 1, 0], [], []>} : vector<8x16xbf16>, vector<8x16xbf16>, vector<8x8xf32> -> vector<8x8xf32>
    %cst_20 = arith.constant dense<0xFF800000> : vector<8xf32>
    %43 = vector.multi_reduction <maximumf>, %42, %cst_20 [1] : vector<8x8xf32> to vector<8xf32>
    %44 = vector.shape_cast %43 : vector<8xf32> to vector<8x1xf32>
    %45 = vector.broadcast %44 : vector<8x1xf32> to vector<8x8xf32>
    %46 = arith.subf %42, %45 : vector<8x8xf32>
    %47 = math.exp %46 : vector<8x8xf32>
    %cst_21 = arith.constant dense<0.000000e+00> : vector<8xf32>
    %48 = vector.multi_reduction <add>, %47, %cst_21 [1] : vector<8x8xf32> to vector<8xf32>
    %49 = vector.shape_cast %48 : vector<8xf32> to vector<8x1xf32>
    %50 = tpu.reciprocal %49 {approx = true} : vector<8x1xf32> -> vector<8x1xf32>
    %51 = vector.broadcast %50 : vector<8x1xf32> to vector<8x8xf32>
    %52 = arith.mulf %47, %51 : vector<8x8xf32>
    %53 = arith.truncf %52 : vector<8x8xf32> to vector<8x8xbf16>
    %cst_22 = arith.constant dense<0.000000e+00> : vector<8x16xf32>
    %54 = tpu.matmul %53, %41, %cst_22 {dimension_numbers = #tpu.dot_dimension_numbers<[1], [0], [0], [1], [0, 0, 1, 1], [], []>} : vector<8x8xbf16>, vector<8x16xbf16>, vector<8x16xf32> -> vector<8x16xf32>
    %55 = vector.extract_strided_slice %18 {offsets = [0, 32], sizes = [8, 16], strides = [1, 1]} : vector<8x128xbf16> to vector<8x16xbf16>
    %56 = vector.extract_strided_slice %20 {offsets = [0, 32], sizes = [8, 16], strides = [1, 1]} : vector<8x128xbf16> to vector<8x16xbf16>
    %57 = vector.extract_strided_slice %22 {offsets = [0, 32], sizes = [8, 16], strides = [1, 1]} : vector<8x128xbf16> to vector<8x16xbf16>
    %cst_23 = arith.constant dense<0.000000e+00> : vector<8x8xf32>
    %58 = tpu.matmul %55, %56, %cst_23 {dimension_numbers = #tpu.dot_dimension_numbers<[1], [1], [0], [0], [0, 0, 1, 0], [], []>} : vector<8x16xbf16>, vector<8x16xbf16>, vector<8x8xf32> -> vector<8x8xf32>
    %cst_24 = arith.constant dense<0xFF800000> : vector<8xf32>
    %59 = vector.multi_reduction <maximumf>, %58, %cst_24 [1] : vector<8x8xf32> to vector<8xf32>
    %60 = vector.shape_cast %59 : vector<8xf32> to vector<8x1xf32>
    %61 = vector.broadcast %60 : vector<8x1xf32> to vector<8x8xf32>
    %62 = arith.subf %58, %61 : vector<8x8xf32>
    %63 = math.exp %62 : vector<8x8xf32>
    %cst_25 = arith.constant dense<0.000000e+00> : vector<8xf32>
    %64 = vector.multi_reduction <add>, %63, %cst_25 [1] : vector<8x8xf32> to vector<8xf32>
    %65 = vector.shape_cast %64 : vector<8xf32> to vector<8x1xf32>
    %66 = tpu.reciprocal %65 {approx = true} : vector<8x1xf32> -> vector<8x1xf32>
    %67 = vector.broadcast %66 : vector<8x1xf32> to vector<8x8xf32>
    %68 = arith.mulf %63, %67 : vector<8x8xf32>
    %69 = arith.truncf %68 : vector<8x8xf32> to vector<8x8xbf16>
    %cst_26 = arith.constant dense<0.000000e+00> : vector<8x16xf32>
    %70 = tpu.matmul %69, %57, %cst_26 {dimension_numbers = #tpu.dot_dimension_numbers<[1], [0], [0], [1], [0, 0, 1, 1], [], []>} : vector<8x8xbf16>, vector<8x16xbf16>, vector<8x16xf32> -> vector<8x16xf32>
    %71 = vector.extract_strided_slice %18 {offsets = [0, 48], sizes = [8, 16], strides = [1, 1]} : vector<8x128xbf16> to vector<8x16xbf16>
    %72 = vector.extract_strided_slice %20 {offsets = [0, 48], sizes = [8, 16], strides = [1, 1]} : vector<8x128xbf16> to vector<8x16xbf16>
    %73 = vector.extract_strided_slice %22 {offsets = [0, 48], sizes = [8, 16], strides = [1, 1]} : vector<8x128xbf16> to vector<8x16xbf16>
    %cst_27 = arith.constant dense<0.000000e+00> : vector<8x8xf32>
    %74 = tpu.matmul %71, %72, %cst_27 {dimension_numbers = #tpu.dot_dimension_numbers<[1], [1], [0], [0], [0, 0, 1, 0], [], []>} : vector<8x16xbf16>, vector<8x16xbf16>, vector<8x8xf32> -> vector<8x8xf32>
    %cst_28 = arith.constant dense<0xFF800000> : vector<8xf32>
    %75 = vector.multi_reduction <maximumf>, %74, %cst_28 [1] : vector<8x8xf32> to vector<8xf32>
    %76 = vector.shape_cast %75 : vector<8xf32> to vector<8x1xf32>
    %77 = vector.broadcast %76 : vector<8x1xf32> to vector<8x8xf32>
    %78 = arith.subf %74, %77 : vector<8x8xf32>
    %79 = math.exp %78 : vector<8x8xf32>
    %cst_29 = arith.constant dense<0.000000e+00> : vector<8xf32>
    %80 = vector.multi_reduction <add>, %79, %cst_29 [1] : vector<8x8xf32> to vector<8xf32>
    %81 = vector.shape_cast %80 : vector<8xf32> to vector<8x1xf32>
    %82 = tpu.reciprocal %81 {approx = true} : vector<8x1xf32> -> vector<8x1xf32>
    %83 = vector.broadcast %82 : vector<8x1xf32> to vector<8x8xf32>
    %84 = arith.mulf %79, %83 : vector<8x8xf32>
    %85 = arith.truncf %84 : vector<8x8xf32> to vector<8x8xbf16>
    %cst_30 = arith.constant dense<0.000000e+00> : vector<8x16xf32>
    %86 = tpu.matmul %85, %73, %cst_30 {dimension_numbers = #tpu.dot_dimension_numbers<[1], [0], [0], [1], [0, 0, 1, 1], [], []>} : vector<8x8xbf16>, vector<8x16xbf16>, vector<8x16xf32> -> vector<8x16xf32>
    %87 = vector.extract_strided_slice %18 {offsets = [0, 64], sizes = [8, 16], strides = [1, 1]} : vector<8x128xbf16> to vector<8x16xbf16>
    %88 = vector.extract_strided_slice %20 {offsets = [0, 64], sizes = [8, 16], strides = [1, 1]} : vector<8x128xbf16> to vector<8x16xbf16>
    %89 = vector.extract_strided_slice %22 {offsets = [0, 64], sizes = [8, 16], strides = [1, 1]} : vector<8x128xbf16> to vector<8x16xbf16>
    %cst_31 = arith.constant dense<0.000000e+00> : vector<8x8xf32>
    %90 = tpu.matmul %87, %88, %cst_31 {dimension_numbers = #tpu.dot_dimension_numbers<[1], [1], [0], [0], [0, 0, 1, 0], [], []>} : vector<8x16xbf16>, vector<8x16xbf16>, vector<8x8xf32> -> vector<8x8xf32>
    %cst_32 = arith.constant dense<0xFF800000> : vector<8xf32>
    %91 = vector.multi_reduction <maximumf>, %90, %cst_32 [1] : vector<8x8xf32> to vector<8xf32>
    %92 = vector.shape_cast %91 : vector<8xf32> to vector<8x1xf32>
    %93 = vector.broadcast %92 : vector<8x1xf32> to vector<8x8xf32>
    %94 = arith.subf %90, %93 : vector<8x8xf32>
    %95 = math.exp %94 : vector<8x8xf32>
    %cst_33 = arith.constant dense<0.000000e+00> : vector<8xf32>
    %96 = vector.multi_reduction <add>, %95, %cst_33 [1] : vector<8x8xf32> to vector<8xf32>
    %97 = vector.shape_cast %96 : vector<8xf32> to vector<8x1xf32>
    %98 = tpu.reciprocal %97 {approx = true} : vector<8x1xf32> -> vector<8x1xf32>
    %99 = vector.broadcast %98 : vector<8x1xf32> to vector<8x8xf32>
    %100 = arith.mulf %95, %99 : vector<8x8xf32>
    %101 = arith.truncf %100 : vector<8x8xf32> to vector<8x8xbf16>
    %cst_34 = arith.constant dense<0.000000e+00> : vector<8x16xf32>
    %102 = tpu.matmul %101, %89, %cst_34 {dimension_numbers = #tpu.dot_dimension_numbers<[1], [0], [0], [1], [0, 0, 1, 1], [], []>} : vector<8x8xbf16>, vector<8x16xbf16>, vector<8x16xf32> -> vector<8x16xf32>
    %103 = vector.extract_strided_slice %18 {offsets = [0, 80], sizes = [8, 16], strides = [1, 1]} : vector<8x128xbf16> to vector<8x16xbf16>
    %104 = vector.extract_strided_slice %20 {offsets = [0, 80], sizes = [8, 16], strides = [1, 1]} : vector<8x128xbf16> to vector<8x16xbf16>
    %105 = vector.extract_strided_slice %22 {offsets = [0, 80], sizes = [8, 16], strides = [1, 1]} : vector<8x128xbf16> to vector<8x16xbf16>
    %cst_35 = arith.constant dense<0.000000e+00> : vector<8x8xf32>
    %106 = tpu.matmul %103, %104, %cst_35 {dimension_numbers = #tpu.dot_dimension_numbers<[1], [1], [0], [0], [0, 0, 1, 0], [], []>} : vector<8x16xbf16>, vector<8x16xbf16>, vector<8x8xf32> -> vector<8x8xf32>
    %cst_36 = arith.constant dense<0xFF800000> : vector<8xf32>
    %107 = vector.multi_reduction <maximumf>, %106, %cst_36 [1] : vector<8x8xf32> to vector<8xf32>
    %108 = vector.shape_cast %107 : vector<8xf32> to vector<8x1xf32>
    %109 = vector.broadcast %108 : vector<8x1xf32> to vector<8x8xf32>
    %110 = arith.subf %106, %109 : vector<8x8xf32>
    %111 = math.exp %110 : vector<8x8xf32>
    %cst_37 = arith.constant dense<0.000000e+00> : vector<8xf32>
    %112 = vector.multi_reduction <add>, %111, %cst_37 [1] : vector<8x8xf32> to vector<8xf32>
    %113 = vector.shape_cast %112 : vector<8xf32> to vector<8x1xf32>
    %114 = tpu.reciprocal %113 {approx = true} : vector<8x1xf32> -> vector<8x1xf32>
    %115 = vector.broadcast %114 : vector<8x1xf32> to vector<8x8xf32>
    %116 = arith.mulf %111, %115 : vector<8x8xf32>
    %117 = arith.truncf %116 : vector<8x8xf32> to vector<8x8xbf16>
    %cst_38 = arith.constant dense<0.000000e+00> : vector<8x16xf32>
    %118 = tpu.matmul %117, %105, %cst_38 {dimension_numbers = #tpu.dot_dimension_numbers<[1], [0], [0], [1], [0, 0, 1, 1], [], []>} : vector<8x8xbf16>, vector<8x16xbf16>, vector<8x16xf32> -> vector<8x16xf32>
    %119 = vector.extract_strided_slice %18 {offsets = [0, 96], sizes = [8, 16], strides = [1, 1]} : vector<8x128xbf16> to vector<8x16xbf16>
    %120 = vector.extract_strided_slice %20 {offsets = [0, 96], sizes = [8, 16], strides = [1, 1]} : vector<8x128xbf16> to vector<8x16xbf16>
    %121 = vector.extract_strided_slice %22 {offsets = [0, 96], sizes = [8, 16], strides = [1, 1]} : vector<8x128xbf16> to vector<8x16xbf16>
    %cst_39 = arith.constant dense<0.000000e+00> : vector<8x8xf32>
    %122 = tpu.matmul %119, %120, %cst_39 {dimension_numbers = #tpu.dot_dimension_numbers<[1], [1], [0], [0], [0, 0, 1, 0], [], []>} : vector<8x16xbf16>, vector<8x16xbf16>, vector<8x8xf32> -> vector<8x8xf32>
    %cst_40 = arith.constant dense<0xFF800000> : vector<8xf32>
    %123 = vector.multi_reduction <maximumf>, %122, %cst_40 [1] : vector<8x8xf32> to vector<8xf32>
    %124 = vector.shape_cast %123 : vector<8xf32> to vector<8x1xf32>
    %125 = vector.broadcast %124 : vector<8x1xf32> to vector<8x8xf32>
    %126 = arith.subf %122, %125 : vector<8x8xf32>
    %127 = math.exp %126 : vector<8x8xf32>
    %cst_41 = arith.constant dense<0.000000e+00> : vector<8xf32>
    %128 = vector.multi_reduction <add>, %127, %cst_41 [1] : vector<8x8xf32> to vector<8xf32>
    %129 = vector.shape_cast %128 : vector<8xf32> to vector<8x1xf32>
    %130 = tpu.reciprocal %129 {approx = true} : vector<8x1xf32> -> vector<8x1xf32>
    %131 = vector.broadcast %130 : vector<8x1xf32> to vector<8x8xf32>
    %132 = arith.mulf %127, %131 : vector<8x8xf32>
    %133 = arith.truncf %132 : vector<8x8xf32> to vector<8x8xbf16>
    %cst_42 = arith.constant dense<0.000000e+00> : vector<8x16xf32>
    %134 = tpu.matmul %133, %121, %cst_42 {dimension_numbers = #tpu.dot_dimension_numbers<[1], [0], [0], [1], [0, 0, 1, 1], [], []>} : vector<8x8xbf16>, vector<8x16xbf16>, vector<8x16xf32> -> vector<8x16xf32>
    %135 = vector.extract_strided_slice %18 {offsets = [0, 112], sizes = [8, 16], strides = [1, 1]} : vector<8x128xbf16> to vector<8x16xbf16>
    %136 = vector.extract_strided_slice %20 {offsets = [0, 112], sizes = [8, 16], strides = [1, 1]} : vector<8x128xbf16> to vector<8x16xbf16>
    %137 = vector.extract_strided_slice %22 {offsets = [0, 112], sizes = [8, 16], strides = [1, 1]} : vector<8x128xbf16> to vector<8x16xbf16>
    %cst_43 = arith.constant dense<0.000000e+00> : vector<8x8xf32>
    %138 = tpu.matmul %135, %136, %cst_43 {dimension_numbers = #tpu.dot_dimension_numbers<[1], [1], [0], [0], [0, 0, 1, 0], [], []>} : vector<8x16xbf16>, vector<8x16xbf16>, vector<8x8xf32> -> vector<8x8xf32>
    %cst_44 = arith.constant dense<0xFF800000> : vector<8xf32>
    %139 = vector.multi_reduction <maximumf>, %138, %cst_44 [1] : vector<8x8xf32> to vector<8xf32>
    %140 = vector.shape_cast %139 : vector<8xf32> to vector<8x1xf32>
    %141 = vector.broadcast %140 : vector<8x1xf32> to vector<8x8xf32>
    %142 = arith.subf %138, %141 : vector<8x8xf32>
    %143 = math.exp %142 : vector<8x8xf32>
    %cst_45 = arith.constant dense<0.000000e+00> : vector<8xf32>
    %144 = vector.multi_reduction <add>, %143, %cst_45 [1] : vector<8x8xf32> to vector<8xf32>
    %145 = vector.shape_cast %144 : vector<8xf32> to vector<8x1xf32>
    %146 = tpu.reciprocal %145 {approx = true} : vector<8x1xf32> -> vector<8x1xf32>
    %147 = vector.broadcast %146 : vector<8x1xf32> to vector<8x8xf32>
    %148 = arith.mulf %143, %147 : vector<8x8xf32>
    %149 = arith.truncf %148 : vector<8x8xf32> to vector<8x8xbf16>
    %cst_46 = arith.constant dense<0.000000e+00> : vector<8x16xf32>
    %150 = tpu.matmul %149, %137, %cst_46 {dimension_numbers = #tpu.dot_dimension_numbers<[1], [0], [0], [1], [0, 0, 1, 1], [], []>} : vector<8x8xbf16>, vector<8x16xbf16>, vector<8x16xf32> -> vector<8x16xf32>
    %151 = tpu.concatenate %38, %54, %70, %86, %102, %118, %134, %150 in 1 : vector<8x16xf32>, vector<8x16xf32>, vector<8x16xf32>, vector<8x16xf32>, vector<8x16xf32>, vector<8x16xf32>, vector<8x16xf32>, vector<8x16xf32> -> vector<8x128xf32>
    %152 = arith.truncf %151 : vector<8x128xf32> to vector<8x128xbf16>
    %c0_47 = arith.constant 0 : index
    %c0_48 = arith.constant 0 : index
    %153 = vector.load %arg8[%c0_47, %c0_48] : memref<128x128xbf16, #tpu.memory_space<vmem>>, vector<128x128xbf16>
    %cst_49 = arith.constant dense<0.000000e+00> : vector<8x128xf32>
    %154 = tpu.matmul %152, %153, %cst_49 {dimension_numbers = #tpu.dot_dimension_numbers<[1], [0], [0], [1], [0, 0, 1, 1], [], []>} : vector<8x128xbf16>, vector<128x128xbf16>, vector<8x128xf32> -> vector<8x128xf32>
    %c0_50 = arith.constant 0 : index
    %c0_51 = arith.constant 0 : index
    %155 = vector.load %arg9[%c0_50, %c0_51] : memref<1x128xf32, #tpu.memory_space<vmem>>, vector<1x128xf32>
    %156 = vector.broadcast %155 : vector<1x128xf32> to vector<8x128xf32>
    %157 = arith.addf %154, %156 : vector<8x128xf32>
    %158 = arith.addf %1, %157 : vector<8x128xf32>
    %c0_52 = arith.constant 0 : index
    %c0_53 = arith.constant 0 : index
    %159 = vector.load %arg10[%c0_52, %c0_53] : memref<1x128xf32, #tpu.memory_space<vmem>>, vector<1x128xf32>
    %c0_54 = arith.constant 0 : index
    %c0_55 = arith.constant 0 : index
    %160 = vector.load %arg11[%c0_54, %c0_55] : memref<1x128xf32, #tpu.memory_space<vmem>>, vector<1x128xf32>
    %cst_56 = arith.constant dense<0.000000e+00> : vector<8xf32>
    %161 = vector.multi_reduction <add>, %158, %cst_56 [1] : vector<8x128xf32> to vector<8xf32>
    %162 = vector.shape_cast %161 : vector<8xf32> to vector<8x1xf32>
    %cst_57 = arith.constant 1.280000e+02 : f32
    %163 = vector.broadcast %cst_57 : f32 to vector<8x1xf32>
    %164 = arith.divf %162, %163 : vector<8x1xf32>
    %165 = arith.mulf %158, %158 : vector<8x128xf32>
    %cst_58 = arith.constant dense<0.000000e+00> : vector<8xf32>
    %166 = vector.multi_reduction <add>, %165, %cst_58 [1] : vector<8x128xf32> to vector<8xf32>
    %167 = vector.shape_cast %166 : vector<8xf32> to vector<8x1xf32>
    %cst_59 = arith.constant 1.280000e+02 : f32
    %168 = vector.broadcast %cst_59 : f32 to vector<8x1xf32>
    %169 = arith.divf %167, %168 : vector<8x1xf32>
    %170 = arith.mulf %164, %164 : vector<8x1xf32>
    %171 = arith.subf %169, %170 : vector<8x1xf32>
    %cst_60 = arith.constant 0.000000e+00 : f32
    %172 = vector.broadcast %cst_60 : f32 to vector<8x1xf32>
    %173 = arith.maximumf %171, %172 : vector<8x1xf32>
    %174 = vector.broadcast %164 : vector<8x1xf32> to vector<8x128xf32>
    %175 = arith.subf %158, %174 : vector<8x128xf32>
    %cst_61 = arith.constant 9.99999997E-7 : f32
    %176 = vector.broadcast %cst_61 : f32 to vector<8x1xf32>
    %177 = arith.addf %173, %176 : vector<8x1xf32>
    %178 = math.rsqrt %177 : vector<8x1xf32>
    %179 = vector.broadcast %178 : vector<8x1xf32> to vector<8x128xf32>
    %180 = arith.mulf %175, %179 : vector<8x128xf32>
    %181 = vector.broadcast %159 : vector<1x128xf32> to vector<8x128xf32>
    %182 = arith.mulf %180, %181 : vector<8x128xf32>
    %183 = vector.broadcast %160 : vector<1x128xf32> to vector<8x128xf32>
    %184 = arith.addf %182, %183 : vector<8x128xf32>
    %185 = arith.truncf %184 : vector<8x128xf32> to vector<8x128xbf16>
    %c0_62 = arith.constant 0 : index
    %c0_63 = arith.constant 0 : index
    %186 = vector.load %arg12[%c0_62, %c0_63] : memref<128x256xbf16, #tpu.memory_space<vmem>>, vector<128x256xbf16>
    %cst_64 = arith.constant dense<0.000000e+00> : vector<8x256xf32>
    %187 = tpu.matmul %185, %186, %cst_64 {dimension_numbers = #tpu.dot_dimension_numbers<[1], [0], [0], [1], [0, 0, 1, 1], [], []>} : vector<8x128xbf16>, vector<128x256xbf16>, vector<8x256xf32> -> vector<8x256xf32>
    %c0_65 = arith.constant 0 : index
    %c0_66 = arith.constant 0 : index
    %188 = vector.load %arg13[%c0_65, %c0_66] : memref<1x256xf32, #tpu.memory_space<vmem>>, vector<1x256xf32>
    %189 = vector.broadcast %188 : vector<1x256xf32> to vector<8x256xf32>
    %190 = arith.addf %187, %189 : vector<8x256xf32>
    %cst_67 = arith.constant 0.000000e+00 : f32
    %191 = vector.broadcast %cst_67 : f32 to vector<8x256xf32>
    %192 = arith.maximumf %190, %191 : vector<8x256xf32>
    %193 = arith.truncf %192 : vector<8x256xf32> to vector<8x256xbf16>
    %c0_68 = arith.constant 0 : index
    %c0_69 = arith.constant 0 : index
    %194 = vector.load %arg14[%c0_68, %c0_69] : memref<256x128xbf16, #tpu.memory_space<vmem>>, vector<256x128xbf16>
    %cst_70 = arith.constant dense<0.000000e+00> : vector<8x128xf32>
    %195 = tpu.matmul %193, %194, %cst_70 {dimension_numbers = #tpu.dot_dimension_numbers<[1], [0], [0], [1], [0, 0, 1, 1], [], []>} : vector<8x256xbf16>, vector<256x128xbf16>, vector<8x128xf32> -> vector<8x128xf32>
    %c0_71 = arith.constant 0 : index
    %c0_72 = arith.constant 0 : index
    %196 = vector.load %arg15[%c0_71, %c0_72] : memref<1x128xf32, #tpu.memory_space<vmem>>, vector<1x128xf32>
    %197 = vector.broadcast %196 : vector<1x128xf32> to vector<8x128xf32>
    %198 = arith.addf %195, %197 : vector<8x128xf32>
    %199 = arith.addf %184, %198 : vector<8x128xf32>
    %c0_73 = arith.constant 0 : index
    %c0_74 = arith.constant 0 : index
    %200 = vector.load %arg16[%c0_73, %c0_74] : memref<1x128xf32, #tpu.memory_space<vmem>>, vector<1x128xf32>
    %c0_75 = arith.constant 0 : index
    %c0_76 = arith.constant 0 : index
    %201 = vector.load %arg17[%c0_75, %c0_76] : memref<1x128xf32, #tpu.memory_space<vmem>>, vector<1x128xf32>
    %cst_77 = arith.constant dense<0.000000e+00> : vector<8xf32>
    %202 = vector.multi_reduction <add>, %199, %cst_77 [1] : vector<8x128xf32> to vector<8xf32>
    %203 = vector.shape_cast %202 : vector<8xf32> to vector<8x1xf32>
    %cst_78 = arith.constant 1.280000e+02 : f32
    %204 = vector.broadcast %cst_78 : f32 to vector<8x1xf32>
    %205 = arith.divf %203, %204 : vector<8x1xf32>
    %206 = arith.mulf %199, %199 : vector<8x128xf32>
    %cst_79 = arith.constant dense<0.000000e+00> : vector<8xf32>
    %207 = vector.multi_reduction <add>, %206, %cst_79 [1] : vector<8x128xf32> to vector<8xf32>
    %208 = vector.shape_cast %207 : vector<8xf32> to vector<8x1xf32>
    %cst_80 = arith.constant 1.280000e+02 : f32
    %209 = vector.broadcast %cst_80 : f32 to vector<8x1xf32>
    %210 = arith.divf %208, %209 : vector<8x1xf32>
    %211 = arith.mulf %205, %205 : vector<8x1xf32>
    %212 = arith.subf %210, %211 : vector<8x1xf32>
    %cst_81 = arith.constant 0.000000e+00 : f32
    %213 = vector.broadcast %cst_81 : f32 to vector<8x1xf32>
    %214 = arith.maximumf %212, %213 : vector<8x1xf32>
    %215 = vector.broadcast %205 : vector<8x1xf32> to vector<8x128xf32>
    %216 = arith.subf %199, %215 : vector<8x128xf32>
    %cst_82 = arith.constant 9.99999997E-7 : f32
    %217 = vector.broadcast %cst_82 : f32 to vector<8x1xf32>
    %218 = arith.addf %214, %217 : vector<8x1xf32>
    %219 = math.rsqrt %218 : vector<8x1xf32>
    %220 = vector.broadcast %219 : vector<8x1xf32> to vector<8x128xf32>
    %221 = arith.mulf %216, %220 : vector<8x128xf32>
    %222 = vector.broadcast %200 : vector<1x128xf32> to vector<8x128xf32>
    %223 = arith.mulf %221, %222 : vector<8x128xf32>
    %224 = vector.broadcast %201 : vector<1x128xf32> to vector<8x128xf32>
    %225 = arith.addf %223, %224 : vector<8x128xf32>
    %c0_83 = arith.constant 0 : index
    %c0_84 = arith.constant 0 : index
    %c0_85 = arith.constant 0 : index
    %226 = vector.load %arg18[%c0_83, %c0_84, %c0_85] : memref<1x8x128xf32, #tpu.memory_space<vmem>>, vector<1x8x128xf32>
    %227 = vector.shape_cast %226 : vector<1x8x128xf32> to vector<8x128xf32>
    %228 = vector.shape_cast %225 : vector<8x128xf32> to vector<1x8x128xf32>
    tpu.vector_store %arg18[%c0_83, %c0_84, %c0_85], %228 {strides = array<i32>} : memref<1x8x128xf32, #tpu.memory_space<vmem>>, vector<1x8x128xf32>,
    return
  }
  func.func @transform_0(%arg0: i32, %arg1: i32) -> (i32, i32, i32) {
    %c0_i32 = arith.constant 0 : i32
    %c0_i32_0 = arith.constant 0 : i32
    return %arg0, %arg1, %c0_i32 : i32, i32, i32
  }
  func.func @transform_1(%arg0: i32, %arg1: i32) -> (i32, i32, i32) {
    %c0_i32 = arith.constant 0 : i32
    %c0_i32_0 = arith.constant 0 : i32
    %c0_i32_1 = arith.constant 0 : i32
    return %arg0, %c0_i32, %c0_i32_0 : i32, i32, i32
  }
  func.func @transform_2(%arg0: i32, %arg1: i32) -> (i32, i32) {
    %c0_i32 = arith.constant 0 : i32
    %c0_i32_0 = arith.constant 0 : i32
    %c0_i32_1 = arith.constant 0 : i32
    return %c0_i32, %c0_i32_0 : i32, i32
  }
  func.func @transform_3(%arg0: i32, %arg1: i32) -> (i32, i32) {
    %c0_i32 = arith.constant 0 : i32
    %c0_i32_0 = arith.constant 0 : i32
    %c0_i32_1 = arith.constant 0 : i32
    return %c0_i32, %c0_i32_0 : i32, i32
  }
  func.func @transform_4(%arg0: i32, %arg1: i32) -> (i32, i32) {
    %c0_i32 = arith.constant 0 : i32
    %c0_i32_0 = arith.constant 0 : i32
    %c0_i32_1 = arith.constant 0 : i32
    return %c0_i32, %c0_i32_0 : i32, i32
  }
  func.func @transform_5(%arg0: i32, %arg1: i32) -> (i32, i32) {
    %c0_i32 = arith.constant 0 : i32
    %c0_i32_0 = arith.constant 0 : i32
    %c0_i32_1 = arith.constant 0 : i32
    return %c0_i32, %c0_i32_0 : i32, i32
  }
  func.func @transform_6(%arg0: i32, %arg1: i32) -> (i32, i32) {
    %c0_i32 = arith.constant 0 : i32
    %c0_i32_0 = arith.constant 0 : i32
    %c0_i32_1 = arith.constant 0 : i32
    return %c0_i32, %c0_i32_0 : i32, i32
  }
  func.func @transform_7(%arg0: i32, %arg1: i32) -> (i32, i32) {
    %c0_i32 = arith.constant 0 : i32
    %c0_i32_0 = arith.constant 0 : i32
    %c0_i32_1 = arith.constant 0 : i32
    return %c0_i32, %c0_i32_0 : i32, i32
  }
  func.func @transform_8(%arg0: i32, %arg1: i32) -> (i32, i32) {
    %c0_i32 = arith.constant 0 : i32
    %c0_i32_0 = arith.constant 0 : i32
    %c0_i32_1 = arith.constant 0 : i32
    return %c0_i32, %c0_i32_0 : i32, i32
  }
  func.func @transform_9(%arg0: i32, %arg1: i32) -> (i32, i32) {
    %c0_i32 = arith.constant 0 : i32
    %c0_i32_0 = arith.constant 0 : i32
    %c0_i32_1 = arith.constant 0 : i32
    return %c0_i32, %c0_i32_0 : i32, i32
  }
  func.func @transform_10(%arg0: i32, %arg1: i32) -> (i32, i32) {
    %c0_i32 = arith.constant 0 : i32
    %c0_i32_0 = arith.constant 0 : i32
    %c0_i32_1 = arith.constant 0 : i32
    return %c0_i32, %c0_i32_0 : i32, i32
  }
  func.func @transform_11(%arg0: i32, %arg1: i32) -> (i32, i32) {
    %c0_i32 = arith.constant 0 : i32
    %c0_i32_0 = arith.constant 0 : i32
    %c0_i32_1 = arith.constant 0 : i32
    return %c0_i32, %c0_i32_0 : i32, i32
  }
  func.func @transform_12(%arg0: i32, %arg1: i32) -> (i32, i32) {
    %c0_i32 = arith.constant 0 : i32
    %c0_i32_0 = arith.constant 0 : i32
    %c0_i32_1 = arith.constant 0 : i32
    return %c0_i32, %c0_i32_0 : i32, i32
  }
  func.func @transform_13(%arg0: i32, %arg1: i32) -> (i32, i32) {
    %c0_i32 = arith.constant 0 : i32
    %c0_i32_0 = arith.constant 0 : i32
    %c0_i32_1 = arith.constant 0 : i32
    return %c0_i32, %c0_i32_0 : i32, i32
  }
  func.func @transform_14(%arg0: i32, %arg1: i32) -> (i32, i32) {
    %c0_i32 = arith.constant 0 : i32
    %c0_i32_0 = arith.constant 0 : i32
    %c0_i32_1 = arith.constant 0 : i32
    return %c0_i32, %c0_i32_0 : i32, i32
  }
  func.func @transform_15(%arg0: i32, %arg1: i32) -> (i32, i32) {
    %c0_i32 = arith.constant 0 : i32
    %c0_i32_0 = arith.constant 0 : i32
    %c0_i32_1 = arith.constant 0 : i32
    return %c0_i32, %c0_i32_0 : i32, i32
  }
  func.func @transform_16(%arg0: i32, %arg1: i32) -> (i32, i32, i32) {
    %c0_i32 = arith.constant 0 : i32
    %c0_i32_0 = arith.constant 0 : i32
    return %arg0, %arg1, %c0_i32 : i32, i32, i32
  }
}

module attributes {stable_mosaic.version = 11 : i64} {
  func.func @_fused_block_kernel(%arg0: i32, %arg1: i32, %arg2: memref<1x8x128xf32, #tpu.memory_space<vmem>>, %arg3: memref<1x8x128xf32, #tpu.memory_space<vmem>>, %arg4: memref<128x128xbf16, #tpu.memory_space<vmem>>, %arg5: memref<1x128xf32, #tpu.memory_space<vmem>>, %arg6: memref<128x256xbf16, #tpu.memory_space<vmem>>, %arg7: memref<1x256xf32, #tpu.memory_space<vmem>>, %arg8: memref<128x128xbf16, #tpu.memory_space<vmem>>, %arg9: memref<1x128xf32, #tpu.memory_space<vmem>>, %arg10: memref<1x128xf32, #tpu.memory_space<vmem>>, %arg11: memref<1x128xf32, #tpu.memory_space<vmem>>, %arg12: memref<128x256xbf16, #tpu.memory_space<vmem>>, %arg13: memref<1x256xf32, #tpu.memory_space<vmem>>, %arg14: memref<256x128xbf16, #tpu.memory_space<vmem>>, %arg15: memref<1x128xf32, #tpu.memory_space<vmem>>, %arg16: memref<1x128xf32, #tpu.memory_space<vmem>>, %arg17: memref<1x128xf32, #tpu.memory_space<vmem>>, %arg18: memref<1x8x128xf32, #tpu.memory_space<vmem>>) attributes {dimension_semantics = [#tpu.dimension_semantics<parallel>, #tpu.dimension_semantics<parallel>], iteration_bounds = array<i64: 2, 1>, scalar_prefetch = 0 : i64, scratch_operands = 0 : i64, tpu.core_type = #tpu.core_type<tc>, window_params = [{transform_indices = @transform_0, window_bounds = array<i64: 1, 8, 128>}, {transform_indices = @transform_1, window_bounds = array<i64: 1, 8, 128>}, {pipeline_mode = #tpu.pipeline_mode<synchronous>, transform_indices = @transform_2, window_bounds = array<i64: 128, 128>}, {pipeline_mode = #tpu.pipeline_mode<synchronous>, transform_indices = @transform_3, window_bounds = array<i64: 1, 128>}, {pipeline_mode = #tpu.pipeline_mode<synchronous>, transform_indices = @transform_4, window_bounds = array<i64: 128, 256>}, {pipeline_mode = #tpu.pipeline_mode<synchronous>, transform_indices = @transform_5, window_bounds = array<i64: 1, 256>}, {pipeline_mode = #tpu.pipeline_mode<synchronous>, transform_indices = @transform_6, window_bounds = array<i64: 128, 128>}, {pipeline_mode = #tpu.pipeline_mode<synchronous>, transform_indices = @transform_7, window_bounds = array<i64: 1, 128>}, {pipeline_mode = #tpu.pipeline_mode<synchronous>, transform_indices = @transform_8, window_bounds = array<i64: 1, 128>}, {pipeline_mode = #tpu.pipeline_mode<synchronous>, transform_indices = @transform_9, window_bounds = array<i64: 1, 128>}, {pipeline_mode = #tpu.pipeline_mode<synchronous>, transform_indices = @transform_10, window_bounds = array<i64: 128, 256>}, {pipeline_mode = #tpu.pipeline_mode<synchronous>, transform_indices = @transform_11, window_bounds = array<i64: 1, 256>}, {pipeline_mode = #tpu.pipeline_mode<synchronous>, transform_indices = @transform_12, window_bounds = array<i64: 256, 128>}, {pipeline_mode = #tpu.pipeline_mode<synchronous>, transform_indices = @transform_13, window_bounds = array<i64: 1, 128>}, {pipeline_mode = #tpu.pipeline_mode<synchronous>, transform_indices = @transform_14, window_bounds = array<i64: 1, 128>}, {pipeline_mode = #tpu.pipeline_mode<synchronous>, transform_indices = @transform_15, window_bounds = array<i64: 1, 128>}, {transform_indices = @transform_16, window_bounds = array<i64: 1, 8, 128>}]} {
    %c0 = arith.constant 0 : index
    %c0_0 = arith.constant 0 : index
    %c0_1 = arith.constant 0 : index
    %0 = vector.load %arg2[%c0, %c0_0, %c0_1] : memref<1x8x128xf32, #tpu.memory_space<vmem>>, vector<1x8x128xf32>
    %1 = vector.shape_cast %0 : vector<1x8x128xf32> to vector<8x128xf32>
    %c0_2 = arith.constant 0 : index
    %c0_3 = arith.constant 0 : index
    %c0_4 = arith.constant 0 : index
    %2 = vector.load %arg3[%c0_2, %c0_3, %c0_4] : memref<1x8x128xf32, #tpu.memory_space<vmem>>, vector<1x8x128xf32>
    %3 = vector.shape_cast %2 : vector<1x8x128xf32> to vector<8x128xf32>
    %4 = arith.truncf %1 : vector<8x128xf32> to vector<8x128xbf16>
    %c0_5 = arith.constant 0 : index
    %c0_6 = arith.constant 0 : index
    %5 = vector.load %arg4[%c0_5, %c0_6] : memref<128x128xbf16, #tpu.memory_space<vmem>>, vector<128x128xbf16>
    %cst = arith.constant dense<0.000000e+00> : vector<8x128xf32>
    %6 = tpu.matmul %4, %5, %cst {dimension_numbers = #tpu.dot_dimension_numbers<[1], [0], [0], [1], [0, 0, 1, 1], [], []>} : vector<8x128xbf16>, vector<128x128xbf16>, vector<8x128xf32> -> vector<8x128xf32>
    %c0_7 = arith.constant 0 : index
    %c0_8 = arith.constant 0 : index
    %7 = vector.load %arg5[%c0_7, %c0_8] : memref<1x128xf32, #tpu.memory_space<vmem>>, vector<1x128xf32>
    %8 = vector.broadcast %7 : vector<1x128xf32> to vector<8x128xf32>
    %9 = arith.addf %6, %8 : vector<8x128xf32>
    %10 = arith.truncf %3 : vector<8x128xf32> to vector<8x128xbf16>
    %c0_9 = arith.constant 0 : index
    %c0_10 = arith.constant 0 : index
    %11 = vector.load %arg6[%c0_9, %c0_10] : memref<128x256xbf16, #tpu.memory_space<vmem>>, vector<128x256xbf16>
    %cst_11 = arith.constant dense<0.000000e+00> : vector<8x256xf32>
    %12 = tpu.matmul %10, %11, %cst_11 {dimension_numbers = #tpu.dot_dimension_numbers<[1], [0], [0], [1], [0, 0, 1, 1], [], []>} : vector<8x128xbf16>, vector<128x256xbf16>, vector<8x256xf32> -> vector<8x256xf32>
    %c0_12 = arith.constant 0 : index
    %c0_13 = arith.constant 0 : index
    %13 = vector.load %arg7[%c0_12, %c0_13] : memref<1x256xf32, #tpu.memory_space<vmem>>, vector<1x256xf32>
    %14 = vector.broadcast %13 : vector<1x256xf32> to vector<8x256xf32>
    %15 = arith.addf %12, %14 : vector<8x256xf32>
    %cst_14 = arith.constant 2.500000e-01 : f32
    %16 = vector.broadcast %cst_14 : f32 to vector<8x128xf32>
    %17 = arith.mulf %9, %16 : vector<8x128xf32>
    %18 = arith.truncf %17 : vector<8x128xf32> to vector<8x128xbf16>
    %19 = vector.extract_strided_slice %15 {offsets = [0, 0], sizes = [8, 128], strides = [1, 1]} : vector<8x256xf32> to vector<8x128xf32>
    %20 = arith.truncf %19 : vector<8x128xf32> to vector<8x128xbf16>
    %21 = vector.extract_strided_slice %15 {offsets = [0, 128], sizes = [8, 128], strides = [1, 1]} : vector<8x256xf32> to vector<8x128xf32>
    %22 = arith.truncf %21 : vector<8x128xf32> to vector<8x128xbf16>
    %23 = vector.extract_strided_slice %18 {offsets = [0, 0], sizes = [8, 16], strides = [1, 1]} : vector<8x128xbf16> to vector<8x16xbf16>
    %24 = vector.extract_strided_slice %20 {offsets = [0, 0], sizes = [8, 16], strides = [1, 1]} : vector<8x128xbf16> to vector<8x16xbf16>
    %25 = vector.extract_strided_slice %22 {offsets = [0, 0], sizes = [8, 16], strides = [1, 1]} : vector<8x128xbf16> to vector<8x16xbf16>
    %cst_15 = arith.constant dense<0.000000e+00> : vector<8x8xf32>
    %26 = tpu.matmul %23, %24, %cst_15 {dimension_numbers = #tpu.dot_dimension_numbers<[1], [1], [0], [0], [0, 0, 1, 0], [], []>} : vector<8x16xbf16>, vector<8x16xbf16>, vector<8x8xf32> -> vector<8x8xf32>
    %cst_16 = arith.constant dense<0xFF800000> : vector<8xf32>
    %27 = vector.multi_reduction <maximumf>, %26, %cst_16 [1] : vector<8x8xf32> to vector<8xf32>
    %28 = vector.shape_cast %27 : vector<8xf32> to vector<8x1xf32>
    %29 = vector.broadcast %28 : vector<8x1xf32> to vector<8x8xf32>
    %30 = arith.subf %26, %29 : vector<8x8xf32>
    %31 = math.exp %30 : vector<8x8xf32>
    %cst_17 = arith.constant dense<0.000000e+00> : vector<8xf32>
    %32 = vector.multi_reduction <add>, %31, %cst_17 [1] : vector<8x8xf32> to vector<8xf32>
    %33 = vector.shape_cast %32 : vector<8xf32> to vector<8x1xf32>
    %34 = tpu.reciprocal %33 {approx = true} : vector<8x1xf32> -> vector<8x1xf32>
    %35 = vector.broadcast %34 : vector<8x1xf32> to vector<8x8xf32>
    %36 = arith.mulf %31, %35 : vector<8x8xf32>
    %37 = arith.truncf %36 : vector<8x8xf32> to vector<8x8xbf16>
    %cst_18 = arith.constant dense<0.000000e+00> : vector<8x16xf32>
    %38 = tpu.matmul %37, %25, %cst_18 {dimension_numbers = #tpu.dot_dimension_numbers<[1], [0], [0], [1], [0, 0, 1, 1], [], []>} : vector<8x8xbf16>, vector<8x16xbf16>, vector<8x16xf32> -> vector<8x16xf32>
    %39 = vector.extract_strided_slice %18 {offsets = [0, 16], sizes = [8, 16], strides = [1, 1]} : vector<8x128xbf16> to vector<8x16xbf16>
    %40 = vector.extract_strided_slice %20 {offsets = [0, 16], sizes = [8, 16], strides = [1, 1]} : vector<8x128xbf16> to vector<8x16xbf16>
    %41 = vector.extract_strided_slice %22 {offsets = [0, 16], sizes = [8, 16], strides = [1, 1]} : vector<8x128xbf16> to vector<8x16xbf16>
    %cst_19 = arith.constant dense<0.000000e+00> : vector<8x8xf32>
    %42 = tpu.matmul %39, %40, %cst_19 {dimension_numbers = #tpu.dot_dimension_numbers<[1], [1], [0], [0], [0, 0, 1, 0], [], []>} : vector<8x16xbf16>, vector<8x16xbf16>, vector<8x8xf32> -> vector<8x8xf32>
    %cst_20 = arith.constant dense<0xFF800000> : vector<8xf32>
    %43 = vector.multi_reduction <maximumf>, %42, %cst_20 [1] : vector<8x8xf32> to vector<8xf32>
    %44 = vector.shape_cast %43 : vector<8xf32> to vector<8x1xf32>
    %45 = vector.broadcast %44 : vector<8x1xf32> to vector<8x8xf32>
    %46 = arith.subf %42, %45 : vector<8x8xf32>
    %47 = math.exp %46 : vector<8x8xf32>
    %cst_21 = arith.constant dense<0.000000e+00> : vector<8xf32>
    %48 = vector.multi_reduction <add>, %47, %cst_21 [1] : vector<8x8xf32> to vector<8xf32>
    %49 = vector.shape_cast %48 : vector<8xf32> to vector<8x1xf32>
    %50 = tpu.reciprocal %49 {approx = true} : vector<8x1xf32> -> vector<8x1xf32>
    %51 = vector.broadcast %50 : vector<8x1xf32> to vector<8x8xf32>
    %52 = arith.mulf %47, %51 : vector<8x8xf32>
    %53 = arith.truncf %52 : vector<8x8xf32> to vector<8x8xbf16>
    %cst_22 = arith.constant dense<0.000000e+00> : vector<8x16xf32>
    %54 = tpu.matmul %53, %41, %cst_22 {dimension_numbers = #tpu.dot_dimension_numbers<[1], [0], [0], [1], [0, 0, 1, 1], [], []>} : vector<8x8xbf16>, vector<8x16xbf16>, vector<8x16xf32> -> vector<8x16xf32>
    %55 = vector.extract_strided_slice %18 {offsets = [0, 32], sizes = [8, 16], strides = [1, 1]} : vector<8x128xbf16> to vector<8x16xbf16>
    %56 = vector.extract_strided_slice %20 {offsets = [0, 32], sizes = [8, 16], strides = [1, 1]} : vector<8x128xbf16> to vector<8x16xbf16>
    %57 = vector.extract_strided_slice %22 {offsets = [0, 32], sizes = [8, 16], strides = [1, 1]} : vector<8x128xbf16> to vector<8x16xbf16>
    %cst_23 = arith.constant dense<0.000000e+00> : vector<8x8xf32>
    %58 = tpu.matmul %55, %56, %cst_23 {dimension_numbers = #tpu.dot_dimension_numbers<[1], [1], [0], [0], [0, 0, 1, 0], [], []>} : vector<8x16xbf16>, vector<8x16xbf16>, vector<8x8xf32> -> vector<8x8xf32>
    %cst_24 = arith.constant dense<0xFF800000> : vector<8xf32>
    %59 = vector.multi_reduction <maximumf>, %58, %cst_24 [1] : vector<8x8xf32> to vector<8xf32>
    %60 = vector.shape_cast %59 : vector<8xf32> to vector<8x1xf32>
    %61 = vector.broadcast %60 : vector<8x1xf32> to vector<8x8xf32>
    %62 = arith.subf %58, %61 : vector<8x8xf32>
    %63 = math.exp %62 : vector<8x8xf32>
    %cst_25 = arith.constant dense<0.000000e+00> : vector<8xf32>
    %64 = vector.multi_reduction <add>, %63, %cst_25 [1] : vector<8x8xf32> to vector<8xf32>
    %65 = vector.shape_cast %64 : vector<8xf32> to vector<8x1xf32>
    %66 = tpu.reciprocal %65 {approx = true} : vector<8x1xf32> -> vector<8x1xf32>
    %67 = vector.broadcast %66 : vector<8x1xf32> to vector<8x8xf32>
    %68 = arith.mulf %63, %67 : vector<8x8xf32>
    %69 = arith.truncf %68 : vector<8x8xf32> to vector<8x8xbf16>
    %cst_26 = arith.constant dense<0.000000e+00> : vector<8x16xf32>
    %70 = tpu.matmul %69, %57, %cst_26 {dimension_numbers = #tpu.dot_dimension_numbers<[1], [0], [0], [1], [0, 0, 1, 1], [], []>} : vector<8x8xbf16>, vector<8x16xbf16>, vector<8x16xf32> -> vector<8x16xf32>
    %71 = vector.extract_strided_slice %18 {offsets = [0, 48], sizes = [8, 16], strides = [1, 1]} : vector<8x128xbf16> to vector<8x16xbf16>
    %72 = vector.extract_strided_slice %20 {offsets = [0, 48], sizes = [8, 16], strides = [1, 1]} : vector<8x128xbf16> to vector<8x16xbf16>
    %73 = vector.extract_strided_slice %22 {offsets = [0, 48], sizes = [8, 16], strides = [1, 1]} : vector<8x128xbf16> to vector<8x16xbf16>
    %cst_27 = arith.constant dense<0.000000e+00> : vector<8x8xf32>
    %74 = tpu.matmul %71, %72, %cst_27 {dimension_numbers = #tpu.dot_dimension_numbers<[1], [1], [0], [0], [0, 0, 1, 0], [], []>} : vector<8x16xbf16>, vector<8x16xbf16>, vector<8x8xf32> -> vector<8x8xf32>
    %cst_28 = arith.constant dense<0xFF800000> : vector<8xf32>
    %75 = vector.multi_reduction <maximumf>, %74, %cst_28 [1] : vector<8x8xf32> to vector<8xf32>
    %76 = vector.shape_cast %75 : vector<8xf32> to vector<8x1xf32>
    %77 = vector.broadcast %76 : vector<8x1xf32> to vector<8x8xf32>
    %78 = arith.subf %74, %77 : vector<8x8xf32>
    %79 = math.exp %78 : vector<8x8xf32>
    %cst_29 = arith.constant dense<0.000000e+00> : vector<8xf32>
    %80 = vector.multi_reduction <add>, %79, %cst_29 [1] : vector<8x8xf32> to vector<8xf32>
    %81 = vector.shape_cast %80 : vector<8xf32> to vector<8x1xf32>
    %82 = tpu.reciprocal %81 {approx = true} : vector<8x1xf32> -> vector<8x1xf32>
    %83 = vector.broadcast %82 : vector<8x1xf32> to vector<8x8xf32>
    %84 = arith.mulf %79, %83 : vector<8x8xf32>
    %85 = arith.truncf %84 : vector<8x8xf32> to vector<8x8xbf16>
    %cst_30 = arith.constant dense<0.000000e+00> : vector<8x16xf32>
    %86 = tpu.matmul %85, %73, %cst_30 {dimension_numbers = #tpu.dot_dimension_numbers<[1], [0], [0], [1], [0, 0, 1, 1], [], []>} : vector<8x8xbf16>, vector<8x16xbf16>, vector<8x16xf32> -> vector<8x16xf32>
    %87 = vector.extract_strided_slice %18 {offsets = [0, 64], sizes = [8, 16], strides = [1, 1]} : vector<8x128xbf16> to vector<8x16xbf16>
    %88 = vector.extract_strided_slice %20 {offsets = [0, 64], sizes = [8, 16], strides = [1, 1]} : vector<8x128xbf16> to vector<8x16xbf16>
    %89 = vector.extract_strided_slice %22 {offsets = [0, 64], sizes = [8, 16], strides = [1, 1]} : vector<8x128xbf16> to vector<8x16xbf16>
    %cst_31 = arith.constant dense<0.000000e+00> : vector<8x8xf32>
    %90 = tpu.matmul %87, %88, %cst_31 {dimension_numbers = #tpu.dot_dimension_numbers<[1], [1], [0], [0], [0, 0, 1, 0], [], []>} : vector<8x16xbf16>, vector<8x16xbf16>, vector<8x8xf32> -> vector<8x8xf32>
    %cst_32 = arith.constant dense<0xFF800000> : vector<8xf32>
    %91 = vector.multi_reduction <maximumf>, %90, %cst_32 [1] : vector<8x8xf32> to vector<8xf32>
    %92 = vector.shape_cast %91 : vector<8xf32> to vector<8x1xf32>
    %93 = vector.broadcast %92 : vector<8x1xf32> to vector<8x8xf32>
    %94 = arith.subf %90, %93 : vector<8x8xf32>
    %95 = math.exp %94 : vector<8x8xf32>
    %cst_33 = arith.constant dense<0.000000e+00> : vector<8xf32>
    %96 = vector.multi_reduction <add>, %95, %cst_33 [1] : vector<8x8xf32> to vector<8xf32>
    %97 = vector.shape_cast %96 : vector<8xf32> to vector<8x1xf32>
    %98 = tpu.reciprocal %97 {approx = true} : vector<8x1xf32> -> vector<8x1xf32>
    %99 = vector.broadcast %98 : vector<8x1xf32> to vector<8x8xf32>
    %100 = arith.mulf %95, %99 : vector<8x8xf32>
    %101 = arith.truncf %100 : vector<8x8xf32> to vector<8x8xbf16>
    %cst_34 = arith.constant dense<0.000000e+00> : vector<8x16xf32>
    %102 = tpu.matmul %101, %89, %cst_34 {dimension_numbers = #tpu.dot_dimension_numbers<[1], [0], [0], [1], [0, 0, 1, 1], [], []>} : vector<8x8xbf16>, vector<8x16xbf16>, vector<8x16xf32> -> vector<8x16xf32>
    %103 = vector.extract_strided_slice %18 {offsets = [0, 80], sizes = [8, 16], strides = [1, 1]} : vector<8x128xbf16> to vector<8x16xbf16>
    %104 = vector.extract_strided_slice %20 {offsets = [0, 80], sizes = [8, 16], strides = [1, 1]} : vector<8x128xbf16> to vector<8x16xbf16>
    %105 = vector.extract_strided_slice %22 {offsets = [0, 80], sizes = [8, 16], strides = [1, 1]} : vector<8x128xbf16> to vector<8x16xbf16>
    %cst_35 = arith.constant dense<0.000000e+00> : vector<8x8xf32>
    %106 = tpu.matmul %103, %104, %cst_35 {dimension_numbers = #tpu.dot_dimension_numbers<[1], [1], [0], [0], [0, 0, 1, 0], [], []>} : vector<8x16xbf16>, vector<8x16xbf16>, vector<8x8xf32> -> vector<8x8xf32>
    %cst_36 = arith.constant dense<0xFF800000> : vector<8xf32>
    %107 = vector.multi_reduction <maximumf>, %106, %cst_36 [1] : vector<8x8xf32> to vector<8xf32>
    %108 = vector.shape_cast %107 : vector<8xf32> to vector<8x1xf32>
    %109 = vector.broadcast %108 : vector<8x1xf32> to vector<8x8xf32>
    %110 = arith.subf %106, %109 : vector<8x8xf32>
    %111 = math.exp %110 : vector<8x8xf32>
    %cst_37 = arith.constant dense<0.000000e+00> : vector<8xf32>
    %112 = vector.multi_reduction <add>, %111, %cst_37 [1] : vector<8x8xf32> to vector<8xf32>
    %113 = vector.shape_cast %112 : vector<8xf32> to vector<8x1xf32>
    %114 = tpu.reciprocal %113 {approx = true} : vector<8x1xf32> -> vector<8x1xf32>
    %115 = vector.broadcast %114 : vector<8x1xf32> to vector<8x8xf32>
    %116 = arith.mulf %111, %115 : vector<8x8xf32>
    %117 = arith.truncf %116 : vector<8x8xf32> to vector<8x8xbf16>
    %cst_38 = arith.constant dense<0.000000e+00> : vector<8x16xf32>
    %118 = tpu.matmul %117, %105, %cst_38 {dimension_numbers = #tpu.dot_dimension_numbers<[1], [0], [0], [1], [0, 0, 1, 1], [], []>} : vector<8x8xbf16>, vector<8x16xbf16>, vector<8x16xf32> -> vector<8x16xf32>
    %119 = vector.extract_strided_slice %18 {offsets = [0, 96], sizes = [8, 16], strides = [1, 1]} : vector<8x128xbf16> to vector<8x16xbf16>
    %120 = vector.extract_strided_slice %20 {offsets = [0, 96], sizes = [8, 16], strides = [1, 1]} : vector<8x128xbf16> to vector<8x16xbf16>
    %121 = vector.extract_strided_slice %22 {offsets = [0, 96], sizes = [8, 16], strides = [1, 1]} : vector<8x128xbf16> to vector<8x16xbf16>
    %cst_39 = arith.constant dense<0.000000e+00> : vector<8x8xf32>
    %122 = tpu.matmul %119, %120, %cst_39 {dimension_numbers = #tpu.dot_dimension_numbers<[1], [1], [0], [0], [0, 0, 1, 0], [], []>} : vector<8x16xbf16>, vector<8x16xbf16>, vector<8x8xf32> -> vector<8x8xf32>
    %cst_40 = arith.constant dense<0xFF800000> : vector<8xf32>
    %123 = vector.multi_reduction <maximumf>, %122, %cst_40 [1] : vector<8x8xf32> to vector<8xf32>
    %124 = vector.shape_cast %123 : vector<8xf32> to vector<8x1xf32>
    %125 = vector.broadcast %124 : vector<8x1xf32> to vector<8x8xf32>
    %126 = arith.subf %122, %125 : vector<8x8xf32>
    %127 = math.exp %126 : vector<8x8xf32>
    %cst_41 = arith.constant dense<0.000000e+00> : vector<8xf32>
    %128 = vector.multi_reduction <add>, %127, %cst_41 [1] : vector<8x8xf32> to vector<8xf32>
    %129 = vector.shape_cast %128 : vector<8xf32> to vector<8x1xf32>
    %130 = tpu.reciprocal %129 {approx = true} : vector<8x1xf32> -> vector<8x1xf32>
    %131 = vector.broadcast %130 : vector<8x1xf32> to vector<8x8xf32>
    %132 = arith.mulf %127, %131 : vector<8x8xf32>
    %133 = arith.truncf %132 : vector<8x8xf32> to vector<8x8xbf16>
    %cst_42 = arith.constant dense<0.000000e+00> : vector<8x16xf32>
    %134 = tpu.matmul %133, %121, %cst_42 {dimension_numbers = #tpu.dot_dimension_numbers<[1], [0], [0], [1], [0, 0, 1, 1], [], []>} : vector<8x8xbf16>, vector<8x16xbf16>, vector<8x16xf32> -> vector<8x16xf32>
    %135 = vector.extract_strided_slice %18 {offsets = [0, 112], sizes = [8, 16], strides = [1, 1]} : vector<8x128xbf16> to vector<8x16xbf16>
    %136 = vector.extract_strided_slice %20 {offsets = [0, 112], sizes = [8, 16], strides = [1, 1]} : vector<8x128xbf16> to vector<8x16xbf16>
    %137 = vector.extract_strided_slice %22 {offsets = [0, 112], sizes = [8, 16], strides = [1, 1]} : vector<8x128xbf16> to vector<8x16xbf16>
    %cst_43 = arith.constant dense<0.000000e+00> : vector<8x8xf32>
    %138 = tpu.matmul %135, %136, %cst_43 {dimension_numbers = #tpu.dot_dimension_numbers<[1], [1], [0], [0], [0, 0, 1, 0], [], []>} : vector<8x16xbf16>, vector<8x16xbf16>, vector<8x8xf32> -> vector<8x8xf32>
    %cst_44 = arith.constant dense<0xFF800000> : vector<8xf32>
    %139 = vector.multi_reduction <maximumf>, %138, %cst_44 [1] : vector<8x8xf32> to vector<8xf32>
    %140 = vector.shape_cast %139 : vector<8xf32> to vector<8x1xf32>
    %141 = vector.broadcast %140 : vector<8x1xf32> to vector<8x8xf32>
    %142 = arith.subf %138, %141 : vector<8x8xf32>
    %143 = math.exp %142 : vector<8x8xf32>
    %cst_45 = arith.constant dense<0.000000e+00> : vector<8xf32>
    %144 = vector.multi_reduction <add>, %143, %cst_45 [1] : vector<8x8xf32> to vector<8xf32>
    %145 = vector.shape_cast %144 : vector<8xf32> to vector<8x1xf32>
    %146 = tpu.reciprocal %145 {approx = true} : vector<8x1xf32> -> vector<8x1xf32>
    %147 = vector.broadcast %146 : vector<8x1xf32> to vector<8x8xf32>
    %148 = arith.mulf %143, %147 : vector<8x8xf32>
    %149 = arith.truncf %148 : vector<8x8xf32> to vector<8x8xbf16>
    %cst_46 = arith.constant dense<0.000000e+00> : vector<8x16xf32>
    %150 = tpu.matmul %149, %137, %cst_46 {dimension_numbers = #tpu.dot_dimension_numbers<[1], [0], [0], [1], [0, 0, 1, 1], [], []>} : vector<8x8xbf16>, vector<8x16xbf16>, vector<8x16xf32> -> vector<8x16xf32>
    %151 = tpu.concatenate %38, %54, %70, %86, %102, %118, %134, %150 in 1 : vector<8x16xf32>, vector<8x16xf32>, vector<8x16xf32>, vector<8x16xf32>, vector<8x16xf32>, vector<8x16xf32>, vector<8x16xf32>, vector<8x16xf32> -> vector<8x128xf32>
    %152 = arith.truncf %151 : vector<8x128xf32> to vector<8x128xbf16>
    %c0_47 = arith.constant 0 : index
    %c0_48 = arith.constant 0 : index
    %153 = vector.load %arg8[%c0_47, %c0_48] : memref<128x128xbf16, #tpu.memory_space<vmem>>, vector<128x128xbf16>
    %cst_49 = arith.constant dense<0.000000e+00> : vector<8x128xf32>
    %154 = tpu.matmul %152, %153, %cst_49 {dimension_numbers = #tpu.dot_dimension_numbers<[1], [0], [0], [1], [0, 0, 1, 1], [], []>} : vector<8x128xbf16>, vector<128x128xbf16>, vector<8x128xf32> -> vector<8x128xf32>
    %c0_50 = arith.constant 0 : index
    %c0_51 = arith.constant 0 : index
    %155 = vector.load %arg9[%c0_50, %c0_51] : memref<1x128xf32, #tpu.memory_space<vmem>>, vector<1x128xf32>
    %156 = vector.broadcast %155 : vector<1x128xf32> to vector<8x128xf32>
    %157 = arith.addf %154, %156 : vector<8x128xf32>
    %158 = arith.addf %1, %157 : vector<8x128xf32>
    %c0_52 = arith.constant 0 : index
    %c0_53 = arith.constant 0 : index
    %159 = vector.load %arg10[%c0_52, %c0_53] : memref<1x128xf32, #tpu.memory_space<vmem>>, vector<1x128xf32>
    %c0_54 = arith.constant 0 : index
    %c0_55 = arith.constant 0 : index
    %160 = vector.load %arg11[%c0_54, %c0_55] : memref<1x128xf32, #tpu.memory_space<vmem>>, vector<1x128xf32>
    %cst_56 = arith.constant dense<0.000000e+00> : vector<8xf32>
    %161 = vector.multi_reduction <add>, %158, %cst_56 [1] : vector<8x128xf32> to vector<8xf32>
    %162 = vector.shape_cast %161 : vector<8xf32> to vector<8x1xf32>
    %cst_57 = arith.constant 1.280000e+02 : f32
    %163 = vector.broadcast %cst_57 : f32 to vector<8x1xf32>
    %164 = arith.divf %162, %163 : vector<8x1xf32>
    %165 = arith.mulf %158, %158 : vector<8x128xf32>
    %cst_58 = arith.constant dense<0.000000e+00> : vector<8xf32>
    %166 = vector.multi_reduction <add>, %165, %cst_58 [1] : vector<8x128xf32> to vector<8xf32>
    %167 = vector.shape_cast %166 : vector<8xf32> to vector<8x1xf32>
    %cst_59 = arith.constant 1.280000e+02 : f32
    %168 = vector.broadcast %cst_59 : f32 to vector<8x1xf32>
    %169 = arith.divf %167, %168 : vector<8x1xf32>
    %170 = arith.mulf %164, %164 : vector<8x1xf32>
    %171 = arith.subf %169, %170 : vector<8x1xf32>
    %cst_60 = arith.constant 0.000000e+00 : f32
    %172 = vector.broadcast %cst_60 : f32 to vector<8x1xf32>
    %173 = arith.maximumf %171, %172 : vector<8x1xf32>
    %174 = vector.broadcast %164 : vector<8x1xf32> to vector<8x128xf32>
    %175 = arith.subf %158, %174 : vector<8x128xf32>
    %cst_61 = arith.constant 9.99999997E-7 : f32
    %176 = vector.broadcast %cst_61 : f32 to vector<8x1xf32>
    %177 = arith.addf %173, %176 : vector<8x1xf32>
    %178 = math.rsqrt %177 : vector<8x1xf32>
    %179 = vector.broadcast %178 : vector<8x1xf32> to vector<8x128xf32>
    %180 = arith.mulf %175, %179 : vector<8x128xf32>
    %181 = vector.broadcast %159 : vector<1x128xf32> to vector<8x128xf32>
    %182 = arith.mulf %180, %181 : vector<8x128xf32>
    %183 = vector.broadcast %160 : vector<1x128xf32> to vector<8x128xf32>
    %184 = arith.addf %182, %183 : vector<8x128xf32>
    %185 = arith.truncf %184 : vector<8x128xf32> to vector<8x128xbf16>
    %c0_62 = arith.constant 0 : index
    %c0_63 = arith.constant 0 : index
    %186 = vector.load %arg12[%c0_62, %c0_63] : memref<128x256xbf16, #tpu.memory_space<vmem>>, vector<128x256xbf16>
    %cst_64 = arith.constant dense<0.000000e+00> : vector<8x256xf32>
    %187 = tpu.matmul %185, %186, %cst_64 {dimension_numbers = #tpu.dot_dimension_numbers<[1], [0], [0], [1], [0, 0, 1, 1], [], []>} : vector<8x128xbf16>, vector<128x256xbf16>, vector<8x256xf32> -> vector<8x256xf32>
    %c0_65 = arith.constant 0 : index
    %c0_66 = arith.constant 0 : index
    %188 = vector.load %arg13[%c0_65, %c0_66] : memref<1x256xf32, #tpu.memory_space<vmem>>, vector<1x256xf32>
    %189 = vector.broadcast %188 : vector<1x256xf32> to vector<8x256xf32>
    %190 = arith.addf %187, %189 : vector<8x256xf32>
    %cst_67 = arith.constant 0.000000e+00 : f32
    %191 = vector.broadcast %cst_67 : f32 to vector<8x256xf32>
    %192 = arith.maximumf %190, %191 : vector<8x256xf32>
    %193 = arith.truncf %192 : vector<8x256xf32> to vector<8x256xbf16>
    %c0_68 = arith.constant 0 : index
    %c0_69 = arith.constant 0 : index
    %194 = vector.load %arg14[%c0_68, %c0_69] : memref<256x128xbf16, #tpu.memory_space<vmem>>, vector<256x128xbf16>
    %cst_70 = arith.constant dense<0.000000e+00> : vector<8x128xf32>
    %195 = tpu.matmul %193, %194, %cst_70 {dimension_numbers = #tpu.dot_dimension_numbers<[1], [0], [0], [1], [0, 0, 1, 1], [], []>} : vector<8x256xbf16>, vector<256x128xbf16>, vector<8x128xf32> -> vector<8x128xf32>
    %c0_71 = arith.constant 0 : index
    %c0_72 = arith.constant 0 : index
    %196 = vector.load %arg15[%c0_71, %c0_72] : memref<1x128xf32, #tpu.memory_space<vmem>>, vector<1x128xf32>
    %197 = vector.broadcast %196 : vector<1x128xf32> to vector<8x128xf32>
    %198 = arith.addf %195, %197 : vector<8x128xf32>
    %199 = arith.addf %184, %198 : vector<8x128xf32>
    %c0_73 = arith.constant 0 : index
    %c0_74 = arith.constant 0 : index
    %200 = vector.load %arg16[%c0_73, %c0_74] : memref<1x128xf32, #tpu.memory_space<vmem>>, vector<1x128xf32>
    %c0_75 = arith.constant 0 : index
    %c0_76 = arith.constant 0 : index
    %201 = vector.load %arg17[%c0_75, %c0_76] : memref<1x128xf32, #tpu.memory_space<vmem>>, vector<1x128xf32>
    %cst_77 = arith.constant dense<0.000000e+00> : vector<8xf32>
    %202 = vector.multi_reduction <add>, %199, %cst_77 [1] : vector<8x128xf32> to vector<8xf32>
    %203 = vector.shape_cast %202 : vector<8xf32> to vector<8x1xf32>
    %cst_78 = arith.constant 1.280000e+02 : f32
    %204 = vector.broadcast %cst_78 : f32 to vector<8x1xf32>
    %205 = arith.divf %203, %204 : vector<8x1xf32>
    %206 = arith.mulf %199, %199 : vector<8x128xf32>
    %cst_79 = arith.constant dense<0.000000e+00> : vector<8xf32>
    %207 = vector.multi_reduction <add>, %206, %cst_79 [1] : vector<8x128xf32> to vector<8xf32>
    %208 = vector.shape_cast %207 : vector<8xf32> to vector<8x1xf32>
    %cst_80 = arith.constant 1.280000e+02 : f32
    %209 = vector.broadcast %cst_80 : f32 to vector<8x1xf32>
    %210 = arith.divf %208, %209 : vector<8x1xf32>
    %211 = arith.mulf %205, %205 : vector<8x1xf32>
    %212 = arith.subf %210, %211 : vector<8x1xf32>
    %cst_81 = arith.constant 0.000000e+00 : f32
    %213 = vector.broadcast %cst_81 : f32 to vector<8x1xf32>
    %214 = arith.maximumf %212, %213 : vector<8x1xf32>
    %215 = vector.broadcast %205 : vector<8x1xf32> to vector<8x128xf32>
    %216 = arith.subf %199, %215 : vector<8x128xf32>
    %cst_82 = arith.constant 9.99999997E-7 : f32
    %217 = vector.broadcast %cst_82 : f32 to vector<8x1xf32>
    %218 = arith.addf %214, %217 : vector<8x1xf32>
    %219 = math.rsqrt %218 : vector<8x1xf32>
    %220 = vector.broadcast %219 : vector<8x1xf32> to vector<8x128xf32>
    %221 = arith.mulf %216, %220 : vector<8x128xf32>
    %222 = vector.broadcast %200 : vector<1x128xf32> to vector<8x128xf32>
    %223 = arith.mulf %221, %222 : vector<8x128xf32>
    %224 = vector.broadcast %201 : vector<1x128xf32> to vector<8x128xf32>
    %225 = arith.addf %223, %224 : vector<8x128xf32>
    %c0_83 = arith.constant 0 : index
    %c0_84 = arith.constant 0 : index
    %c0_85 = arith.constant 0 : index
    %226 = vector.load %arg18[%c0_83, %c0_84, %c0_85] : memref<1x8x128xf32, #tpu.memory_space<vmem>>, vector<1x8x128xf32>
    %227 = vector.shape_cast %226 : vector<1x8x128xf32> to vector<8x128xf32>
    %228 = vector.shape_cast %225 : vector<8x128xf32> to vector<1x8x128xf32>
    tpu.vector_store %arg18[%c0_83, %c0_84, %c0_85], %228 {strides = array<i32>} : memref<1x8x128xf32, #tpu.memory_space<vmem>>, vector<1x8x128xf32>,
    return
  }
  func.func @transform_0(%arg0: i32, %arg1: i32) -> (i32, i32, i32) {
    %c0_i32 = arith.constant 0 : i32
    %c0_i32_0 = arith.constant 0 : i32
    return %arg0, %arg1, %c0_i32 : i32, i32, i32
  }
  func.func @transform_1(%arg0: i32, %arg1: i32) -> (i32, i32, i32) {
    %c0_i32 = arith.constant 0 : i32
    %c0_i32_0 = arith.constant 0 : i32
    %c0_i32_1 = arith.constant 0 : i32
    return %arg0, %c0_i32, %c0_i32_0 : i32, i32, i32
  }
  func.func @transform_2(%arg0: i32, %arg1: i32) -> (i32, i32) {
    %c0_i32 = arith.constant 0 : i32
    %c0_i32_0 = arith.constant 0 : i32
    %c0_i32_1 = arith.constant 0 : i32
    return %c0_i32, %c0_i32_0 : i32, i32
  }
  func.func @transform_3(%arg0: i32, %arg1: i32) -> (i32, i32) {
    %c0_i32 = arith.constant 0 : i32
    %c0_i32_0 = arith.constant 0 : i32
    %c0_i32_1 = arith.constant 0 : i32
    return %c0_i32, %c0_i32_0 : i32, i32
  }
  func.func @transform_4(%arg0: i32, %arg1: i32) -> (i32, i32) {
    %c0_i32 = arith.constant 0 : i32
    %c0_i32_0 = arith.constant 0 : i32
    %c0_i32_1 = arith.constant 0 : i32
    return %c0_i32, %c0_i32_0 : i32, i32
  }
  func.func @transform_5(%arg0: i32, %arg1: i32) -> (i32, i32) {
    %c0_i32 = arith.constant 0 : i32
    %c0_i32_0 = arith.constant 0 : i32
    %c0_i32_1 = arith.constant 0 : i32
    return %c0_i32, %c0_i32_0 : i32, i32
  }
  func.func @transform_6(%arg0: i32, %arg1: i32) -> (i32, i32) {
    %c0_i32 = arith.constant 0 : i32
    %c0_i32_0 = arith.constant 0 : i32
    %c0_i32_1 = arith.constant 0 : i32
    return %c0_i32, %c0_i32_0 : i32, i32
  }
  func.func @transform_7(%arg0: i32, %arg1: i32) -> (i32, i32) {
    %c0_i32 = arith.constant 0 : i32
    %c0_i32_0 = arith.constant 0 : i32
    %c0_i32_1 = arith.constant 0 : i32
    return %c0_i32, %c0_i32_0 : i32, i32
  }
  func.func @transform_8(%arg0: i32, %arg1: i32) -> (i32, i32) {
    %c0_i32 = arith.constant 0 : i32
    %c0_i32_0 = arith.constant 0 : i32
    %c0_i32_1 = arith.constant 0 : i32
    return %c0_i32, %c0_i32_0 : i32, i32
  }
  func.func @transform_9(%arg0: i32, %arg1: i32) -> (i32, i32) {
    %c0_i32 = arith.constant 0 : i32
    %c0_i32_0 = arith.constant 0 : i32
    %c0_i32_1 = arith.constant 0 : i32
    return %c0_i32, %c0_i32_0 : i32, i32
  }
  func.func @transform_10(%arg0: i32, %arg1: i32) -> (i32, i32) {
    %c0_i32 = arith.constant 0 : i32
    %c0_i32_0 = arith.constant 0 : i32
    %c0_i32_1 = arith.constant 0 : i32
    return %c0_i32, %c0_i32_0 : i32, i32
  }
  func.func @transform_11(%arg0: i32, %arg1: i32) -> (i32, i32) {
    %c0_i32 = arith.constant 0 : i32
    %c0_i32_0 = arith.constant 0 : i32
    %c0_i32_1 = arith.constant 0 : i32
    return %c0_i32, %c0_i32_0 : i32, i32
  }
  func.func @transform_12(%arg0: i32, %arg1: i32) -> (i32, i32) {
    %c0_i32 = arith.constant 0 : i32
    %c0_i32_0 = arith.constant 0 : i32
    %c0_i32_1 = arith.constant 0 : i32
    return %c0_i32, %c0_i32_0 : i32, i32
  }
  func.func @transform_13(%arg0: i32, %arg1: i32) -> (i32, i32) {
    %c0_i32 = arith.constant 0 : i32
    %c0_i32_0 = arith.constant 0 : i32
    %c0_i32_1 = arith.constant 0 : i32
    return %c0_i32, %c0_i32_0 : i32, i32
  }
  func.func @transform_14(%arg0: i32, %arg1: i32) -> (i32, i32) {
    %c0_i32 = arith.constant 0 : i32
    %c0_i32_0 = arith.constant 0 : i32
    %c0_i32_1 = arith.constant 0 : i32
    return %c0_i32, %c0_i32_0 : i32, i32
  }
  func.func @transform_15(%arg0: i32, %arg1: i32) -> (i32, i32) {
    %c0_i32 = arith.constant 0 : i32
    %c0_i32_0 = arith.constant 0 : i32
    %c0_i32_1 = arith.constant 0 : i32
    return %c0_i32, %c0_i32_0 : i32, i32
  }
  func.func @transform_16(%arg0: i32, %arg1: i32) -> (i32, i32, i32) {
    %c0_i32 = arith.constant 0 : i32
    %c0_i32_0 = arith.constant 0 : i32
    return %arg0, %arg1, %c0_i32 : i32, i32, i32
  }
}

module attributes {stable_mosaic.version = 11 : i64} {
  func.func @_matmul_bias_kernel(%arg0: i32, %arg1: i32, %arg2: i32, %arg3: memref<16x128xbf16, #tpu.memory_space<vmem>>, %arg4: memref<128x128xbf16, #tpu.memory_space<vmem>>, %arg5: memref<1x128xf32, #tpu.memory_space<vmem>>, %arg6: memref<16x128xf32, #tpu.memory_space<vmem>>) attributes {dimension_semantics = [#tpu.dimension_semantics<parallel>, #tpu.dimension_semantics<parallel>, #tpu.dimension_semantics<arbitrary>], iteration_bounds = array<i64: 1, 1, 1>, scalar_prefetch = 0 : i64, scratch_operands = 0 : i64, tpu.core_type = #tpu.core_type<tc>, window_params = [{transform_indices = @transform_0, window_bounds = array<i64: 16, 128>}, {transform_indices = @transform_1, window_bounds = array<i64: 128, 128>}, {transform_indices = @transform_2, window_bounds = array<i64: 1, 128>}, {transform_indices = @transform_3, window_bounds = array<i64: 16, 128>}]} {
    %c0_i32 = arith.constant 0 : i32
    %0 = arith.cmpi eq, %arg2, %c0_i32 : i32
    %1 = arith.extui %0 : i1 to i32
    %c0_i32_0 = arith.constant 0 : i32
    %2 = arith.cmpi ne, %1, %c0_i32_0 : i32
    scf.if %2 {
      %cst_10 = arith.constant 0.000000e+00 : f32
      %12 = vector.broadcast %cst_10 : f32 to vector<16x128xf32>
      %c0_11 = arith.constant 0 : index
      %c0_12 = arith.constant 0 : index
      %13 = vector.load %arg6[%c0_11, %c0_12] : memref<16x128xf32, #tpu.memory_space<vmem>>, vector<16x128xf32>
      tpu.vector_store %arg6[%c0_11, %c0_12], %12 {strides = array<i32>} : memref<16x128xf32, #tpu.memory_space<vmem>>, vector<16x128xf32>,
    } else {
    }
    %c0 = arith.constant 0 : index
    %c0_1 = arith.constant 0 : index
    %3 = vector.load %arg6[%c0, %c0_1] : memref<16x128xf32, #tpu.memory_space<vmem>>, vector<16x128xf32>
    %c0_2 = arith.constant 0 : index
    %c0_3 = arith.constant 0 : index
    %4 = vector.load %arg3[%c0_2, %c0_3] : memref<16x128xbf16, #tpu.memory_space<vmem>>, vector<16x128xbf16>
    %c0_4 = arith.constant 0 : index
    %c0_5 = arith.constant 0 : index
    %5 = vector.load %arg4[%c0_4, %c0_5] : memref<128x128xbf16, #tpu.memory_space<vmem>>, vector<128x128xbf16>
    %cst = arith.constant dense<0.000000e+00> : vector<16x128xf32>
    %6 = tpu.matmul %4, %5, %cst {dimension_numbers = #tpu.dot_dimension_numbers<[1], [0], [0], [1], [0, 0, 1, 1], [], []>} : vector<16x128xbf16>, vector<128x128xbf16>, vector<16x128xf32> -> vector<16x128xf32>
    %7 = arith.addf %3, %6 : vector<16x128xf32>
    %c0_6 = arith.constant 0 : index
    %c0_7 = arith.constant 0 : index
    %8 = vector.load %arg6[%c0_6, %c0_7] : memref<16x128xf32, #tpu.memory_space<vmem>>, vector<16x128xf32>
    tpu.vector_store %arg6[%c0_6, %c0_7], %7 {strides = array<i32>} : memref<16x128xf32, #tpu.memory_space<vmem>>, vector<16x128xf32>,
    %c0_i32_8 = arith.constant 0 : i32
    %9 = arith.cmpi eq, %arg2, %c0_i32_8 : i32
    %10 = arith.extui %9 : i1 to i32
    %c0_i32_9 = arith.constant 0 : i32
    %11 = arith.cmpi ne, %10, %c0_i32_9 : i32
    scf.if %11 {
      %c0_10 = arith.constant 0 : index
      %c0_11 = arith.constant 0 : index
      %12 = vector.load %arg6[%c0_10, %c0_11] : memref<16x128xf32, #tpu.memory_space<vmem>>, vector<16x128xf32>
      %c0_12 = arith.constant 0 : index
      %c0_13 = arith.constant 0 : index
      %13 = vector.load %arg5[%c0_12, %c0_13] : memref<1x128xf32, #tpu.memory_space<vmem>>, vector<1x128xf32>
      %14 = vector.broadcast %13 : vector<1x128xf32> to vector<16x128xf32>
      %15 = arith.addf %12, %14 : vector<16x128xf32>
      %c0_14 = arith.constant 0 : index
      %c0_15 = arith.constant 0 : index
      %16 = vector.load %arg6[%c0_14, %c0_15] : memref<16x128xf32, #tpu.memory_space<vmem>>, vector<16x128xf32>
      tpu.vector_store %arg6[%c0_14, %c0_15], %15 {strides = array<i32>} : memref<16x128xf32, #tpu.memory_space<vmem>>, vector<16x128xf32>,
    } else {
    }
    return
  }
  func.func @transform_0(%arg0: i32, %arg1: i32, %arg2: i32) -> (i32, i32) {
    %c0_i32 = arith.constant 0 : i32
    return %arg0, %arg2 : i32, i32
  }
  func.func @transform_1(%arg0: i32, %arg1: i32, %arg2: i32) -> (i32, i32) {
    %c0_i32 = arith.constant 0 : i32
    return %arg2, %arg1 : i32, i32
  }
  func.func @transform_2(%arg0: i32, %arg1: i32, %arg2: i32) -> (i32, i32) {
    %c0_i32 = arith.constant 0 : i32
    %c0_i32_0 = arith.constant 0 : i32
    return %c0_i32, %arg1 : i32, i32
  }
  func.func @transform_3(%arg0: i32, %arg1: i32, %arg2: i32) -> (i32, i32) {
    %c0_i32 = arith.constant 0 : i32
    return %arg0, %arg1 : i32, i32
  }
}

</mosaic_0001>

<bundles_post_ra>
// kernel: transformer_forward.13
= control target key start
LH: loop header
LB: loop body
LE: loop exit
PB: predicated region body
PF: predicated region fallthrough
CT: control target
= control target key end

     0   :  { %v210_v0 = vmov 0.0   ;;  %vm211_vm0 = vmmov 0   ;;  %s268_s1 = inlined_call_operand.vmem [shape: bf16[128,128], index: 1, kind: input, shape index: {}]   ;;  %s269_s0 = inlined_call_operand.vmem [shape: bf16[16,128], index: 0, kind: input, shape index: {}]   ;;  %s270_s2 = inlined_call_operand.vmem [shape: f32[1,128], index: 2, kind: input, shape index: {}]   ;;  %s271_s3 = inlined_call_operand.vmem [shape: f32[16,128], index: 3, kind: output, shape index: {}]  }
   0x1   :  { %179 = vmatprep.subr.bf16.mxu0 %v210_v0  ;;  %v201_v1 = vld [vmem:[%s268_s1] sm:$0xff]   ;;  %195 = vmatprep.mubr.msk.bf16.mxu0 %vm211_vm0, %v210_v0  ;;  %v202_v2 = vld [vmem:[%s268_s1 + $0x8] sm:$0xff]   ;;  %v203_v3 = vld [vmem:[%s268_s1 + $0x10] sm:$0xff]  }
   0x2   :  { %180 = vmatpush3.bf16.msra.mxu0 %v201_v1  ;;  %v204_v4 = vld [vmem:[%s268_s1 + $0x18] sm:$0xff]   ;;  %v205_v5 = vld [vmem:[%s268_s1 + $0x20] sm:$0xff]   ;;  %v206_v6 = vld [vmem:[%s268_s1 + $0x28] sm:$0xff]  }
   0x3   :  { %181 = vmatprep.subr.bf16.mxu0 %v210_v0  ;;  %v207_v7 = vld [vmem:[%s268_s1 + $0x30] sm:$0xff]   ;;  %v208_v8 = vld [vmem:[%s268_s1 + $0x38] sm:$0xff]   ;;  %v209_v9 = vld [vmem:[%s269_s0] sm:$0xff]  }
   0x4   :  { %v169_v11 = vld [vmem:[%s270_s2] ss:$0 sm:$0xff] }
   0x6   :  { %182 = vmatpush3.bf16.msra.mxu0 %v202_v2 }
   0x7   :  { %183 = vmatprep.subr.bf16.mxu0 %v210_v0 }
   0xa   :  { %184 = vmatpush3.bf16.msra.mxu0 %v203_v3 }
   0xb   :  { %185 = vmatprep.subr.bf16.mxu0 %v210_v0 }
   0xe   :  { %186 = vmatpush3.bf16.msra.mxu0 %v204_v4 }
   0xf   :  { %187 = vmatprep.subr.bf16.mxu0 %v210_v0 }
  0x12   :  { %188 = vmatpush3.bf16.msra.mxu0 %v205_v5 }
  0x13   :  { %189 = vmatprep.subr.bf16.mxu0 %v210_v0 }
  0x16   :  { %190 = vmatpush3.bf16.msra.mxu0 %v206_v6 }
  0x17   :  { %191 = vmatprep.subr.bf16.mxu0 %v210_v0 }
  0x1a   :  { %192 = vmatpush3.bf16.msra.mxu0 %v207_v7 }
  0x1b   :  { %193 = vmatprep.subr.bf16.mxu0 %v210_v0 }
  0x1e   :  { %194 = vmatpush3.bf16.msra.mxu0 %v208_v8 }
  0x21   :  { %196 = vmatmul.mubr.bf16.vlgmr.msra.gmra.mrb[0].mxu0 %v209_v9 }
  0xf4   :  { %v129_v10 = vpop.f32.mrb[0].mxu0 }
  0xf5   :  { %v197_v12 = vpop.f32.mrb[1].mxu0  ;;  %v152_v14 = vadd.f32 %v169_v11, %v129_v10 }
  0xf6   :  { %v132_v13 = vpop.f32.mrb[2].mxu0 }
  0xf7   :  { %v198_v15 = vpop.f32.mrb[3].mxu0  ;;  %154 = vst [vmem:[%s271_s3] sm:$0xff] %v152_v14  ;;  %v153_v16 = vadd.f32 %v169_v11, %v132_v13 }
  0xf9   :  { %155 = vst [vmem:[%s271_s3 + $0x8] sm:$0xff] %v153_v16 }

// kernel: transformer_forward.8
= control target key start
LH: loop header
LB: loop body
LE: loop exit
PB: predicated region body
PF: predicated region fallthrough
CT: control target
= control target key end

     0   :  { %s2920_s21 = smov 0   ;;  %s2922_s22 = smov 0   ;;  %s3391_s0 = inlined_call_operand.vmem [shape: f32[2,8,128], index: 0, kind: input, shape index: {}, may-alias: {0,1}]   ;;  %s3392_s1 = inlined_call_operand.vmem [shape: f32[2,8,128], index: 1, kind: input, shape index: {}, may-alias: {0,1}]   ;;  %s3393_s2 = inlined_call_operand.vmem [shape: bf16[128,128], index: 2, kind: input, shape index: {}]   ;;  %s3394_s3 = inlined_call_operand.vmem [shape: f32[1,128], index: 3, kind: input, shape index: {}]   ;;  %s3395_s4 = inlined_call_operand.vmem [shape: bf16[128,256], index: 4, kind: input, shape index: {}]   ;;  %s3396_s5 = inlined_call_operand.vmem [shape: f32[1,256], index: 5, kind: input, shape index: {}]   ;;  %s3397_s6 = inlined_call_operand.vmem [shape: bf16[128,128], index: 6, kind: input, shape index: {}]   ;;  %s3398_s7 = inlined_call_operand.vmem [shape: f32[1,128], index: 7, kind: input, shape index: {}]   ;;  %s3399_s8 = inlined_call_operand.vmem [shape: f32[1,128], index: 8, kind: input, shape index: {}]   ;;  %s3400_s9 = inlined_call_operand.vmem [shape: f32[1,128], index: 9, kind: input, shape index: {}]   ;;  %s3401_s10 = inlined_call_operand.vmem [shape: bf16[128,256], index: 10, kind: input, shape index: {}]   ;;  %s3402_s11 = inlined_call_operand.vmem [shape: f32[1,256], index: 11, kind: input, shape index: {}]   ;;  %s3403_s12 = inlined_call_operand.vmem [shape: bf16[256,128], index: 12, kind: input, shape index: {}]   ;;  %s3404_s13 = inlined_call_operand.vmem [shape: f32[1,128], index: 13, kind: input, shape index: {}]   ;;  %s3405_s14 = inlined_call_operand.vmem [shape: f32[1,128], index: 14, kind: input, shape index: {}]   ;;  %s3406_s15 = inlined_call_operand.vmem [shape: f32[1,128], index: 15, kind: input, shape index: {}]   ;;  %s3407_s16 = inlined_call_operand.vmem [shape: f32[2,8,128], index: 16, kind: output, shape index: {}]  }
   0x1   :  { %3409 = sst [smem:[#allocation4_spill]] %s3391_s0  ;;  %s2924_s23 = smov 0  }
   0x2 LB: > { %3410 = sst [smem:[#allocation2_spill]] %s2819_s22  ;;  %s38_s24 = sadd.s32 1, %s2819_s22  ;;  %s2823_s23 = sphi %s2924_s23, %s26_s23   ;;  %s2819_s22 = sphi %s2922_s22, %s3414_s22   ;;  %s2815_s21 = sphi %s2920_s21, %s3413_s21  }
   0x3   : > { %p2350_p0 = scmp.ge.s32.totalorder %s2823_s23, 1  ;;  %p40_p1 = scmp.ge.s32.totalorder %s38_s24, 2 }
   0x4   : > { %p489_p2 = scmp.lt.s32.totalorder %s2823_s23, 3 }
   0x5   : > { %s3416_s24 = smov (%p40_p1, %s38_s24), 0 }
   0x6   : > { %3411 = sst [smem:[#allocation3_spill]] %s3416_s24  ;;  %p490_p3 = pnand %p2350_p0, %p489_p2 }
   0x7   : > { %v2685_v0 = vld [vmem:[%s3395_s4 + $0x4] ss:$8 sps:$4 sm:$0xff] (!%p490_p3)   ;;  %v2687_v1 = vld [vmem:[%s3395_s4] ss:$8 sps:$4 sm:$0xff] (!%p490_p3)   ;;  %v2825_v2 = vmov (!%p490_p3), 0.0   ;;  %v2826_v3 = vmov (!%p490_p3), 0   ;;  %v699_v30 = vlaneseq (!%p490_p3) }
   0x8   : > { %493 = sbr.rel (%p490_p3) target bundleno = 2734 (0xaae), region = 84  ;;  %2515 = vmatprep.subr.bf16.mxu0 (!%p490_p3), %v2825_v2  ;;  %821 = vmatprep.mubr.bf16.mxu1 (!%p490_p3), %v2826_v3  ;;  %v2688_v4 = vld [vmem:[%s3393_s2] sm:$0xff] (!%p490_p3)   ;;  %v2689_v5 = vld [vmem:[%s3395_s4 + $0x14] ss:$8 sps:$4 sm:$0xff] (!%p490_p3)   ;;  %v2691_v6 = vld [vmem:[%s3395_s4 + $0x10] ss:$8 sps:$4 sm:$0xff] (!%p490_p3)  }
   0x9   : > { %789 = vmatprep.subr.bf16.mxu1 (!%p490_p3), %v2685_v0  ;;  %vm2827_vm0 = vmmov (!%p490_p3), 0   ;;  %2516 = vmatpush3.bf16.msra.mxu0 (!%p490_p3), %v2688_v4  ;;  %v2692_v7 = vld [vmem:[%s3393_s2 + $0x8] sm:$0xff] (!%p490_p3)   ;;  %v2696_v10 = vld [vmem:[%s3393_s2 + $0x10] sm:$0xff] (!%p490_p3)   ;;  %p547_p4 = scmp.lt.s32.totalorder (!%p490_p3), %s2815_s21, 1  ;;  %v2700_v13 = vld [vmem:[%s3393_s2 + $0x18] sm:$0xff] (!%p490_p3)   ;;  %s3412_s24 = sld [smem:[#allocation4_spill]] (!%p490_p3) }
   0xa   : > { %790 = vmatpush1.bf16.msra.mxu1 (!%p490_p3), %v2687_v1  ;;  %2531 = vmatprep.mubr.msk.bf16.mxu0 (!%p490_p3), %vm2827_vm0, %v2825_v2  ;;  %v2693_v8 = vld [vmem:[%s3395_s4 + $0x24] ss:$8 sps:$4 sm:$0xff] (!%p490_p3)   ;;  %v2695_v9 = vld [vmem:[%s3395_s4 + $0x20] ss:$8 sps:$4 sm:$0xff] (!%p490_p3)   ;;  %v2697_v11 = vld [vmem:[%s3395_s4 + $0x34] ss:$8 sps:$4 sm:$0xff] (!%p490_p3)  }
   0xb   : > { %791 = vmatprep.subr.bf16.mxu1 (!%p490_p3), %v2689_v5  ;;  %2517 = vmatprep.subr.bf16.mxu0 (!%p490_p3), %v2825_v2  ;;  %v2699_v12 = vld [vmem:[%s3395_s4 + $0x30] ss:$8 sps:$4 sm:$0xff] (!%p490_p3)   ;;  %v2701_v14 = vld [vmem:[%s3395_s4 + $0x44] ss:$8 sps:$4 sm:$0xff] (!%p490_p3)   ;;  %v2703_v15 = vld [vmem:[%s3395_s4 + $0x40] ss:$8 sps:$4 sm:$0xff] (!%p490_p3)  }
   0xc   : > { %v2704_v16 = vld [vmem:[%s3393_s2 + $0x20] sm:$0xff] (!%p490_p3)   ;;  %v2705_v17 = vld [vmem:[%s3395_s4 + $0x54] ss:$8 sps:$4 sm:$0xff] (!%p490_p3)   ;;  %v2707_v18 = vld [vmem:[%s3395_s4 + $0x50] ss:$8 sps:$4 sm:$0xff] (!%p490_p3)   ;;  %v3045_v31 = vshrl.u32 (!%p490_p3), %v699_v30, 7 }
   0xd   : > { %2518 = vmatpush3.bf16.msra.mxu0 (!%p490_p3), %v2692_v7  ;;  %v2708_v19 = vld [vmem:[%s3393_s2 + $0x28] sm:$0xff] (!%p490_p3)   ;;  %v2712_v22 = vld [vmem:[%s3393_s2 + $0x30] sm:$0xff] (!%p490_p3)   ;;  %v2716_v26 = vld [vmem:[%s3393_s2 + $0x38] sm:$0xff] (!%p490_p3)   ;;  %vm834_vm1 = vcmask (!%p490_p3), 130048   ;;  %vm897_vm2 = vcmask (!%p490_p3), 1043456   ;;  %s2829_s26 = smov (!%p490_p3), 96  }
   0xe   : > { %792 = vmatpush1.bf16.msra.mxu1 (!%p490_p3), %v2691_v6  ;;  %2519 = vmatprep.subr.bf16.mxu0 (!%p490_p3), %v2825_v2  ;;  %v2709_v20 = vld [vmem:[%s3395_s4 + $0x64] ss:$8 sps:$4 sm:$0xff] (!%p490_p3)   ;;  %v2711_v21 = vld [vmem:[%s3395_s4 + $0x60] ss:$8 sps:$4 sm:$0xff] (!%p490_p3)   ;;  %v2713_v23 = vld [vmem:[%s3395_s4 + $0x74] ss:$8 sps:$4 sm:$0xff] (!%p490_p3)  }
   0xf   : > { %793 = vmatprep.subr.bf16.mxu1 %v2693_v8  ;;  %s3418_s21 = smov (!%p547_p4, %s2815_s21), 1  ;;  %v2715_v24 = vld [vmem:[%s3395_s4 + $0x70] ss:$8 sps:$4 sm:$0xff]   ;;  %v701_v32 = vsub.s32 0, %v3045_v31  ;;  %v697_v33 = vld [vmem:[%s3396_s5] sm:$0x3] }
  0x10   : > { %s3007_s30 = sshll.u32 %s3418_s21, 3  ;;  %v705_v35 = vsub.s32 1, %v3045_v31  ;;  %v2354_v36 = vld [vmem:[%s3394_s3] ss:$0 sm:$0xff]  ;;  %s2828_s21 = smov 112   ;;  %vm881_vm3 = vcmask 64512  }
  0x11   : > { %2520 = vmatpush3.bf16.msra.mxu0 %v2696_v10  ;;  %s557_s27 = scalar_lea.vmem %s3392_s1, %s3007_s30  ;;  %s553_s22 = scalar_lea.vmem %s3412_s24, %s3007_s30  ;;  %v702_v34 = vrot.slane %v697_v33, %v701_v32  ;;  %vm1743_vm4 = vcmask 261120   ;;  %vm1745_vm5 = vcmask 392192   ;;  %vm1747_vm6 = vcmask 523264  }
  0x12   : > { %794 = vmatpush1.bf16.msra.mxu1 %v2695_v9  ;;  %2521 = vmatprep.subr.bf16.mxu0 %v2825_v2  ;;  %v567_v25 = vld [vmem:[%s557_s27] sm:$0xff]  ;;  %v706_v39 = vrot.slane %v697_v33, %v705_v35  ;;  %s2830_s27 = smov 80   ;;  %s2831_s28 = smov 64   ;;  %vm1749_vm7 = vcmask 654336   ;;  %vm1751_vm8 = vcmask 785408   ;;  %vm1753_vm9 = vcmask 916480  }
  0x13   : > { %795 = vmatprep.subr.bf16.mxu1 %v2697_v11  ;;  %v3034_v27 = vld [vmem:[%s553_s22] sm:$0xff]  ;;  %v680_v28 = vpack.c.bf16 %v567_v25, %v567_v25  ;;  %s2832_s29 = smov 48   ;;  %s2833_s0 = smov 32  }
  0x14   : > { %v568_v29 = vpack.c.bf16 %v3034_v27, %v3034_v27  ;;  %s2834_s17 = smov 16  }
  0x15   : > { %2522 = vmatpush3.bf16.msra.mxu0 %v2700_v13 }
  0x16   : > { %796 = vmatpush1.bf16.msra.mxu1 %v2699_v12  ;;  %2523 = vmatprep.subr.bf16.mxu0 %v2825_v2 }
  0x17   : > { %797 = vmatprep.subr.bf16.mxu1 %v2701_v14 }
  0x19   : > { %2524 = vmatpush3.bf16.msra.mxu0 %v2704_v16 }
  0x1a   : > { %798 = vmatpush1.bf16.msra.mxu1 %v2703_v15  ;;  %2525 = vmatprep.subr.bf16.mxu0 %v2825_v2 }
  0x1b   : > { %799 = vmatprep.subr.bf16.mxu1 %v2705_v17 }
  0x1d   : > { %2526 = vmatpush3.bf16.msra.mxu0 %v2708_v19 }
  0x1e   : > { %800 = vmatpush1.bf16.msra.mxu1 %v2707_v18  ;;  %2527 = vmatprep.subr.bf16.mxu0 %v2825_v2 }
  0x1f   : > { %801 = vmatprep.subr.bf16.mxu1 %v2709_v20 }
  0x21   : > { %2528 = vmatpush3.bf16.msra.mxu0 %v2712_v22 }
  0x22   : > { %802 = vmatpush1.bf16.msra.mxu1 %v2711_v21  ;;  %2529 = vmatprep.subr.bf16.mxu0 %v2825_v2 }
  0x23   : > { %803 = vmatprep.subr.bf16.mxu1 %v2713_v23 }
  0x25   : > { %2530 = vmatpush3.bf16.msra.mxu0 %v2716_v26 }
  0x26   : > { %804 = vmatpush1.bf16.msra.mxu1 %v2715_v24  ;;  %2559 = vmatprep.subr.bf16.mxu0 %v2825_v2 }
  0x27   : > { %2535 = vmatprep.subr.bf16.mxu1 %v2825_v2 }
  0x28   : > { %2532 = vmatmul.mubr.bf16.vlgmr.msra.gmra.mrb[0].mxu0 %v568_v29 }
  0x29   : > { %822 = vmatmul.mubr.bf16.vlgmr.msra.gmra.mrb[0].mxu1 %v680_v28  ;;  %2561 = vmatprep.mubr.msk.bf16.mxu0 %vm2827_vm0, %v2825_v2 }
  0x2a   : > { %2537 = vmatprep.mubr.msk.bf16.mxu1 %vm2827_vm0, %v2825_v2 }
  0xfb   : > { %v674_v41 = vpop.f32.mrb[0].mxu0 }
  0xfc   : > { %v823_v37 = vpop.f32.mrb[0].mxu1  ;;  %v675_v42 = vadd.f32 %v2354_v36, %v674_v41  ;;  %v2533_v44 = vpop.f32.mrb[1].mxu0 }
  0xfd   : > { %v824_v38 = vadd.f32 %v823_v37, %v702_v34  ;;  %v825_v40 = vpop.f32.mrb[1].mxu1  ;;  %v677_v47 = vpop.f32.mrb[2].mxu0 }
  0xfe   : > { %v827_v43 = vpop.f32.mrb[2].mxu1  ;;  %v830_v48 = vmul.f32 0.25, %v675_v42  ;;  %v2534_v49 = vpop.f32.mrb[3].mxu0  ;;  %v826_v50 = vadd.f32 %v825_v40, %v706_v39 }
  0xff   : > { %v832_v45 = vpack.c.bf16 %v824_v38, %v824_v38  ;;  %v828_v46 = vpop.f32.mrb[3].mxu1 }
 0x100   : > { %v831_v52 = vpack.c.bf16 %v830_v48, %v830_v48  ;;  %v3062_v53 = vpack.c.bf16 %v826_v50, %v826_v50 }
 0x101   : > { %945 = vrot.lane.b32.xlu1 %v832_v45, %s2828_s21  ;;  %v839_v51 = vsel %vm834_vm1, %v832_v45, 0 }
 0x102   : > { %2536 = vmatpush3.bf16.xpose.msra.mxu1 %v839_v51  ;;  %v899_v54 = vsel %vm897_vm2, %v3062_v53, 0 }
 0x103   : > { %2541 = vmatprep.subr.bf16.mxu1 %v2825_v2 }
 0x105   : > { %942 = vrot.lane.b32.xlu1 %v831_v52, %s2828_s21 }
 0x109   : > { %1054 = vrot.lane.b32.xlu1 %v831_v52, %s2829_s26  ;;  %2538 = vmatmul.mubr.msk.bf16.vlgmr.msra.gmra.mrb[4].mxu1 %vm834_vm1, %v831_v52 }
 0x10a   : > { %2542 = vmatpush3.bf16.msra.mxu1 %v899_v54  ;;  %2543 = vmatprep.mubr.msk.bf16.mxu1 %vm2827_vm0, %v2825_v2 }
 0x10b   : > { %2547 = vmatprep.subr.bf16.mxu1 %v2825_v2 }
 0x10d   : > { %1166 = vrot.lane.b32.xlu1 %v832_v45, %s2830_s27 }
 0x111   : > { %1164 = vrot.lane.b32.xlu1 %v831_v52, %s2830_s27 }
 0x115   : > { %1276 = vrot.lane.b32.xlu1 %v832_v45, %s2831_s28 }
 0x119   : > { %1274 = vrot.lane.b32.xlu1 %v831_v52, %s2831_s28 }
 0x11d   : > { %1386 = vrot.lane.b32.xlu1 %v832_v45, %s2832_s29 }
 0x121   : > { %1496 = vrot.lane.b32.xlu1 %v832_v45, %s2833_s0 }
 0x125   : > { %1606 = vrot.lane.b32.xlu1 %v832_v45, %s2834_s17 }
 0x173   : > { %v946_v1 = vpop.permute.xlu1 %945 }
 0x174   : > { %v951_v16 = vsel %vm834_vm1, %v946_v1, 0 }
 0x177   : > { %v943_v4 = vpop.permute.xlu1 %942 }
 0x17b   : > { %v1055_v5 = vpop.permute.xlu1 %1054 }
 0x17f   : > { %v1167_v7 = vpop.permute.xlu1 %1166 }
 0x180   : > { %v1172_v13 = vsel %vm834_vm1, %v1167_v7, 0 }
 0x183   : > { %v1165_v10 = vpop.permute.xlu1 %1164 }
 0x187   : > { %v1277_v14 = vpop.permute.xlu1 %1276 }
 0x188   : > { %v1282_v18 = vsel %vm834_vm1, %v1277_v14, 0 }
 0x18b   : > { %v1275_v17 = vpop.permute.xlu1 %1274 }
 0x18f   : > { %v1387_v19 = vpop.permute.xlu1 %1386 }
 0x190   : > { %v1392_v20 = vsel %vm834_vm1, %v1387_v19, 0 }
 0x193   : > { %v1497_v21 = vpop.permute.xlu1 %1496 }
 0x194   : > { %v1502_v23 = vsel %vm834_vm1, %v1497_v21, 0 }
 0x197   : > { %v1607_v24 = vpop.permute.xlu1 %1606 }
 0x198   : > { %v1612_v26 = vsel %vm834_vm1, %v1607_v24, 0 }
 0x1dc   : > { %v875_v55 = vpop.f32.mrb[4].mxu1 }
 0x1dd   : > { %v2539_v56 = vpop.f32.mrb[5].mxu1  ;;  %v882_v57 = vsel %vm881_vm3, %v875_v55, -inf }
 0x1de   : > { %883 = vmax.xlane.f32.xlu0 %v882_v57  ;;  %v878_v58 = vpop.f32.mrb[6].mxu1 }
 0x1df   : > { %v2540_v59 = vpop.f32.mrb[7].mxu1 }
 0x26b   : > { %v884_v60 = vpop.xlane.xlu0 %883 }
 0x26c   : > { %v885_v61 = vsub.f32 %v875_v55, %v884_v60 }
 0x26e   : > { %v886_v62 = vmul.f32 1.442695, %v885_v61 }
 0x270   : > { %2765 = vpow2.f32 %v886_v62 }
 0x27a   : > { %v2766_v63 = vpop.eup %2765 }
 0x27b   : > { %v888_v0 = vsel %vm881_vm3, %v2766_v63, 0.0 }
 0x27c   : > { %889 = vadd.xlane.f32.xlu0 %v888_v0 }
 0x292   : > { %1056 = vrot.lane.b32.xlu0 %v832_v45, %s2829_s26 }
 0x296   : > { %1384 = vrot.lane.b32.xlu0 %v831_v52, %s2832_s29 }
 0x29a   : > { %1494 = vrot.lane.b32.xlu0 %v831_v52, %s2833_s0 }
 0x29e   : > { %1604 = vrot.lane.b32.xlu0 %v831_v52, %s2834_s17 }
 0x309   : > { %v890_v6 = vpop.xlane.xlu0 %889 }
 0x30a   : > { %2767 = vrcp.f32 %v890_v6 }
 0x30d   : > { %v1057_v8 = vpop.permute.xlu0 %1056 }
 0x30e   : > { %v1062_v9 = vsel %vm834_vm1, %v1057_v8, 0 }
 0x30f   : > { %2560 = vmatpush3.bf16.xpose.msra.mxu0 %v1062_v9 }
 0x310   : > { %2571 = vmatprep.subr.bf16.mxu0 %v2825_v2 }
 0x311   : > { %v1385_v22 = vpop.permute.xlu0 %1384 }
 0x314   : > { %v2768_v11 = vpop.eup %2767 }
 0x315   : > { %v892_v12 = vmul.f32 %v2768_v11, %v2766_v63  ;;  %v1495_v25 = vpop.permute.xlu0 %1494 }
 0x316   : > { %2562 = vmatmul.mubr.msk.bf16.vlgmr.msra.gmra.mrb[4].mxu0 %vm834_vm1, %v1055_v5 }
 0x317   : > { %2572 = vmatpush3.bf16.xpose.msra.mxu0 %v1172_v13  ;;  %v893_v15 = vpack.c.bf16 %v892_v12, %v892_v12  ;;  %2573 = vmatprep.mubr.msk.bf16.mxu0 %vm2827_vm0, %v2825_v2 }
 0x318   : > { %2583 = vmatprep.subr.bf16.mxu0 %v2825_v2 }
 0x319   : > { %2544 = vmatmul.mubr.msk.bf16.vlgmr.msra.gmra.mrb[8].mxu1 %vm881_vm3, %v893_v15  ;;  %v1605_v28 = vpop.permute.xlu0 %1604 }
 0x31a   : > { %2548 = vmatpush3.bf16.xpose.msra.mxu1 %v951_v16  ;;  %2549 = vmatprep.mubr.msk.bf16.mxu1 %vm2827_vm0, %v2825_v2 }
 0x31b   : > { %2553 = vmatprep.subr.bf16.mxu1 %v2825_v2 }
 0x31e   : > { %2574 = vmatmul.mubr.msk.bf16.vlgmr.msra.gmra.mrb[8].mxu0 %vm834_vm1, %v1165_v10 }
 0x31f   : > { %2584 = vmatpush3.bf16.xpose.msra.mxu0 %v1282_v18  ;;  %2585 = vmatprep.mubr.msk.bf16.mxu0 %vm2827_vm0, %v2825_v2 }
 0x320   : > { %2595 = vmatprep.subr.bf16.mxu0 %v2825_v2 }
 0x321   : > { %2550 = vmatmul.mubr.msk.bf16.vlgmr.msra.gmra.mrb[12].mxu1 %vm834_vm1, %v943_v4 }
 0x322   : > { %2555 = vmatprep.mubr.msk.bf16.mxu1 %vm2827_vm0, %v2825_v2 }
 0x326   : > { %2586 = vmatmul.mubr.msk.bf16.vlgmr.msra.gmra.mrb[12].mxu0 %vm834_vm1, %v1275_v17 }
 0x327   : > { %2596 = vmatpush3.bf16.xpose.msra.mxu0 %v1392_v20  ;;  %2597 = vmatprep.mubr.msk.bf16.mxu0 %vm2827_vm0, %v2825_v2 }
 0x328   : > { %2607 = vmatprep.subr.bf16.mxu0 %v2825_v2 }
 0x32e   : > { %2598 = vmatmul.mubr.msk.bf16.vlgmr.msra.gmra.mrb[16].mxu0 %vm834_vm1, %v1385_v22 }
 0x32f   : > { %2608 = vmatpush3.bf16.xpose.msra.mxu0 %v1502_v23  ;;  %2609 = vmatprep.mubr.msk.bf16.mxu0 %vm2827_vm0, %v2825_v2 }
 0x330   : > { %2619 = vmatprep.subr.bf16.mxu0 %v2825_v2 }
 0x336   : > { %2610 = vmatmul.mubr.msk.bf16.vlgmr.msra.gmra.mrb[20].mxu0 %vm834_vm1, %v1495_v25 }
 0x337   : > { %2620 = vmatpush3.bf16.xpose.msra.mxu0 %v1612_v26  ;;  %2621 = vmatprep.mubr.msk.bf16.mxu0 %vm2827_vm0, %v2825_v2 }
 0x338   : > { %2631 = vmatprep.subr.bf16.mxu0 %v2825_v2 }
 0x33e   : > { %2622 = vmatmul.mubr.msk.bf16.vlgmr.msra.gmra.mrb[24].mxu0 %vm834_vm1, %v1605_v28 }
 0x33f   : > { %2647 = vmatprep.mubr.msk.bf16.mxu0 %vm2827_vm0, %v2825_v2 }
 0x3e9   : > { %v1098_v29 = vpop.f32.mrb[4].mxu0 }
 0x3ea   : > { %v2563_v30 = vpop.f32.mrb[5].mxu0  ;;  %v1104_v33 = vsel %vm881_vm3, %v1098_v29, -inf }
 0x3eb   : > { %1105 = vmax.xlane.f32.xlu0 %v1104_v33  ;;  %v1101_v34 = vpop.f32.mrb[6].mxu0 }
 0x3ec   : > { %v3124_v36 = vpop.f32.mrb[8].mxu1  ;;  %v2564_v37 = vpop.f32.mrb[7].mxu0 }
 0x3ed   : > { %v2545_v38 = vpop.f32.mrb[9].mxu1 }
 0x3ee   : > { %v938_v39 = vpop.f32.mrb[10].mxu1 }
 0x3ef   : > { %v2546_v40 = vpop.f32.mrb[11].mxu1 }
 0x3f1   : > { %v1208_v41 = vpop.f32.mrb[8].mxu0 }
 0x3f2   : > { %v2575_v42 = vpop.f32.mrb[9].mxu0  ;;  %v1214_v43 = vsel %vm881_vm3, %v1208_v41, -inf }
 0x3f3   : > { %1215 = vmax.xlane.f32.xlu0 %v1214_v43  ;;  %v1211_v44 = vpop.f32.mrb[10].mxu0 }
 0x3f4   : > { %v987_v45 = vpop.f32.mrb[12].mxu1  ;;  %v2576_v46 = vpop.f32.mrb[11].mxu0 }
 0x3f5   : > { %v2551_v47 = vpop.f32.mrb[13].mxu1  ;;  %v993_v48 = vsel %vm881_vm3, %v987_v45, -inf }
 0x3f6   : > { %994 = vmax.xlane.f32.xlu1 %v993_v48  ;;  %v990_v49 = vpop.f32.mrb[14].mxu1 }
 0x3f7   : > { %v2552_v50 = vpop.f32.mrb[15].mxu1 }
 0x3f9   : > { %v1318_v51 = vpop.f32.mrb[12].mxu0 }
 0x3fa   : > { %v2587_v52 = vpop.f32.mrb[13].mxu0  ;;  %v1324_v54 = vsel %vm881_vm3, %v1318_v51, -inf }
 0x3fb   : > { %1325 = vmax.xlane.f32.xlu1 %v1324_v54  ;;  %v1321_v55 = vpop.f32.mrb[14].mxu0 }
 0x3fc   : > { %v2588_v56 = vpop.f32.mrb[15].mxu0 }
 0x401   : > { %v1428_v57 = vpop.f32.mrb[16].mxu0 }
 0x402   : > { %v2599_v58 = vpop.f32.mrb[17].mxu0  ;;  %v1434_v59 = vsel %vm881_vm3, %v1428_v57, -inf }
 0x403   : > { %1435 = vmax.xlane.f32.xlu0 %v1434_v59  ;;  %v1431_v60 = vpop.f32.mrb[18].mxu0 }
 0x404   : > { %v2600_v61 = vpop.f32.mrb[19].mxu0 }
 0x409   : > { %v1538_v62 = vpop.f32.mrb[20].mxu0 }
 0x40a   : > { %v2611_v63 = vpop.f32.mrb[21].mxu0  ;;  %v1544_v0 = vsel %vm881_vm3, %v1538_v62, -inf }
 0x40b   : > { %1545 = vmax.xlane.f32.xlu1 %v1544_v0  ;;  %v1541_v1 = vpop.f32.mrb[22].mxu0 }
 0x40c   : > { %v2612_v4 = vpop.f32.mrb[23].mxu0 }
 0x411   : > { %v1648_v5 = vpop.f32.mrb[24].mxu0 }
 0x412   : > { %v2623_v6 = vpop.f32.mrb[25].mxu0  ;;  %v1654_v7 = vsel %vm881_vm3, %v1648_v5, -inf }
 0x413   : > { %1655 = vmax.xlane.f32.xlu0 %v1654_v7  ;;  %v1651_v8 = vpop.f32.mrb[26].mxu0 }
 0x414   : > { %v2624_v9 = vpop.f32.mrb[27].mxu0 }
 0x478   : > { %v1106_v10 = vpop.xlane.xlu0 %1105 }
 0x479   : > { %v1107_v11 = vsub.f32 %v1098_v29, %v1106_v10 }
 0x47b   : > { %v1108_v12 = vmul.f32 1.442695, %v1107_v11 }
 0x47d   : > { %2769 = vpow2.f32 %v1108_v12 }
 0x480   : > { %v1216_v13 = vpop.xlane.xlu0 %1215 }
 0x481   : > { %v1217_v14 = vsub.f32 %v1208_v41, %v1216_v13 }
 0x483   : > { %v1218_v15 = vmul.f32 1.442695, %v1217_v14  ;;  %v995_v16 = vpop.xlane.xlu1 %994 }
 0x484   : > { %v996_v17 = vsub.f32 %v987_v45, %v995_v16 }
 0x485   : > { %2771 = vpow2.f32 %v1218_v15 }
 0x486   : > { %v997_v18 = vmul.f32 1.442695, %v996_v17 }
 0x487   : > { %v3132_v19 = vpop.eup %2769 }
 0x488   : > { %2773 = vpow2.f32 %v997_v18  ;;  %v1326_v20 = vpop.xlane.xlu1 %1325  ;;  %v1110_v21 = vsel %vm881_vm3, %v3132_v19, 0.0 }
 0x489   : > { %v1327_v22 = vsub.f32 %v1318_v51, %v1326_v20  ;;  %1111 = vadd.xlane.f32.xlu0 %v1110_v21 }
 0x48b   : > { %v1328_v23 = vmul.f32 1.442695, %v1327_v22 }
 0x48d   : > { %2775 = vpow2.f32 %v1328_v23 }
 0x48f   : > { %v3136_v24 = vpop.eup %2771 }
 0x490   : > { %v1436_v25 = vpop.xlane.xlu0 %1435  ;;  %v1220_v26 = vsel %vm881_vm3, %v3136_v24, 0.0 }
 0x491   : > { %v1437_v28 = vsub.f32 %v1428_v57, %v1436_v25  ;;  %1221 = vadd.xlane.f32.xlu1 %v1220_v26 }
 0x492   : > { %v2774_v29 = vpop.eup %2773 }
 0x493   : > { %v1438_v30 = vmul.f32 1.442695, %v1437_v28  ;;  %v999_v33 = vsel %vm881_vm3, %v2774_v29, 0.0 }
 0x495   : > { %2777 = vpow2.f32 %v1438_v30  ;;  %1000 = vadd.xlane.f32.xlu1 %v999_v33 }
 0x497   : > { %v3141_v34 = vpop.eup %2775 }
 0x498   : > { %v1330_v37 = vsel %vm881_vm3, %v3141_v34, 0.0  ;;  %v1546_v40 = vpop.xlane.xlu1 %1545 }
 0x499   : > { %1331 = vadd.xlane.f32.xlu0 %v1330_v37  ;;  %v1547_v41 = vsub.f32 %v1538_v62, %v1546_v40 }
 0x49b   : > { %v1548_v42 = vmul.f32 1.442695, %v1547_v41 }
 0x49d   : > { %2779 = vpow2.f32 %v1548_v42 }
 0x49f   : > { %v3145_v38 = vpop.eup %2777 }
 0x4a0   : > { %v1440_v39 = vsel %vm881_vm3, %v3145_v38, 0.0  ;;  %v1656_v43 = vpop.xlane.xlu0 %1655 }
 0x4a1   : > { %1441 = vadd.xlane.f32.xlu0 %v1440_v39  ;;  %v1657_v44 = vsub.f32 %v1648_v5, %v1656_v43 }
 0x4a3   : > { %v1658_v46 = vmul.f32 1.442695, %v1657_v44 }
 0x4a5   : > { %2781 = vpow2.f32 %v1658_v46 }
 0x4a6   : > { %1006 = vrot.lane.b32.xlu1 %v3062_v53, %s2828_s21 }
 0x4a7   : > { %v3155_v45 = vpop.eup %2779 }
 0x4a8   : > { %v1550_v47 = vsel %vm881_vm3, %v3155_v45, 0.0 }
 0x4af   : > { %v3159_v48 = vpop.eup %2781 }
 0x4b0   : > { %v1660_v49 = vsel %vm881_vm3, %v3159_v48, 0.0 }
 0x4b7   : > { %1116 = vrot.lane.b32.xlu0 %v3062_v53, %s2829_s26 }
 0x4bb   : > { %1226 = vrot.lane.b32.xlu0 %v3062_v53, %s2830_s27 }
 0x4ca   : > { %1551 = vadd.xlane.f32.xlu1 %v1550_v47  ;;  %v2718_v47 = vld [vmem:[%s3397_s6 + $0x8] sm:$0xff]  }
 0x4da   : > { %1661 = vadd.xlane.f32.xlu0 %v1660_v49 }
 0x4db   : > { %1336 = vrot.lane.b32.xlu1 %v3062_v53, %s2831_s28 }
 0x4df   : > { %1556 = vrot.lane.b32.xlu1 %v3062_v53, %s2833_s0 }
 0x4e3   : > { %1666 = vrot.lane.b32.xlu1 %v3062_v53, %s2834_s17 }
 0x4f0   : > { %1446 = vrot.lane.b32.xlu0 %v3062_v53, %s2832_s29 }
 0x516   : > { %v1112_v52 = vpop.xlane.xlu0 %1111 }
 0x51e   : > { %v1222_v50 = vpop.xlane.xlu1 %1221 }
 0x522   : > { %v1001_v51 = vpop.xlane.xlu1 %1000 }
 0x523   : > { %2783 = vrcp.f32 %v1001_v51 }
 0x524   : > { %2785 = vrcp.f32 %v1112_v52 }
 0x525   : > { %2787 = vrcp.f32 %v1222_v50 }
 0x526   : > { %v1007_v54 = vpop.permute.xlu1 %1006  ;;  %v1332_v56 = vpop.xlane.xlu0 %1331 }
 0x527   : > { %v1012_v55 = vsel %vm897_vm2, %v1007_v54, 0  ;;  %2789 = vrcp.f32 %v1332_v56  ;;  %v2720_v54 = vld [vmem:[%s3397_s6 + $0x18] sm:$0xff]   ;;  %v2722_v56 = vld [vmem:[%s3397_s6 + $0x28] sm:$0xff]  }
 0x528   : > { %2554 = vmatpush3.bf16.msra.mxu1 %v1012_v55  ;;  %v2721_v55 = vld [vmem:[%s3397_s6 + $0x20] sm:$0xff]  }
 0x529   : > { %2565 = vmatprep.subr.bf16.mxu1 %v2825_v2 }
 0x52d   : > { %v2784_v57 = vpop.eup %2783 }
 0x52e   : > { %v1003_v58 = vmul.f32 %v2784_v57, %v2774_v29  ;;  %v1442_v59 = vpop.xlane.xlu0 %1441  ;;  %v2786_v61 = vpop.eup %2785  ;;  %v2723_v57 = vld [vmem:[%s3397_s6 + $0x30] sm:$0xff]  }
 0x52f   : > { %v1114_v63 = vmul.f32 %v2786_v61, %v3132_v19  ;;  %v2788_v4 = vpop.eup %2787  ;;  %2791 = vrcp.f32 %v1442_v59 }
 0x530   : > { %v1004_v60 = vpack.c.bf16 %v1003_v58, %v1003_v58  ;;  %v1224_v6 = vmul.f32 %v2788_v4, %v3136_v24 }
 0x531   : > { %v1115_v1 = vpack.c.bf16 %v1114_v63, %v1114_v63  ;;  %v2790_v8 = vpop.eup %2789 }
 0x532   : > { %2556 = vmatmul.mubr.msk.bf16.vlgmr.msra.gmra.mrb[16].mxu1 %vm881_vm3, %v1004_v60  ;;  %v1117_v53 = vpop.permute.xlu0 %1116  ;;  %v1225_v7 = vpack.c.bf16 %v1224_v6, %v1224_v6  ;;  %v1334_v10 = vmul.f32 %v2790_v8, %v3141_v34 }
 0x533   : > { %v1122_v62 = vsel %vm897_vm2, %v1117_v53, 0  ;;  %2567 = vmatprep.mubr.msk.bf16.mxu1 %vm2827_vm0, %v2825_v2  ;;  %v2724_v53 = vld [vmem:[%s3397_s6 + $0x38] sm:$0xff]  }
 0x534   : > { %2566 = vmatpush3.bf16.msra.mxu1 %v1122_v62  ;;  %v1335_v13 = vpack.c.bf16 %v1334_v10, %v1334_v10 }
 0x535   : > { %2577 = vmatprep.subr.bf16.mxu1 %v2825_v2 }
 0x536   : > { %v1227_v0 = vpop.permute.xlu0 %1226 }
 0x537   : > { %v1232_v5 = vsel %vm897_vm2, %v1227_v0, 0 }
 0x539   : > { %v2792_v14 = vpop.eup %2791 }
 0x53a   : > { %2568 = vmatmul.mubr.msk.bf16.vlgmr.msra.gmra.mrb[20].mxu1 %vm881_vm3, %v1115_v1  ;;  %v1444_v16 = vmul.f32 %v2792_v14, %v3145_v38 }
 0x53b   : > { %2578 = vmatpush3.bf16.msra.mxu1 %v1232_v5  ;;  %2579 = vmatprep.mubr.msk.bf16.mxu1 %vm2827_vm0, %v2825_v2 }
 0x53c   : > { %2589 = vmatprep.subr.bf16.mxu1 %v2825_v2  ;;  %v1445_v20 = vpack.c.bf16 %v1444_v16, %v1444_v16 }
 0x542   : > { %2580 = vmatmul.mubr.msk.bf16.vlgmr.msra.gmra.mrb[24].mxu1 %vm881_vm3, %v1225_v7 }
 0x543   : > { %2591 = vmatprep.mubr.msk.bf16.mxu1 %vm2827_vm0, %v2825_v2 }
 0x557   : > { %v1552_v9 = vpop.xlane.xlu1 %1551 }
 0x558   : > { %2793 = vrcp.f32 %v1552_v9 }
 0x55b   : > { %v1337_v11 = vpop.permute.xlu1 %1336 }
 0x55c   : > { %v1342_v12 = vsel %vm897_vm2, %v1337_v11, 0 }
 0x55d   : > { %2590 = vmatpush3.bf16.msra.mxu1 %v1342_v12 }
 0x55e   : > { %2601 = vmatprep.subr.bf16.mxu1 %v2825_v2 }
 0x55f   : > { %v1557_v19 = vpop.permute.xlu1 %1556 }
 0x560   : > { %2592 = vmatmul.mubr.msk.bf16.vlgmr.msra.gmra.mrb[28].mxu1 %vm881_vm3, %v1335_v13  ;;  %v1562_v22 = vsel %vm897_vm2, %v1557_v19, 0 }
 0x561   : > { %2603 = vmatprep.mubr.msk.bf16.mxu1 %vm2827_vm0, %v2825_v2 }
 0x562   : > { %v2794_v21 = vpop.eup %2793 }
 0x563   : > { %v1554_v23 = vmul.f32 %v2794_v21, %v3155_v45  ;;  %v1667_v24 = vpop.permute.xlu1 %1666 }
 0x564   : > { %v1672_v28 = vsel %vm897_vm2, %v1667_v24, 0 }
 0x565   : > { %v1555_v25 = vpack.c.bf16 %v1554_v23, %v1554_v23  ;;  %v2395_v23 = vld [vmem:[%s3398_s7] ss:$0 sm:$0xff] }
 0x567   : > { %v1662_v15 = vpop.xlane.xlu0 %1661 }
 0x568   : > { %2795 = vrcp.f32 %v1662_v15 }
 0x56b   : > { %v1447_v17 = vpop.permute.xlu0 %1446 }
 0x56c   : > { %v1452_v18 = vsel %vm897_vm2, %v1447_v17, 0 }
 0x56d   : > { %2602 = vmatpush3.bf16.msra.mxu1 %v1452_v18 }
 0x56e   : > { %2613 = vmatprep.subr.bf16.mxu1 %v2825_v2 }
 0x570   : > { %2604 = vmatmul.mubr.msk.bf16.vlgmr.msra.gmra.mrb[32].mxu1 %vm881_vm3, %v1445_v20 }
 0x571   : > { %2614 = vmatpush3.bf16.msra.mxu1 %v1562_v22  ;;  %2615 = vmatprep.mubr.msk.bf16.mxu1 %vm2827_vm0, %v2825_v2  ;;  %v2725_v22 = vld [vmem:[%s3401_s10] ss:$8 sps:$4 sm:$0xff]  }
 0x572   : > { %2625 = vmatprep.subr.bf16.mxu1 %v2825_v2  ;;  %v2796_v26 = vpop.eup %2795 }
 0x573   : > { %v1664_v29 = vmul.f32 %v2796_v26, %v3159_v48  ;;  %v2719_v48 = vld [vmem:[%s3397_s6 + $0x10] sm:$0xff]  }
 0x575   : > { %v1665_v30 = vpack.c.bf16 %v1664_v29, %v1664_v29 }
 0x578   : > { %2616 = vmatmul.mubr.msk.bf16.vlgmr.msra.gmra.mrb[36].mxu1 %vm881_vm3, %v1555_v25 }
 0x579   : > { %2626 = vmatpush3.bf16.msra.mxu1 %v1672_v28  ;;  %2627 = vmatprep.mubr.msk.bf16.mxu1 %vm2827_vm0, %v2825_v2 }
 0x580   : > { %2628 = vmatmul.mubr.msk.bf16.vlgmr.msra.gmra.mrb[40].mxu1 %vm881_vm3, %v1665_v30 }
 0x581   : > { %2040 = vmatprep.mubr.bf16.mxu1 %v2826_v3  ;;  %v2717_v3 = vld [vmem:[%s3397_s6] sm:$0xff]  }
 0x582   : > { %2632 = vmatpush3.bf16.msra.mxu0 %v2717_v3  ;;  %v2748_v3 = vld [vmem:[%s3401_s10 + $0x74] ss:$8 sps:$4 sm:$0xff]  }
 0x583   : > { %2633 = vmatprep.subr.bf16.mxu0 %v2825_v2 }
 0x586   : > { %2634 = vmatpush3.bf16.msra.mxu0 %v2718_v47  ;;  %v2746_v47 = vld [vmem:[%s3401_s10 + $0x70] ss:$8 sps:$4 sm:$0xff]  }
 0x587   : > { %2635 = vmatprep.subr.bf16.mxu0 %v2825_v2 }
 0x58a   : > { %2636 = vmatpush3.bf16.msra.mxu0 %v2719_v48  ;;  %v2749_v48 = vld [vmem:[%s3403_s12 + $0x40] sm:$0xff]  }
 0x58b   : > { %2637 = vmatprep.subr.bf16.mxu0 %v2825_v2 }
 0x58e   : > { %2638 = vmatpush3.bf16.msra.mxu0 %v2720_v54  ;;  %v2754_v54 = vld [vmem:[%s3403_s12 + $0x10] sm:$0xff]  }
 0x58f   : > { %2639 = vmatprep.subr.bf16.mxu0 %v2825_v2 }
 0x592   : > { %2640 = vmatpush3.bf16.msra.mxu0 %v2721_v55  ;;  %v2755_v55 = vld [vmem:[%s3403_s12 + $0x58] sm:$0xff]  }
 0x593   : > { %2641 = vmatprep.subr.bf16.mxu0 %v2825_v2 }
 0x596   : > { %2642 = vmatpush3.bf16.msra.mxu0 %v2722_v56  ;;  %v2756_v56 = vld [vmem:[%s3403_s12 + $0x18] sm:$0xff]  }
 0x597   : > { %2643 = vmatprep.subr.bf16.mxu0 %v2825_v2 }
 0x59a   : > { %2644 = vmatpush3.bf16.msra.mxu0 %v2723_v57  ;;  %v2757_v57 = vld [vmem:[%s3403_s12 + $0x60] sm:$0xff]  }
 0x59b   : > { %2645 = vmatprep.subr.bf16.mxu0 %v2825_v2 }
 0x59e   : > { %2646 = vmatpush3.bf16.msra.mxu0 %v2724_v53 }
 0x59f   : > { %2493 = vmatprep.subr.bf16.mxu0 %v2749_v48  ;;  %v2439_v48 = vld [vmem:[%s3405_s14] ss:$0 sm:$0xff] }
 0x605   : > { %v1048_v33 = vpop.f32.mrb[16].mxu1 }
 0x606   : > { %1715 = vrot.lane.b32.xlu1 %v1048_v33, %s2834_s17  ;;  %v2557_v34 = vpop.f32.mrb[17].mxu1 }
 0x607   : > { %v1051_v37 = vpop.f32.mrb[18].mxu1  ;;  %v2730_v34 = vld [vmem:[%s3401_s10 + $0x14] ss:$8 sps:$4 sm:$0xff]  }
 0x608   : > { %v2558_v38 = vpop.f32.mrb[19].mxu1  ;;  %v2728_v37 = vld [vmem:[%s3401_s10 + $0x10] ss:$8 sps:$4 sm:$0xff]  }
 0x609   : > { %v2731_v38 = vld [vmem:[%s3401_s10 + $0x20] ss:$8 sps:$4 sm:$0xff]  }
 0x60d   : > { %v1158_v39 = vpop.f32.mrb[20].mxu1 }
 0x60e   : > { %1719 = vrot.lane.b32.xlu1 %v1158_v39, %s2833_s0  ;;  %v2569_v40 = vpop.f32.mrb[21].mxu1  ;;  %v2736_v39 = vld [vmem:[%s3401_s10 + $0x34] ss:$8 sps:$4 sm:$0xff]  }
 0x60f   : > { %v1161_v41 = vpop.f32.mrb[22].mxu1  ;;  %v2734_v40 = vld [vmem:[%s3401_s10 + $0x30] ss:$8 sps:$4 sm:$0xff]  }
 0x610   : > { %v2570_v42 = vpop.f32.mrb[23].mxu1  ;;  %v2739_v41 = vld [vmem:[%s3401_s10 + $0x44] ss:$8 sps:$4 sm:$0xff]  }
 0x611   : > { %v2737_v42 = vld [vmem:[%s3401_s10 + $0x40] ss:$8 sps:$4 sm:$0xff]  }
 0x615   : > { %v1268_v43 = vpop.f32.mrb[24].mxu1 }
 0x616   : > { %1723 = vrot.lane.b32.xlu0 %v1268_v43, %s2832_s29  ;;  %v2581_v44 = vpop.f32.mrb[25].mxu1  ;;  %v2742_v43 = vld [vmem:[%s3401_s10 + $0x54] ss:$8 sps:$4 sm:$0xff]  }
 0x617   : > { %v1271_v45 = vpop.f32.mrb[26].mxu1  ;;  %v2740_v44 = vld [vmem:[%s3401_s10 + $0x50] ss:$8 sps:$4 sm:$0xff]  }
 0x618   : > { %v2582_v46 = vpop.f32.mrb[27].mxu1  ;;  %v2745_v45 = vld [vmem:[%s3401_s10 + $0x64] ss:$8 sps:$4 sm:$0xff]  }
 0x619   : > { %v2743_v46 = vld [vmem:[%s3401_s10 + $0x60] ss:$8 sps:$4 sm:$0xff]  }
 0x633   : > { %v1378_v49 = vpop.f32.mrb[28].mxu1 }
 0x634   : > { %1727 = vrot.lane.b32.xlu1 %v1378_v49, %s2831_s28  ;;  %v2593_v50 = vpop.f32.mrb[29].mxu1  ;;  %v2750_v49 = vld [vmem:[%s3403_s12] sm:$0xff]  }
 0x635   : > { %v1381_v51 = vpop.f32.mrb[30].mxu1  ;;  %v2751_v50 = vld [vmem:[%s3403_s12 + $0x48] sm:$0xff]  }
 0x636   : > { %v2594_v52 = vpop.f32.mrb[31].mxu1  ;;  %v2752_v51 = vld [vmem:[%s3403_s12 + $0x8] sm:$0xff]  }
 0x637   : > { %v2753_v52 = vld [vmem:[%s3403_s12 + $0x50] sm:$0xff]  }
 0x643   : > { %v1488_v58 = vpop.f32.mrb[32].mxu1 }
 0x644   : > { %1731 = vrot.lane.b32.xlu0 %v1488_v58, %s2830_s27  ;;  %v2605_v59 = vpop.f32.mrb[33].mxu1  ;;  %v2758_v58 = vld [vmem:[%s3403_s12 + $0x20] sm:$0xff]   ;;  %s564_s27 = scalar_lea.vmem %s3407_s16, %s3007_s30 }
 0x645   : > { %v1491_v60 = vpop.f32.mrb[34].mxu1  ;;  %v2759_v59 = vld [vmem:[%s3403_s12 + $0x68] sm:$0xff]  }
 0x646   : > { %v2606_v61 = vpop.f32.mrb[35].mxu1  ;;  %v2760_v60 = vld [vmem:[%s3403_s12 + $0x28] sm:$0xff]  }
 0x64b   : > { %v1598_v62 = vpop.f32.mrb[36].mxu1 }
 0x64c   : > { %1735 = vrot.lane.b32.xlu1 %v1598_v62, %s2829_s26  ;;  %v2617_v63 = vpop.f32.mrb[37].mxu1 }
 0x64d   : > { %v1601_v0 = vpop.f32.mrb[38].mxu1 }
 0x64e   : > { %v2618_v1 = vpop.f32.mrb[39].mxu1 }
 0x653   : > { %v1708_v4 = vpop.f32.mrb[40].mxu1 }
 0x654   : > { %1739 = vrot.lane.b32.xlu0 %v1708_v4, %s2828_s21  ;;  %v2629_v5 = vpop.f32.mrb[41].mxu1 }
 0x655   : > { %v1711_v6 = vpop.f32.mrb[42].mxu1 }
 0x656   : > { %v2630_v7 = vpop.f32.mrb[43].mxu1 }
 0x678   : > { %v1716_v8 = vpop.permute.xlu1 %1715 }
 0x679   : > { %v1742_v11 = vsel %vm834_vm1, %v3124_v36, %v1716_v8  ;;  %v2727_v36 = vld [vmem:[%s3401_s10 + $0x4] ss:$8 sps:$4 sm:$0xff]   ;;  %v2404_v8 = vld [vmem:[%s3399_s8] ss:$0 sm:$0xff] }
 0x67a   : > { %2008 = vmatprep.subr.bf16.mxu1 %v2727_v36 }
 0x67b   : > { %2009 = vmatpush1.bf16.msra.mxu1 %v2725_v22 }
 0x67c   : > { %2010 = vmatprep.subr.bf16.mxu1 %v2730_v34 }
 0x67f   : > { %2011 = vmatpush1.bf16.msra.mxu1 %v2728_v37 }
 0x680   : > { %v1720_v2 = vpop.permute.xlu1 %1719 }
 0x681   : > { %v1744_v12 = vsel %vm1743_vm4, %v1742_v11, %v1720_v2 }
 0x688   : > { %v1724_v9 = vpop.permute.xlu0 %1723 }
 0x689   : > { %v1746_v14 = vsel %vm1745_vm5, %v1744_v12, %v1724_v9  ;;  %v2405_v9 = vld [vmem:[%s3400_s9] ss:$0 sm:$0xff] }
 0x6a6   : > { %v1728_v10 = vpop.permute.xlu1 %1727 }
 0x6a7   : > { %v1748_v16 = vsel %vm1747_vm6, %v1746_v14, %v1728_v10  ;;  %v2762_v14 = vld [vmem:[%s3403_s12 + $0x30] sm:$0xff]  }
 0x6b6   : > { %v1732_v13 = vpop.permute.xlu0 %1731 }
 0x6b7   : > { %v1750_v17 = vsel %vm1749_vm7, %v1748_v16, %v1732_v13  ;;  %v2761_v13 = vld [vmem:[%s3403_s12 + $0x70] sm:$0xff]   ;;  %v2764_v16 = vld [vmem:[%s3403_s12 + $0x38] sm:$0xff]  }
 0x6be   : > { %v1736_v15 = vpop.permute.xlu1 %1735 }
 0x6bf   : > { %v1752_v18 = vsel %vm1751_vm8, %v1750_v17, %v1736_v15  ;;  %v2763_v15 = vld [vmem:[%s3403_s12 + $0x78] sm:$0xff]   ;;  %v1916_v17 = vld [vmem:[%s3402_s11] sm:$0x3] }
 0x6c6   : > { %v1740_v19 = vpop.permute.xlu0 %1739 }
 0x6c7   : > { %v1754_v20 = vsel %vm1753_vm9, %v1752_v18, %v1740_v19  ;;  %v1921_v18 = vrot.slane %v1916_v17, %v701_v32  ;;  %v1925_v19 = vrot.slane %v1916_v17, %v705_v35  ;;  %v2422_v32 = vld [vmem:[%s3404_s13] ss:$0 sm:$0xff] }
 0x6c8   : > { %v1755_v21 = vpack.c.bf16 %v1754_v20, %v1754_v20 }
 0x6ca   : > { %2648 = vmatmul.mubr.bf16.vlgmr.msra.gmra.mrb[28].mxu0 %v1755_v21 }
 0x6cb   : > { %2494 = vmatpush3.bf16.msra.mxu0 %v2750_v49 }
 0x6cc   : > { %2495 = vmatprep.subr.bf16.mxu0 %v2751_v50  ;;  %v2440_v50 = vld [vmem:[%s3406_s15] ss:$0 sm:$0xff] }
 0x6cf   : > { %2496 = vmatpush3.bf16.msra.mxu0 %v2752_v51 }
 0x6d0   : > { %2497 = vmatprep.subr.bf16.mxu0 %v2753_v52 }
 0x6d3   : > { %2498 = vmatpush3.bf16.msra.mxu0 %v2754_v54 }
 0x6d4   : > { %2499 = vmatprep.subr.bf16.mxu0 %v2755_v55 }
 0x6d7   : > { %2500 = vmatpush3.bf16.msra.mxu0 %v2756_v56 }
 0x6d8   : > { %2501 = vmatprep.subr.bf16.mxu0 %v2757_v57 }
 0x6db   : > { %2502 = vmatpush3.bf16.msra.mxu0 %v2758_v58 }
 0x6dc   : > { %2503 = vmatprep.subr.bf16.mxu0 %v2759_v59 }
 0x6df   : > { %2504 = vmatpush3.bf16.msra.mxu0 %v2760_v60 }
 0x6e0   : > { %2505 = vmatprep.subr.bf16.mxu0 %v2761_v13 }
 0x6e3   : > { %2506 = vmatpush3.bf16.msra.mxu0 %v2762_v14 }
 0x6e4   : > { %2507 = vmatprep.subr.bf16.mxu0 %v2763_v15 }
 0x6e7   : > { %2508 = vmatpush3.bf16.msra.mxu0 %v2764_v16 }
 0x79d   : > { %v1861_v24 = vpop.f32.mrb[28].mxu0 }
 0x79e   : > { %v1862_v25 = vadd.f32 %v2395_v23, %v1861_v24  ;;  %v2649_v26 = vpop.f32.mrb[29].mxu0 }
 0x79f   : > { %v1864_v28 = vpop.f32.mrb[30].mxu0 }
 0x7a0   : > { %v3260_v29 = vadd.f32 %v1862_v25, %v3034_v27  ;;  %v2650_v30 = vpop.f32.mrb[31].mxu0  ;;  %v2733_v27 = vld [vmem:[%s3401_s10 + $0x24] ss:$8 sps:$4 sm:$0xff]  }
 0x7a1   : > { %2012 = vmatprep.subr.bf16.mxu1 %v2733_v27 }
 0x7a2   : > { %1870 = vadd.xlane.f32.xlu1 %v3260_v29  ;;  %v1874_v33 = vmul.f32 %v3260_v29, %v3260_v29  ;;  %2013 = vmatpush1.bf16.msra.mxu1 %v2731_v38 }
 0x7a3   : > { %2014 = vmatprep.subr.bf16.mxu1 %v2736_v39 }
 0x7a4   : > { %1875 = vadd.xlane.f32.xlu0 %v1874_v33 }
 0x7a6   : > { %2015 = vmatpush1.bf16.msra.mxu1 %v2734_v40 }
 0x7a7   : > { %2016 = vmatprep.subr.bf16.mxu1 %v2739_v41 }
 0x7aa   : > { %2017 = vmatpush1.bf16.msra.mxu1 %v2737_v42 }
 0x7ab   : > { %2018 = vmatprep.subr.bf16.mxu1 %v2742_v43 }
 0x7ae   : > { %2019 = vmatpush1.bf16.msra.mxu1 %v2740_v44 }
 0x7af   : > { %2020 = vmatprep.subr.bf16.mxu1 %v2745_v45 }
 0x7b2   : > { %2021 = vmatpush1.bf16.msra.mxu1 %v2743_v46 }
 0x7b3   : > { %2022 = vmatprep.subr.bf16.mxu1 %v2748_v3 }
 0x7b6   : > { %2023 = vmatpush1.bf16.msra.mxu1 %v2746_v47 }
 0x82f   : > { %v1871_v61 = vpop.xlane.xlu1 %1870 }
 0x830   : > { %v1873_v53 = vmul.f32 0.0078125, %v1871_v61 }
 0x831   : > { %v1876_v62 = vpop.xlane.xlu0 %1875 }
 0x832   : > { %v1878_v63 = vmul.f32 %v1873_v53, %v1873_v53  ;;  %v1877_v0 = vmul.f32 0.0078125, %v1876_v62  ;;  %v1881_v6 = vsub.f32 %v3260_v29, %v1873_v53 }
 0x834   : > { %v1879_v1 = vsub.f32 %v1877_v0, %v1878_v63 }
 0x836   : > { %v1880_v4 = vmax.f32 %v1879_v1, 0.0 }
 0x838   : > { %v1882_v5 = vadd.f32 1e-06, %v1880_v4 }
 0x83a   : > { %2797 = vrsqrt.f32 %v1882_v5 }
 0x844   : > { %v2798_v7 = vpop.eup %2797 }
 0x845   : > { %v1884_v2 = vmul.f32 %v2798_v7, %v1881_v6 }
 0x847   : > { %v1891_v10 = vmul.f32 %v2404_v8, %v1884_v2 }
 0x849   : > { %v1898_v11 = vadd.f32 %v2405_v9, %v1891_v10 }
 0x84b   : > { %v1899_v12 = vpack.c.bf16 %v1898_v11, %v1898_v11 }
 0x84d   : > { %2041 = vmatmul.mubr.bf16.vlgmr.msra.gmra.mrb[44].mxu1 %v1899_v12 }
 0x920   : > { %v2042_v20 = vpop.f32.mrb[44].mxu1 }
 0x921   : > { %v2043_v21 = vadd.f32 %v2042_v20, %v1921_v18  ;;  %v2044_v22 = vpop.f32.mrb[45].mxu1 }
 0x922   : > { %v2045_v36 = vadd.f32 %v2044_v22, %v1925_v19  ;;  %v2046_v23 = vpop.f32.mrb[46].mxu1 }
 0x923   : > { %v2049_v24 = vmax.f32 %v2043_v21, 0.0  ;;  %v2047_v25 = vpop.f32.mrb[47].mxu1 }
 0x924   : > { %v2050_v26 = vmax.f32 %v2045_v36, 0.0 }
 0x925   : > { %v2051_v29 = vpack.c.bf16 %v2049_v24, %v2049_v24 }
 0x926   : > { %v2052_v28 = vpack.c.bf16 %v2050_v26, %v2050_v26 }
 0x928   : > { %2220 = vmatprep.mubr.bf16.mxu0 %v2052_v28 }
 0x929   : > { %2221 = vmatmul.mubr.bf16.vlgmr.msra.gmra.mrb[32].mxu0 %v2051_v29 }
 0x9fc   : > { %v2509_v30 = vpop.f32.mrb[32].mxu0 }
 0x9fd   : > { %v2510_v33 = vpop.f32.mrb[33].mxu0 }
 0x9fe   : > { %v2511_v31 = vadd.f32 %v2510_v33, %v2509_v30  ;;  %v2512_v35 = vpop.f32.mrb[34].mxu0 }
 0x9ff   : > { %v2513_v34 = vpop.f32.mrb[35].mxu0 }
 0xa00   : > { %v2223_v37 = vadd.f32 %v2511_v31, %v2422_v32 }
 0xa02   : > { %v2228_v27 = vadd.f32 %v2223_v37, %v1898_v11 }
 0xa04   : > { %2231 = vadd.xlane.f32.xlu0 %v2228_v27  ;;  %v2234_v38 = vmul.f32 %v2228_v27, %v2228_v27 }
 0xa06   : > { %2235 = vadd.xlane.f32.xlu1 %v2234_v38 }
 0xa91   : > { %v2232_v39 = vpop.xlane.xlu0 %2231 }
 0xa92   : > { %v2233_v40 = vmul.f32 0.0078125, %v2232_v39 }
 0xa93   : > { %v2236_v41 = vpop.xlane.xlu1 %2235 }
 0xa94   : > { %v2238_v42 = vmul.f32 %v2233_v40, %v2233_v40  ;;  %v2237_v43 = vmul.f32 0.0078125, %v2236_v41  ;;  %v2241_v3 = vsub.f32 %v2228_v27, %v2233_v40 }
 0xa96   : > { %v2239_v44 = vsub.f32 %v2237_v43, %v2238_v42 }
 0xa98   : > { %v2240_v45 = vmax.f32 %v2239_v44, 0.0 }
 0xa9a   : > { %v2242_v46 = vadd.f32 1e-06, %v2240_v45 }
 0xa9c   : > { %2799 = vrsqrt.f32 %v2242_v46 }
 0xaa6   : > { %v2800_v47 = vpop.eup %2799 }
 0xaa7   : > { %v2244_v49 = vmul.f32 %v2800_v47, %v2241_v3 }
 0xaa9   : > { %v2251_v51 = vmul.f32 %v2439_v48, %v2244_v49 }
 0xaab   : > { %v2258_v52 = vadd.f32 %v2440_v50, %v2251_v51 }
 0xaad   : > { %2259 = vst [vmem:[%s564_s27] sm:$0xff] %v2258_v52 }
 0xaae PF: > { %s26_s23 = sadd.s32 1, %s2823_s23   ;;  %s3413_s21 = sld [smem:[#allocation2_spill]] }
 0xaaf   : > { %p23_p5 = scmp.ge.s32.totalorder %s26_s23, 4   ;;  %s3414_s22 = sld [smem:[#allocation3_spill]] }
 0xab1   :  { %25 = sbr.rel (!%p23_p5) target bundleno = 2 (0x2), region = 117 }

// kernel: transformer_forward.9
= control target key start
LH: loop header
LB: loop body
LE: loop exit
PB: predicated region body
PF: predicated region fallthrough
CT: control target
= control target key end

     0   :  { %s2278_s13 = smov 0   ;;  %s2280_s14 = smov 0   ;;  %s2632_s0 = inlined_call_operand.vmem [shape: f32[2,8,128], index: 0, kind: input, shape index: {}, may-alias: {0,1}]   ;;  %s2633_s1 = inlined_call_operand.vmem [shape: f32[2,8,128], index: 1, kind: input, shape index: {}, may-alias: {0,1}]   ;;  %s2634_s2 = inlined_call_operand.vmem [shape: bf16[128,128], index: 2, kind: input, shape index: {}]   ;;  %s2635_s3 = inlined_call_operand.vmem [shape: f32[1,128], index: 3, kind: input, shape index: {}]   ;;  %s2636_s4 = inlined_call_operand.vmem [shape: bf16[128,256], index: 4, kind: input, shape index: {}]   ;;  %s2637_s5 = inlined_call_operand.vmem [shape: f32[1,256], index: 5, kind: input, shape index: {}]   ;;  %s2638_s6 = inlined_call_operand.vmem [shape: bf16[128,128], index: 6, kind: input, shape index: {}]   ;;  %s2639_s7 = inlined_call_operand.vmem [shape: f32[1,128], index: 7, kind: input, shape index: {}]   ;;  %s2640_s8 = inlined_call_operand.vmem [shape: f32[1,128], index: 8, kind: input, shape index: {}]   ;;  %s2641_s9 = inlined_call_operand.vmem [shape: f32[1,128], index: 9, kind: input, shape index: {}]   ;;  %s2642_s10 = inlined_call_operand.vmem [shape: f32[2,8,128], index: 10, kind: output, shape index: {}]  }
   0x1   :  { %s2282_s15 = smov 0  }
   0x2 LB: > { %s32_s16 = sadd.s32 1, %s2207_s14  ;;  %p1837_p0 = scmp.ge.s32.totalorder %s2211_s15, 1  ;;  %s2211_s15 = sphi %s2282_s15, %s20_s15   ;;  %s2207_s14 = sphi %s2280_s14, %s2644_s14   ;;  %s2203_s13 = sphi %s2278_s13, %s2643_s13  }
   0x3   : > { %p34_p1 = scmp.ge.s32.totalorder %s32_s16, 2  ;;  %p339_p2 = scmp.lt.s32.totalorder %s2211_s15, 3 }
   0x5   : > { %s2646_s16 = smov (%p34_p1, %s32_s16), 0  ;;  %p340_p3 = pnand %p1837_p0, %p339_p2 }
   0x6   : > { %v2115_v0 = vld [vmem:[%s2636_s4 + $0x4] ss:$8 sps:$4 sm:$0xff] (!%p340_p3)   ;;  %v2117_v1 = vld [vmem:[%s2636_s4] ss:$8 sps:$4 sm:$0xff] (!%p340_p3)   ;;  %v2213_v2 = vmov (!%p340_p3), 0.0   ;;  %v2214_v3 = vmov (!%p340_p3), 0   ;;  %v537_v30 = vlaneseq (!%p340_p3) }
   0x7   : > { %343 = sbr.rel (%p340_p3) target bundleno = 2127 (0x84f), region = 60  ;;  %1945 = vmatprep.subr.bf16.mxu0 (!%p340_p3), %v2213_v2  ;;  %659 = vmatprep.mubr.bf16.mxu1 (!%p340_p3), %v2214_v3  ;;  %v2118_v4 = vld [vmem:[%s2634_s2] sm:$0xff] (!%p340_p3)   ;;  %v2119_v5 = vld [vmem:[%s2636_s4 + $0x14] ss:$8 sps:$4 sm:$0xff] (!%p340_p3)   ;;  %v2121_v6 = vld [vmem:[%s2636_s4 + $0x10] ss:$8 sps:$4 sm:$0xff] (!%p340_p3)  }
   0x8   : > { %627 = vmatprep.subr.bf16.mxu1 (!%p340_p3), %v2115_v0  ;;  %vm2215_vm0 = vmmov (!%p340_p3), 0   ;;  %1946 = vmatpush3.bf16.msra.mxu0 (!%p340_p3), %v2118_v4  ;;  %v2122_v7 = vld [vmem:[%s2634_s2 + $0x8] sm:$0xff] (!%p340_p3)   ;;  %v2126_v10 = vld [vmem:[%s2634_s2 + $0x10] sm:$0xff] (!%p340_p3)   ;;  %p385_p4 = scmp.lt.s32.totalorder (!%p340_p3), %s2203_s13, 1  ;;  %v2130_v13 = vld [vmem:[%s2634_s2 + $0x18] sm:$0xff] (!%p340_p3)   ;;  %v538_v31 = vshrl.u32 (!%p340_p3), %v537_v30, 7 }
   0x9   : > { %628 = vmatpush1.bf16.msra.mxu1 (!%p340_p3), %v2117_v1  ;;  %1961 = vmatprep.mubr.msk.bf16.mxu0 (!%p340_p3), %vm2215_vm0, %v2213_v2  ;;  %v2123_v8 = vld [vmem:[%s2636_s4 + $0x24] ss:$8 sps:$4 sm:$0xff] (!%p340_p3)   ;;  %v2125_v9 = vld [vmem:[%s2636_s4 + $0x20] ss:$8 sps:$4 sm:$0xff] (!%p340_p3)   ;;  %v2127_v11 = vld [vmem:[%s2636_s4 + $0x34] ss:$8 sps:$4 sm:$0xff] (!%p340_p3)  }
   0xa   : > { %629 = vmatprep.subr.bf16.mxu1 (!%p340_p3), %v2119_v5  ;;  %1947 = vmatprep.subr.bf16.mxu0 (!%p340_p3), %v2213_v2  ;;  %v2129_v12 = vld [vmem:[%s2636_s4 + $0x30] ss:$8 sps:$4 sm:$0xff] (!%p340_p3)   ;;  %v2131_v14 = vld [vmem:[%s2636_s4 + $0x44] ss:$8 sps:$4 sm:$0xff] (!%p340_p3)   ;;  %v2133_v15 = vld [vmem:[%s2636_s4 + $0x40] ss:$8 sps:$4 sm:$0xff] (!%p340_p3)  }
   0xb   : > { %v2134_v16 = vld [vmem:[%s2634_s2 + $0x20] sm:$0xff] (!%p340_p3)   ;;  %v2135_v17 = vld [vmem:[%s2636_s4 + $0x54] ss:$8 sps:$4 sm:$0xff] (!%p340_p3)   ;;  %v2137_v18 = vld [vmem:[%s2636_s4 + $0x50] ss:$8 sps:$4 sm:$0xff] (!%p340_p3)   ;;  %v539_v32 = vsub.s32 (!%p340_p3), 0, %v538_v31 }
   0xc   : > { %1948 = vmatpush3.bf16.msra.mxu0 (!%p340_p3), %v2122_v7  ;;  %v2138_v19 = vld [vmem:[%s2634_s2 + $0x28] sm:$0xff] (!%p340_p3)   ;;  %v2142_v22 = vld [vmem:[%s2634_s2 + $0x30] sm:$0xff] (!%p340_p3)   ;;  %v2146_v26 = vld [vmem:[%s2634_s2 + $0x38] sm:$0xff] (!%p340_p3)   ;;  %v543_v35 = vsub.s32 (!%p340_p3), 1, %v538_v31  ;;  %vm681_vm1 = vcmask (!%p340_p3), 130048   ;;  %s2216_s28 = smov (!%p340_p3), 112  }
   0xd   : > { %630 = vmatpush1.bf16.msra.mxu1 (!%p340_p3), %v2121_v6  ;;  %1949 = vmatprep.subr.bf16.mxu0 (!%p340_p3), %v2213_v2  ;;  %v2139_v20 = vld [vmem:[%s2636_s4 + $0x64] ss:$8 sps:$4 sm:$0xff] (!%p340_p3)   ;;  %v2141_v21 = vld [vmem:[%s2636_s4 + $0x60] ss:$8 sps:$4 sm:$0xff] (!%p340_p3)   ;;  %v2143_v23 = vld [vmem:[%s2636_s4 + $0x74] ss:$8 sps:$4 sm:$0xff] (!%p340_p3)  }
   0xe   : > { %631 = vmatprep.subr.bf16.mxu1 %v2123_v8  ;;  %s2648_s13 = smov (!%p385_p4, %s2203_s13), 1  ;;  %v2145_v24 = vld [vmem:[%s2636_s4 + $0x70] ss:$8 sps:$4 sm:$0xff]   ;;  %v535_v33 = vld [vmem:[%s2637_s5] sm:$0x3]  ;;  %vm744_vm2 = vcmask 1043456  }
   0xf   : > { %s2364_s23 = sshll.u32 %s2648_s13, 3  ;;  %v540_v34 = vrot.slane %v535_v33, %v539_v32  ;;  %v1841_v36 = vld [vmem:[%s2635_s3] ss:$0 sm:$0xff]  ;;  %v544_v39 = vrot.slane %v535_v33, %v543_v35  ;;  %s2217_s29 = smov 96   ;;  %v678_v55 = vand.u32 127, %v537_v30  ;;  %vm728_vm4 = vcmask 64512  }
  0x10   : > { %1950 = vmatpush3.bf16.msra.mxu0 %v2126_v10  ;;  %s395_s11 = scalar_lea.vmem %s2633_s1, %s2364_s23  ;;  %s391_s18 = scalar_lea.vmem %s2632_s0, %s2364_s23  ;;  %vm1590_vm5 = vcmask 261120   ;;  %vm1592_vm6 = vcmask 392192   ;;  %vm1594_vm7 = vcmask 523264   ;;  %vm1596_vm8 = vcmask 654336  }
  0x11   : > { %632 = vmatpush1.bf16.msra.mxu1 %v2125_v9  ;;  %1951 = vmatprep.subr.bf16.mxu0 %v2213_v2  ;;  %v405_v25 = vld [vmem:[%s395_s11] sm:$0xff]  ;;  %s2218_s13 = smov 80   ;;  %s2219_s30 = smov 64   ;;  %vm679_vm3 = vcmp.gt.s32.totalorder %v678_v55, %v538_v31  ;;  %vm1598_vm9 = vcmask 785408   ;;  %vm1600_vm10 = vcmask 916480  }
  0x12   : > { %633 = vmatprep.subr.bf16.mxu1 %v2127_v11  ;;  %v2391_v27 = vld [vmem:[%s391_s18] sm:$0xff]  ;;  %v518_v28 = vpack.c.bf16 %v405_v25, %v405_v25  ;;  %s2220_s11 = smov 48   ;;  %s2221_s12 = smov 32   ;;  %v2429_v56 = vsel %vm679_vm3, -1e+30, %v2213_v2 }
  0x13   : > { %v406_v29 = vpack.c.bf16 %v2391_v27, %v2391_v27  ;;  %s2222_s17 = smov 16   ;;  %s402_s27 = scalar_lea.vmem %s2642_s10, %s2364_s23 }
  0x14   : > { %1952 = vmatpush3.bf16.msra.mxu0 %v2130_v13 }
  0x15   : > { %634 = vmatpush1.bf16.msra.mxu1 %v2129_v12  ;;  %1953 = vmatprep.subr.bf16.mxu0 %v2213_v2 }
  0x16   : > { %635 = vmatprep.subr.bf16.mxu1 %v2131_v14 }
  0x18   : > { %1954 = vmatpush3.bf16.msra.mxu0 %v2134_v16 }
  0x19   : > { %636 = vmatpush1.bf16.msra.mxu1 %v2133_v15  ;;  %1955 = vmatprep.subr.bf16.mxu0 %v2213_v2 }
  0x1a   : > { %637 = vmatprep.subr.bf16.mxu1 %v2135_v17 }
  0x1c   : > { %1956 = vmatpush3.bf16.msra.mxu0 %v2138_v19 }
  0x1d   : > { %638 = vmatpush1.bf16.msra.mxu1 %v2137_v18  ;;  %1957 = vmatprep.subr.bf16.mxu0 %v2213_v2 }
  0x1e   : > { %639 = vmatprep.subr.bf16.mxu1 %v2139_v20 }
  0x20   : > { %1958 = vmatpush3.bf16.msra.mxu0 %v2142_v22 }
  0x21   : > { %640 = vmatpush1.bf16.msra.mxu1 %v2141_v21  ;;  %1959 = vmatprep.subr.bf16.mxu0 %v2213_v2 }
  0x22   : > { %641 = vmatprep.subr.bf16.mxu1 %v2143_v23 }
  0x24   : > { %1960 = vmatpush3.bf16.msra.mxu0 %v2146_v26 }
  0x25   : > { %642 = vmatpush1.bf16.msra.mxu1 %v2145_v24  ;;  %1989 = vmatprep.subr.bf16.mxu0 %v2213_v2 }
  0x26   : > { %1965 = vmatprep.subr.bf16.mxu1 %v2213_v2 }
  0x27   : > { %1962 = vmatmul.mubr.bf16.vlgmr.msra.gmra.mrb[0].mxu0 %v406_v29 }
  0x28   : > { %660 = vmatmul.mubr.bf16.vlgmr.msra.gmra.mrb[0].mxu1 %v518_v28  ;;  %1991 = vmatprep.mubr.msk.bf16.mxu0 %vm2215_vm0, %v2213_v2 }
  0x29   : > { %1967 = vmatprep.mubr.msk.bf16.mxu1 %vm2215_vm0, %v2213_v2 }
  0xfa   : > { %v512_v41 = vpop.f32.mrb[0].mxu0 }
  0xfb   : > { %v661_v37 = vpop.f32.mrb[0].mxu1  ;;  %v513_v42 = vadd.f32 %v1841_v36, %v512_v41  ;;  %v1963_v44 = vpop.f32.mrb[1].mxu0 }
  0xfc   : > { %v662_v38 = vadd.f32 %v661_v37, %v540_v34  ;;  %v663_v40 = vpop.f32.mrb[1].mxu1  ;;  %v515_v47 = vpop.f32.mrb[2].mxu0 }
  0xfd   : > { %v665_v43 = vpop.f32.mrb[2].mxu1  ;;  %v668_v48 = vmul.f32 0.25, %v513_v42  ;;  %v1964_v49 = vpop.f32.mrb[3].mxu0  ;;  %v664_v50 = vadd.f32 %v663_v40, %v544_v39 }
  0xfe   : > { %v670_v45 = vpack.c.bf16 %v662_v38, %v662_v38  ;;  %v666_v46 = vpop.f32.mrb[3].mxu1 }
  0xff   : > { %v669_v52 = vpack.c.bf16 %v668_v48, %v668_v48  ;;  %v2411_v53 = vpack.c.bf16 %v664_v50, %v664_v50 }
 0x100   : > { %792 = vrot.lane.b32.xlu1 %v670_v45, %s2216_s28  ;;  %v686_v51 = vsel %vm681_vm1, %v670_v45, 0 }
 0x101   : > { %1966 = vmatpush3.bf16.xpose.msra.mxu1 %v686_v51  ;;  %v746_v54 = vsel %vm744_vm2, %v2411_v53, 0 }
 0x102   : > { %1971 = vmatprep.subr.bf16.mxu1 %v2213_v2 }
 0x104   : > { %789 = vrot.lane.b32.xlu1 %v669_v52, %s2216_s28 }
 0x108   : > { %901 = vrot.lane.b32.xlu1 %v669_v52, %s2217_s29  ;;  %1968 = vmatmul.mubr.msk.bf16.vlgmr.msra.gmra.mrb[4].mxu1 %vm681_vm1, %v669_v52 }
 0x109   : > { %1972 = vmatpush3.bf16.msra.mxu1 %v746_v54  ;;  %1973 = vmatprep.mubr.msk.bf16.mxu1 %vm2215_vm0, %v2213_v2 }
 0x10a   : > { %1977 = vmatprep.subr.bf16.mxu1 %v2213_v2 }
 0x10c   : > { %1013 = vrot.lane.b32.xlu1 %v670_v45, %s2218_s13 }
 0x110   : > { %1011 = vrot.lane.b32.xlu1 %v669_v52, %s2218_s13 }
 0x114   : > { %1123 = vrot.lane.b32.xlu1 %v670_v45, %s2219_s30 }
 0x118   : > { %1121 = vrot.lane.b32.xlu1 %v669_v52, %s2219_s30 }
 0x11c   : > { %1233 = vrot.lane.b32.xlu1 %v670_v45, %s2220_s11 }
 0x120   : > { %1343 = vrot.lane.b32.xlu1 %v670_v45, %s2221_s12 }
 0x124   : > { %1453 = vrot.lane.b32.xlu1 %v670_v45, %s2222_s17 }
 0x172   : > { %v793_v5 = vpop.permute.xlu1 %792 }
 0x173   : > { %v798_v18 = vsel %vm681_vm1, %v793_v5, 0 }
 0x176   : > { %v790_v6 = vpop.permute.xlu1 %789 }
 0x17a   : > { %v902_v7 = vpop.permute.xlu1 %901 }
 0x17e   : > { %v1014_v9 = vpop.permute.xlu1 %1013 }
 0x17f   : > { %v1019_v15 = vsel %vm681_vm1, %v1014_v9, 0 }
 0x182   : > { %v1012_v12 = vpop.permute.xlu1 %1011 }
 0x186   : > { %v1124_v16 = vpop.permute.xlu1 %1123 }
 0x187   : > { %v1129_v20 = vsel %vm681_vm1, %v1124_v16, 0 }
 0x18a   : > { %v1122_v19 = vpop.permute.xlu1 %1121 }
 0x18e   : > { %v1234_v21 = vpop.permute.xlu1 %1233 }
 0x18f   : > { %v1239_v22 = vsel %vm681_vm1, %v1234_v21, 0 }
 0x192   : > { %v1344_v23 = vpop.permute.xlu1 %1343 }
 0x193   : > { %v1349_v25 = vsel %vm681_vm1, %v1344_v23, 0 }
 0x196   : > { %v1454_v26 = vpop.permute.xlu1 %1453 }
 0x197   : > { %v1459_v29 = vsel %vm681_vm1, %v1454_v26, 0 }
 0x1db   : > { %v722_v57 = vpop.f32.mrb[4].mxu1 }
 0x1dc   : > { %v723_v58 = vadd.f32 %v722_v57, %v2429_v56  ;;  %v1969_v59 = vpop.f32.mrb[5].mxu1 }
 0x1dd   : > { %v725_v60 = vpop.f32.mrb[6].mxu1 }
 0x1de   : > { %v1970_v61 = vpop.f32.mrb[7].mxu1  ;;  %v729_v62 = vsel %vm728_vm4, %v723_v58, -inf }
 0x1df   : > { %730 = vmax.xlane.f32.xlu0 %v729_v62 }
 0x26c   : > { %v731_v63 = vpop.xlane.xlu0 %730 }
 0x26d   : > { %v732_v0 = vsub.f32 %v723_v58, %v731_v63 }
 0x26f   : > { %v733_v1 = vmul.f32 1.442695, %v732_v0 }
 0x271   : > { %2155 = vpow2.f32 %v733_v1 }
 0x27b   : > { %v2156_v3 = vpop.eup %2155 }
 0x27c   : > { %v735_v4 = vsel %vm728_vm4, %v2156_v3, 0.0 }
 0x27d   : > { %736 = vadd.xlane.f32.xlu0 %v735_v4 }
 0x293   : > { %903 = vrot.lane.b32.xlu0 %v670_v45, %s2217_s29 }
 0x297   : > { %1231 = vrot.lane.b32.xlu0 %v669_v52, %s2220_s11 }
 0x29b   : > { %1341 = vrot.lane.b32.xlu0 %v669_v52, %s2221_s12 }
 0x29f   : > { %1451 = vrot.lane.b32.xlu0 %v669_v52, %s2222_s17 }
 0x30a   : > { %v737_v8 = vpop.xlane.xlu0 %736 }
 0x30b   : > { %2157 = vrcp.f32 %v737_v8 }
 0x30e   : > { %v904_v10 = vpop.permute.xlu0 %903 }
 0x30f   : > { %v909_v11 = vsel %vm681_vm1, %v904_v10, 0 }
 0x310   : > { %1990 = vmatpush3.bf16.xpose.msra.mxu0 %v909_v11 }
 0x311   : > { %2001 = vmatprep.subr.bf16.mxu0 %v2213_v2 }
 0x312   : > { %v1232_v24 = vpop.permute.xlu0 %1231 }
 0x315   : > { %v2158_v13 = vpop.eup %2157 }
 0x316   : > { %v739_v14 = vmul.f32 %v2158_v13, %v2156_v3  ;;  %v1342_v28 = vpop.permute.xlu0 %1341 }
 0x317   : > { %1992 = vmatmul.mubr.msk.bf16.vlgmr.msra.gmra.mrb[4].mxu0 %vm681_vm1, %v902_v7 }
 0x318   : > { %2002 = vmatpush3.bf16.xpose.msra.mxu0 %v1019_v15  ;;  %v740_v17 = vpack.c.bf16 %v739_v14, %v739_v14  ;;  %2003 = vmatprep.mubr.msk.bf16.mxu0 %vm2215_vm0, %v2213_v2 }
 0x319   : > { %2013 = vmatprep.subr.bf16.mxu0 %v2213_v2 }
 0x31a   : > { %1974 = vmatmul.mubr.msk.bf16.vlgmr.msra.gmra.mrb[8].mxu1 %vm728_vm4, %v740_v17  ;;  %v1452_v30 = vpop.permute.xlu0 %1451 }
 0x31b   : > { %1978 = vmatpush3.bf16.xpose.msra.mxu1 %v798_v18  ;;  %1979 = vmatprep.mubr.msk.bf16.mxu1 %vm2215_vm0, %v2213_v2 }
 0x31c   : > { %1983 = vmatprep.subr.bf16.mxu1 %v2213_v2 }
 0x31f   : > { %2004 = vmatmul.mubr.msk.bf16.vlgmr.msra.gmra.mrb[8].mxu0 %vm681_vm1, %v1012_v12 }
 0x320   : > { %2014 = vmatpush3.bf16.xpose.msra.mxu0 %v1129_v20  ;;  %2015 = vmatprep.mubr.msk.bf16.mxu0 %vm2215_vm0, %v2213_v2 }
 0x321   : > { %2025 = vmatprep.subr.bf16.mxu0 %v2213_v2 }
 0x322   : > { %1980 = vmatmul.mubr.msk.bf16.vlgmr.msra.gmra.mrb[12].mxu1 %vm681_vm1, %v790_v6 }
 0x323   : > { %1985 = vmatprep.mubr.msk.bf16.mxu1 %vm2215_vm0, %v2213_v2 }
 0x327   : > { %2016 = vmatmul.mubr.msk.bf16.vlgmr.msra.gmra.mrb[12].mxu0 %vm681_vm1, %v1122_v19 }
 0x328   : > { %2026 = vmatpush3.bf16.xpose.msra.mxu0 %v1239_v22  ;;  %2027 = vmatprep.mubr.msk.bf16.mxu0 %vm2215_vm0, %v2213_v2 }
 0x329   : > { %2037 = vmatprep.subr.bf16.mxu0 %v2213_v2 }
 0x32f   : > { %2028 = vmatmul.mubr.msk.bf16.vlgmr.msra.gmra.mrb[16].mxu0 %vm681_vm1, %v1232_v24 }
 0x330   : > { %2038 = vmatpush3.bf16.xpose.msra.mxu0 %v1349_v25  ;;  %2039 = vmatprep.mubr.msk.bf16.mxu0 %vm2215_vm0, %v2213_v2 }
 0x331   : > { %2049 = vmatprep.subr.bf16.mxu0 %v2213_v2 }
 0x337   : > { %2040 = vmatmul.mubr.msk.bf16.vlgmr.msra.gmra.mrb[20].mxu0 %vm681_vm1, %v1342_v28 }
 0x338   : > { %2050 = vmatpush3.bf16.xpose.msra.mxu0 %v1459_v29  ;;  %2051 = vmatprep.mubr.msk.bf16.mxu0 %vm2215_vm0, %v2213_v2 }
 0x339   : > { %2061 = vmatprep.subr.bf16.mxu0 %v2213_v2 }
 0x33f   : > { %2052 = vmatmul.mubr.msk.bf16.vlgmr.msra.gmra.mrb[24].mxu0 %vm681_vm1, %v1452_v30 }
 0x340   : > { %2077 = vmatprep.mubr.msk.bf16.mxu0 %vm2215_vm0, %v2213_v2 }
 0x3ea   : > { %v945_v31 = vpop.f32.mrb[4].mxu0 }
 0x3eb   : > { %v946_v32 = vadd.f32 %v945_v31, %v2429_v56  ;;  %v1993_v33 = vpop.f32.mrb[5].mxu0 }
 0x3ec   : > { %v948_v34 = vpop.f32.mrb[6].mxu0 }
 0x3ed   : > { %v2477_v35 = vpop.f32.mrb[8].mxu1  ;;  %v1994_v36 = vpop.f32.mrb[7].mxu0  ;;  %v951_v37 = vsel %vm728_vm4, %v946_v32, -inf }
 0x3ee   : > { %v1975_v38 = vpop.f32.mrb[9].mxu1  ;;  %952 = vmax.xlane.f32.xlu0 %v951_v37 }
 0x3ef   : > { %v785_v39 = vpop.f32.mrb[10].mxu1 }
 0x3f0   : > { %v1976_v40 = vpop.f32.mrb[11].mxu1 }
 0x3f2   : > { %v1055_v41 = vpop.f32.mrb[8].mxu0 }
 0x3f3   : > { %v1056_v42 = vadd.f32 %v1055_v41, %v2429_v56  ;;  %v2005_v43 = vpop.f32.mrb[9].mxu0 }
 0x3f4   : > { %v1058_v44 = vpop.f32.mrb[10].mxu0 }
 0x3f5   : > { %v834_v45 = vpop.f32.mrb[12].mxu1  ;;  %v2006_v46 = vpop.f32.mrb[11].mxu0  ;;  %v1061_v47 = vsel %vm728_vm4, %v1056_v42, -inf }
 0x3f6   : > { %v835_v48 = vadd.f32 %v834_v45, %v2429_v56  ;;  %v1981_v49 = vpop.f32.mrb[13].mxu1  ;;  %1062 = vmax.xlane.f32.xlu0 %v1061_v47 }
 0x3f7   : > { %v837_v50 = vpop.f32.mrb[14].mxu1 }
 0x3f8   : > { %v1982_v51 = vpop.f32.mrb[15].mxu1  ;;  %v840_v52 = vsel %vm728_vm4, %v835_v48, -inf }
 0x3f9   : > { %841 = vmax.xlane.f32.xlu1 %v840_v52 }
 0x3fa   : > { %v1165_v54 = vpop.f32.mrb[12].mxu0 }
 0x3fb   : > { %v1166_v55 = vadd.f32 %v1165_v54, %v2429_v56  ;;  %v2017_v57 = vpop.f32.mrb[13].mxu0 }
 0x3fc   : > { %v1168_v58 = vpop.f32.mrb[14].mxu0 }
 0x3fd   : > { %v2018_v59 = vpop.f32.mrb[15].mxu0  ;;  %v1171_v60 = vsel %vm728_vm4, %v1166_v55, -inf }
 0x3fe   : > { %1172 = vmax.xlane.f32.xlu1 %v1171_v60 }
 0x402   : > { %v1275_v61 = vpop.f32.mrb[16].mxu0 }
 0x403   : > { %v1276_v62 = vadd.f32 %v1275_v61, %v2429_v56  ;;  %v2029_v63 = vpop.f32.mrb[17].mxu0 }
 0x404   : > { %v1278_v0 = vpop.f32.mrb[18].mxu0 }
 0x405   : > { %v2030_v1 = vpop.f32.mrb[19].mxu0  ;;  %v1281_v3 = vsel %vm728_vm4, %v1276_v62, -inf }
 0x406   : > { %1282 = vmax.xlane.f32.xlu0 %v1281_v3 }
 0x40a   : > { %v1385_v4 = vpop.f32.mrb[20].mxu0 }
 0x40b   : > { %v1386_v5 = vadd.f32 %v1385_v4, %v2429_v56  ;;  %v2041_v6 = vpop.f32.mrb[21].mxu0 }
 0x40c   : > { %v1388_v7 = vpop.f32.mrb[22].mxu0 }
 0x40d   : > { %v2042_v8 = vpop.f32.mrb[23].mxu0  ;;  %v1391_v9 = vsel %vm728_vm4, %v1386_v5, -inf }
 0x40e   : > { %1392 = vmax.xlane.f32.xlu1 %v1391_v9 }
 0x412   : > { %v1495_v10 = vpop.f32.mrb[24].mxu0 }
 0x413   : > { %v1496_v11 = vadd.f32 %v1495_v10, %v2429_v56  ;;  %v2053_v12 = vpop.f32.mrb[25].mxu0 }
 0x414   : > { %v1498_v13 = vpop.f32.mrb[26].mxu0 }
 0x415   : > { %v2054_v14 = vpop.f32.mrb[27].mxu0  ;;  %v1501_v15 = vsel %vm728_vm4, %v1496_v11, -inf }
 0x416   : > { %1502 = vmax.xlane.f32.xlu0 %v1501_v15 }
 0x47b   : > { %v953_v16 = vpop.xlane.xlu0 %952 }
 0x47c   : > { %v954_v17 = vsub.f32 %v946_v32, %v953_v16 }
 0x47e   : > { %v955_v18 = vmul.f32 1.442695, %v954_v17 }
 0x480   : > { %2159 = vpow2.f32 %v955_v18 }
 0x483   : > { %v1063_v19 = vpop.xlane.xlu0 %1062 }
 0x484   : > { %v1064_v20 = vsub.f32 %v1056_v42, %v1063_v19 }
 0x486   : > { %v1065_v21 = vmul.f32 1.442695, %v1064_v20  ;;  %v842_v22 = vpop.xlane.xlu1 %841 }
 0x487   : > { %v843_v23 = vsub.f32 %v835_v48, %v842_v22 }
 0x488   : > { %2161 = vpow2.f32 %v1065_v21 }
 0x489   : > { %v844_v24 = vmul.f32 1.442695, %v843_v23 }
 0x48a   : > { %v2492_v25 = vpop.eup %2159 }
 0x48b   : > { %2163 = vpow2.f32 %v844_v24  ;;  %v1173_v56 = vpop.xlane.xlu1 %1172  ;;  %v957_v26 = vsel %vm728_vm4, %v2492_v25, 0.0 }
 0x48c   : > { %v1174_v28 = vsub.f32 %v1166_v55, %v1173_v56  ;;  %958 = vadd.xlane.f32.xlu0 %v957_v26 }
 0x48e   : > { %v1175_v29 = vmul.f32 1.442695, %v1174_v28 }
 0x490   : > { %2165 = vpow2.f32 %v1175_v29 }
 0x492   : > { %v2496_v30 = vpop.eup %2161 }
 0x493   : > { %v1283_v31 = vpop.xlane.xlu0 %1282  ;;  %v1067_v32 = vsel %vm728_vm4, %v2496_v30, 0.0 }
 0x494   : > { %v1284_v33 = vsub.f32 %v1276_v62, %v1283_v31  ;;  %1068 = vadd.xlane.f32.xlu1 %v1067_v32 }
 0x495   : > { %v2164_v34 = vpop.eup %2163 }
 0x496   : > { %v1285_v36 = vmul.f32 1.442695, %v1284_v33  ;;  %v846_v37 = vsel %vm728_vm4, %v2164_v34, 0.0 }
 0x498   : > { %2167 = vpow2.f32 %v1285_v36  ;;  %847 = vadd.xlane.f32.xlu1 %v846_v37 }
 0x49a   : > { %v2501_v38 = vpop.eup %2165 }
 0x49b   : > { %v1177_v39 = vsel %vm728_vm4, %v2501_v38, 0.0  ;;  %v1393_v42 = vpop.xlane.xlu1 %1392 }
 0x49c   : > { %1178 = vadd.xlane.f32.xlu0 %v1177_v39  ;;  %v1394_v43 = vsub.f32 %v1386_v5, %v1393_v42 }
 0x49e   : > { %v1395_v44 = vmul.f32 1.442695, %v1394_v43 }
 0x4a0   : > { %2169 = vpow2.f32 %v1395_v44 }
 0x4a2   : > { %v2505_v40 = vpop.eup %2167 }
 0x4a3   : > { %v1287_v41 = vsel %vm728_vm4, %v2505_v40, 0.0  ;;  %v1503_v45 = vpop.xlane.xlu0 %1502 }
 0x4a4   : > { %1288 = vadd.xlane.f32.xlu0 %v1287_v41  ;;  %v1504_v46 = vsub.f32 %v1496_v11, %v1503_v45  ;;  %v2147_v45 = vld [vmem:[%s2638_s6] sm:$0xff]  }
 0x4a5   : > { %2062 = vmatpush3.bf16.msra.mxu0 %v2147_v45 }
 0x4a6   : > { %v1505_v48 = vmul.f32 1.442695, %v1504_v46  ;;  %v2148_v46 = vld [vmem:[%s2638_s6 + $0x8] sm:$0xff]   ;;  %2063 = vmatprep.subr.bf16.mxu0 %v2213_v2 }
 0x4a8   : > { %2171 = vpow2.f32 %v1505_v48 }
 0x4a9   : > { %853 = vrot.lane.b32.xlu1 %v2411_v53, %s2216_s28  ;;  %2064 = vmatpush3.bf16.msra.mxu0 %v2148_v46 }
 0x4aa   : > { %v2515_v47 = vpop.eup %2169  ;;  %2065 = vmatprep.subr.bf16.mxu0 %v2213_v2 }
 0x4ab   : > { %v1397_v49 = vsel %vm728_vm4, %v2515_v47, 0.0 }
 0x4b2   : > { %v2519_v50 = vpop.eup %2171 }
 0x4b3   : > { %v1507_v51 = vsel %vm728_vm4, %v2519_v50, 0.0 }
 0x4ba   : > { %963 = vrot.lane.b32.xlu0 %v2411_v53, %s2217_s29 }
 0x4be   : > { %1073 = vrot.lane.b32.xlu0 %v2411_v53, %s2218_s13 }
 0x4cd   : > { %1398 = vadd.xlane.f32.xlu1 %v1397_v49 }
 0x4dd   : > { %1508 = vadd.xlane.f32.xlu0 %v1507_v51 }
 0x4de   : > { %1183 = vrot.lane.b32.xlu1 %v2411_v53, %s2219_s30 }
 0x4e2   : > { %1403 = vrot.lane.b32.xlu1 %v2411_v53, %s2221_s12 }
 0x4e6   : > { %1513 = vrot.lane.b32.xlu1 %v2411_v53, %s2222_s17 }
 0x4f3   : > { %1293 = vrot.lane.b32.xlu0 %v2411_v53, %s2220_s11 }
 0x519   : > { %v959_v55 = vpop.xlane.xlu0 %958 }
 0x521   : > { %v1069_v52 = vpop.xlane.xlu1 %1068 }
 0x525   : > { %v848_v54 = vpop.xlane.xlu1 %847 }
 0x526   : > { %2173 = vrcp.f32 %v848_v54  ;;  %v2151_v54 = vld [vmem:[%s2638_s6 + $0x20] sm:$0xff]  }
 0x527   : > { %2175 = vrcp.f32 %v959_v55  ;;  %v2152_v55 = vld [vmem:[%s2638_s6 + $0x28] sm:$0xff]  }
 0x528   : > { %2177 = vrcp.f32 %v1069_v52  ;;  %v2150_v52 = vld [vmem:[%s2638_s6 + $0x18] sm:$0xff]  }
 0x529   : > { %v854_v57 = vpop.permute.xlu1 %853  ;;  %v1179_v59 = vpop.xlane.xlu0 %1178 }
 0x52a   : > { %v859_v58 = vsel %vm744_vm2, %v854_v57, 0  ;;  %2179 = vrcp.f32 %v1179_v59  ;;  %v2153_v57 = vld [vmem:[%s2638_s6 + $0x30] sm:$0xff]  }
 0x52b   : > { %1984 = vmatpush3.bf16.msra.mxu1 %v859_v58 }
 0x52c   : > { %1995 = vmatprep.subr.bf16.mxu1 %v2213_v2 }
 0x530   : > { %v2174_v60 = vpop.eup %2173 }
 0x531   : > { %v850_v61 = vmul.f32 %v2174_v60, %v2164_v34  ;;  %v1289_v62 = vpop.xlane.xlu0 %1288  ;;  %v2176_v0 = vpop.eup %2175 }
 0x532   : > { %v961_v3 = vmul.f32 %v2176_v0, %v2492_v25  ;;  %v2178_v6 = vpop.eup %2177  ;;  %2181 = vrcp.f32 %v1289_v62  ;;  %v2154_v62 = vld [vmem:[%s2638_s6 + $0x38] sm:$0xff]  }
 0x533   : > { %v851_v63 = vpack.c.bf16 %v850_v61, %v850_v61  ;;  %v1071_v8 = vmul.f32 %v2178_v6, %v2496_v30 }
 0x534   : > { %v962_v5 = vpack.c.bf16 %v961_v3, %v961_v3  ;;  %v2180_v10 = vpop.eup %2179 }
 0x535   : > { %1986 = vmatmul.mubr.msk.bf16.vlgmr.msra.gmra.mrb[16].mxu1 %vm728_vm4, %v851_v63  ;;  %v964_v53 = vpop.permute.xlu0 %963  ;;  %v1072_v9 = vpack.c.bf16 %v1071_v8, %v1071_v8  ;;  %v1181_v12 = vmul.f32 %v2180_v10, %v2501_v38 }
 0x536   : > { %v969_v1 = vsel %vm744_vm2, %v964_v53, 0  ;;  %1997 = vmatprep.mubr.msk.bf16.mxu1 %vm2215_vm0, %v2213_v2 }
 0x537   : > { %1996 = vmatpush3.bf16.msra.mxu1 %v969_v1  ;;  %v1182_v15 = vpack.c.bf16 %v1181_v12, %v1181_v12 }
 0x538   : > { %2007 = vmatprep.subr.bf16.mxu1 %v2213_v2 }
 0x539   : > { %v1074_v4 = vpop.permute.xlu0 %1073 }
 0x53a   : > { %v1079_v7 = vsel %vm744_vm2, %v1074_v4, 0 }
 0x53c   : > { %v2182_v16 = vpop.eup %2181 }
 0x53d   : > { %1998 = vmatmul.mubr.msk.bf16.vlgmr.msra.gmra.mrb[20].mxu1 %vm728_vm4, %v962_v5  ;;  %v1291_v18 = vmul.f32 %v2182_v16, %v2505_v40 }
 0x53e   : > { %2008 = vmatpush3.bf16.msra.mxu1 %v1079_v7  ;;  %2009 = vmatprep.mubr.msk.bf16.mxu1 %vm2215_vm0, %v2213_v2 }
 0x53f   : > { %2019 = vmatprep.subr.bf16.mxu1 %v2213_v2  ;;  %v1292_v22 = vpack.c.bf16 %v1291_v18, %v1291_v18 }
 0x545   : > { %2010 = vmatmul.mubr.msk.bf16.vlgmr.msra.gmra.mrb[24].mxu1 %vm728_vm4, %v1072_v9 }
 0x546   : > { %2021 = vmatprep.mubr.msk.bf16.mxu1 %vm2215_vm0, %v2213_v2 }
 0x55a   : > { %v1399_v11 = vpop.xlane.xlu1 %1398 }
 0x55b   : > { %2183 = vrcp.f32 %v1399_v11 }
 0x55e   : > { %v1184_v13 = vpop.permute.xlu1 %1183 }
 0x55f   : > { %v1189_v14 = vsel %vm744_vm2, %v1184_v13, 0 }
 0x560   : > { %2020 = vmatpush3.bf16.msra.mxu1 %v1189_v14 }
 0x561   : > { %2031 = vmatprep.subr.bf16.mxu1 %v2213_v2 }
 0x562   : > { %v1404_v21 = vpop.permute.xlu1 %1403 }
 0x563   : > { %2022 = vmatmul.mubr.msk.bf16.vlgmr.msra.gmra.mrb[28].mxu1 %vm728_vm4, %v1182_v15  ;;  %v1409_v24 = vsel %vm744_vm2, %v1404_v21, 0  ;;  %v1882_v21 = vld [vmem:[%s2639_s7] ss:$0 sm:$0xff] }
 0x564   : > { %2033 = vmatprep.mubr.msk.bf16.mxu1 %vm2215_vm0, %v2213_v2 }
 0x565   : > { %v2184_v23 = vpop.eup %2183 }
 0x566   : > { %v1401_v25 = vmul.f32 %v2184_v23, %v2515_v47  ;;  %v1514_v56 = vpop.permute.xlu1 %1513  ;;  %v2149_v47 = vld [vmem:[%s2638_s6 + $0x10] sm:$0xff]  }
 0x567   : > { %v1519_v29 = vsel %vm744_vm2, %v1514_v56, 0  ;;  %2066 = vmatpush3.bf16.msra.mxu0 %v2149_v47 }
 0x568   : > { %v1402_v26 = vpack.c.bf16 %v1401_v25, %v1401_v25  ;;  %2067 = vmatprep.subr.bf16.mxu0 %v2213_v2 }
 0x56a   : > { %v1509_v17 = vpop.xlane.xlu0 %1508 }
 0x56b   : > { %2185 = vrcp.f32 %v1509_v17  ;;  %2068 = vmatpush3.bf16.msra.mxu0 %v2150_v52 }
 0x56c   : > { %2069 = vmatprep.subr.bf16.mxu0 %v2213_v2 }
 0x56e   : > { %v1294_v19 = vpop.permute.xlu0 %1293 }
 0x56f   : > { %v1299_v20 = vsel %vm744_vm2, %v1294_v19, 0  ;;  %2070 = vmatpush3.bf16.msra.mxu0 %v2151_v54 }
 0x570   : > { %2032 = vmatpush3.bf16.msra.mxu1 %v1299_v20  ;;  %2071 = vmatprep.subr.bf16.mxu0 %v2213_v2 }
 0x571   : > { %2043 = vmatprep.subr.bf16.mxu1 %v2213_v2 }
 0x573   : > { %2034 = vmatmul.mubr.msk.bf16.vlgmr.msra.gmra.mrb[32].mxu1 %vm728_vm4, %v1292_v22  ;;  %2072 = vmatpush3.bf16.msra.mxu0 %v2152_v55 }
 0x574   : > { %2044 = vmatpush3.bf16.msra.mxu1 %v1409_v24  ;;  %2045 = vmatprep.mubr.msk.bf16.mxu1 %vm2215_vm0, %v2213_v2 }
 0x575   : > { %2055 = vmatprep.subr.bf16.mxu1 %v2213_v2  ;;  %v2186_v28 = vpop.eup %2185  ;;  %2073 = vmatprep.subr.bf16.mxu0 %v2213_v2 }
 0x576   : > { %v1511_v30 = vmul.f32 %v2186_v28, %v2519_v50 }
 0x577   : > { %2074 = vmatpush3.bf16.msra.mxu0 %v2153_v57 }
 0x578   : > { %v1512_v31 = vpack.c.bf16 %v1511_v30, %v1511_v30  ;;  %2075 = vmatprep.subr.bf16.mxu0 %v2213_v2 }
 0x57b   : > { %2046 = vmatmul.mubr.msk.bf16.vlgmr.msra.gmra.mrb[36].mxu1 %vm728_vm4, %v1402_v26  ;;  %2076 = vmatpush3.bf16.msra.mxu0 %v2154_v62 }
 0x57c   : > { %2056 = vmatpush3.bf16.msra.mxu1 %v1519_v29  ;;  %2057 = vmatprep.mubr.msk.bf16.mxu1 %vm2215_vm0, %v2213_v2 }
 0x583   : > { %2058 = vmatmul.mubr.msk.bf16.vlgmr.msra.gmra.mrb[40].mxu1 %vm728_vm4, %v1512_v31 }
 0x608   : > { %v895_v32 = vpop.f32.mrb[16].mxu1 }
 0x609   : > { %1562 = vrot.lane.b32.xlu1 %v895_v32, %s2222_s17  ;;  %v1987_v33 = vpop.f32.mrb[17].mxu1 }
 0x60a   : > { %v898_v34 = vpop.f32.mrb[18].mxu1 }
 0x60b   : > { %v1988_v36 = vpop.f32.mrb[19].mxu1 }
 0x610   : > { %v1005_v37 = vpop.f32.mrb[20].mxu1 }
 0x611   : > { %1566 = vrot.lane.b32.xlu1 %v1005_v37, %s2221_s12  ;;  %v1999_v38 = vpop.f32.mrb[21].mxu1 }
 0x612   : > { %v1008_v39 = vpop.f32.mrb[22].mxu1 }
 0x613   : > { %v2000_v40 = vpop.f32.mrb[23].mxu1 }
 0x614   : > { %v1892_v40 = vld [vmem:[%s2641_s9] ss:$0 sm:$0xff] }
 0x618   : > { %v1115_v41 = vpop.f32.mrb[24].mxu1 }
 0x619   : > { %1570 = vrot.lane.b32.xlu0 %v1115_v41, %s2220_s11  ;;  %v2011_v42 = vpop.f32.mrb[25].mxu1 }
 0x61a   : > { %v1118_v43 = vpop.f32.mrb[26].mxu1 }
 0x61b   : > { %v2012_v44 = vpop.f32.mrb[27].mxu1 }
 0x636   : > { %v1225_v48 = vpop.f32.mrb[28].mxu1 }
 0x637   : > { %1574 = vrot.lane.b32.xlu1 %v1225_v48, %s2219_s30  ;;  %v2023_v49 = vpop.f32.mrb[29].mxu1 }
 0x638   : > { %v1228_v50 = vpop.f32.mrb[30].mxu1 }
 0x639   : > { %v2024_v51 = vpop.f32.mrb[31].mxu1 }
 0x646   : > { %v1335_v58 = vpop.f32.mrb[32].mxu1 }
 0x647   : > { %1578 = vrot.lane.b32.xlu0 %v1335_v58, %s2218_s13  ;;  %v2035_v59 = vpop.f32.mrb[33].mxu1 }
 0x648   : > { %v1338_v60 = vpop.f32.mrb[34].mxu1 }
 0x649   : > { %v2036_v61 = vpop.f32.mrb[35].mxu1 }
 0x64e   : > { %v1445_v63 = vpop.f32.mrb[36].mxu1 }
 0x64f   : > { %1582 = vrot.lane.b32.xlu1 %v1445_v63, %s2217_s29  ;;  %v2047_v0 = vpop.f32.mrb[37].mxu1 }
 0x650   : > { %v1448_v53 = vpop.f32.mrb[38].mxu1 }
 0x651   : > { %v2048_v1 = vpop.f32.mrb[39].mxu1 }
 0x656   : > { %v1555_v3 = vpop.f32.mrb[40].mxu1 }
 0x657   : > { %1586 = vrot.lane.b32.xlu0 %v1555_v3, %s2216_s28  ;;  %v2059_v4 = vpop.f32.mrb[41].mxu1 }
 0x658   : > { %v1558_v5 = vpop.f32.mrb[42].mxu1 }
 0x659   : > { %v2060_v6 = vpop.f32.mrb[43].mxu1 }
 0x67b   : > { %v1563_v7 = vpop.permute.xlu1 %1562 }
 0x67c   : > { %v1589_v10 = vsel %vm681_vm1, %v2477_v35, %v1563_v7 }
 0x683   : > { %v1567_v2 = vpop.permute.xlu1 %1566 }
 0x684   : > { %v1591_v11 = vsel %vm1590_vm5, %v1589_v10, %v1567_v2 }
 0x68b   : > { %v1571_v8 = vpop.permute.xlu0 %1570 }
 0x68c   : > { %v1593_v13 = vsel %vm1592_vm6, %v1591_v11, %v1571_v8 }
 0x6a9   : > { %v1575_v9 = vpop.permute.xlu1 %1574 }
 0x6aa   : > { %v1595_v15 = vsel %vm1594_vm7, %v1593_v13, %v1575_v9 }
 0x6b9   : > { %v1579_v12 = vpop.permute.xlu0 %1578 }
 0x6ba   : > { %v1597_v16 = vsel %vm1596_vm8, %v1595_v15, %v1579_v12 }
 0x6c1   : > { %v1583_v14 = vpop.permute.xlu1 %1582 }
 0x6c2   : > { %v1599_v17 = vsel %vm1598_vm9, %v1597_v16, %v1583_v14 }
 0x6c9   : > { %v1587_v18 = vpop.permute.xlu0 %1586 }
 0x6ca   : > { %v1601_v19 = vsel %vm1600_vm10, %v1599_v17, %v1587_v18 }
 0x6cb   : > { %v1602_v20 = vpack.c.bf16 %v1601_v19, %v1601_v19 }
 0x6cd   : > { %2078 = vmatmul.mubr.bf16.vlgmr.msra.gmra.mrb[28].mxu0 %v1602_v20 }
 0x7a0   : > { %v1708_v35 = vpop.f32.mrb[28].mxu0 }
 0x7a1   : > { %v1709_v22 = vadd.f32 %v1882_v21, %v1708_v35  ;;  %v2079_v23 = vpop.f32.mrb[29].mxu0 }
 0x7a2   : > { %v1711_v24 = vpop.f32.mrb[30].mxu0 }
 0x7a3   : > { %v1714_v25 = vadd.f32 %v1709_v22, %v2391_v27  ;;  %v2080_v56 = vpop.f32.mrb[31].mxu0  ;;  %v1891_v27 = vld [vmem:[%s2640_s8] ss:$0 sm:$0xff] }
 0x7a5   : > { %1717 = vadd.xlane.f32.xlu1 %v1714_v25  ;;  %v1721_v26 = vmul.f32 %v1714_v25, %v1714_v25 }
 0x7a7   : > { %1722 = vadd.xlane.f32.xlu0 %v1721_v26 }
 0x832   : > { %v1718_v28 = vpop.xlane.xlu1 %1717 }
 0x833   : > { %v1720_v29 = vmul.f32 0.0078125, %v1718_v28 }
 0x834   : > { %v1723_v30 = vpop.xlane.xlu0 %1722 }
 0x835   : > { %v1725_v31 = vmul.f32 %v1720_v29, %v1720_v29  ;;  %v1724_v32 = vmul.f32 0.0078125, %v1723_v30  ;;  %v1728_v37 = vsub.f32 %v1714_v25, %v1720_v29 }
 0x837   : > { %v1726_v33 = vsub.f32 %v1724_v32, %v1725_v31 }
 0x839   : > { %v1727_v34 = vmax.f32 %v1726_v33, 0.0 }
 0x83b   : > { %v1729_v36 = vadd.f32 1e-06, %v1727_v34 }
 0x83d   : > { %2187 = vrsqrt.f32 %v1729_v36 }
 0x847   : > { %v2188_v38 = vpop.eup %2187 }
 0x848   : > { %v1731_v39 = vmul.f32 %v2188_v38, %v1728_v37 }
 0x84a   : > { %v1738_v41 = vmul.f32 %v1891_v27, %v1731_v39 }
 0x84c   : > { %v1745_v42 = vadd.f32 %v1892_v40, %v1738_v41 }
 0x84e   : > { %1746 = vst [vmem:[%s402_s27] sm:$0xff] %v1745_v42 }
 0x84f PF: > { %s20_s15 = sadd.s32 1, %s2211_s15   ;;  %s2643_s13 = smov %s2207_s14 }
 0x850   : > { %p17_p5 = scmp.ge.s32.totalorder %s20_s15, 4   ;;  %s2644_s14 = smov %s2646_s16 }
 0x852   :  { %19 = sbr.rel (!%p17_p5) target bundleno = 2 (0x2), region = 93 }

// kernel: transformer_forward.7
= control target key start
LH: loop header
LB: loop body
LE: loop exit
PB: predicated region body
PF: predicated region fallthrough
CT: control target
= control target key end

     0   :  { %s3567_s0 = inlined_call_operand.vmem [shape: f32[2,8,128], index: 0, kind: input, shape index: {}, may-alias: {0,1}]   ;;  %s3568_s1 = inlined_call_operand.vmem [shape: f32[2,8,128], index: 1, kind: input, shape index: {}, may-alias: {0,1}]   ;;  %s3569_s2 = inlined_call_operand.hbm [shape: bf16[128,128], index: 2, kind: input, shape index: {}]   ;;  %s3570_s3 = inlined_call_operand.vmem [shape: f32[1,128], index: 3, kind: input, shape index: {}]   ;;  %s3571_s4 = inlined_call_operand.vmem [shape: bf16[128,256], index: 4, kind: input, shape index: {}]   ;;  %s3572_s5 = inlined_call_operand.vmem [shape: f32[1,256], index: 5, kind: input, shape index: {}]   ;;  %s3573_s6 = inlined_call_operand.hbm [shape: bf16[128,128], index: 6, kind: input, shape index: {}]   ;;  %s3574_s7 = inlined_call_operand.vmem [shape: f32[1,128], index: 7, kind: input, shape index: {}]   ;;  %s3575_s8 = inlined_call_operand.vmem [shape: f32[1,128], index: 8, kind: input, shape index: {}]   ;;  %s3576_s9 = inlined_call_operand.vmem [shape: f32[1,128], index: 9, kind: input, shape index: {}]   ;;  %s3577_s10 = inlined_call_operand.vmem [shape: bf16[128,256], index: 10, kind: input, shape index: {}]   ;;  %s3578_s11 = inlined_call_operand.vmem [shape: f32[1,256], index: 11, kind: input, shape index: {}]   ;;  %s3579_s12 = inlined_call_operand.vmem [shape: bf16[256,128], index: 12, kind: input, shape index: {}]   ;;  %s3580_s13 = inlined_call_operand.vmem [shape: f32[1,128], index: 13, kind: input, shape index: {}]   ;;  %s3581_s14 = inlined_call_operand.vmem [shape: f32[1,128], index: 14, kind: input, shape index: {}]   ;;  %s3582_s15 = inlined_call_operand.vmem [shape: f32[1,128], index: 15, kind: input, shape index: {}]   ;;  %s3583_s16 = inlined_call_operand.vmem [shape: f32[2,8,128], index: 16, kind: output, shape index: {}]  }
   0x1   :  { %3589 = sst [smem:[#allocation11_spill]] %s3567_s0 }
   0x2   :  { %3590 = sst [smem:[#allocation12_spill]] %s3582_s15 }
   0x3   :  { %3591 = sst [smem:[#allocation13_spill]] %s3583_s16 }
   0x4   :  { %21 = vsyncpa [#allocation3], 0 }
   0x5   :  { %22 = vsyncpa [#allocation5], 0  ;;  %s3068_s21 = smov 0   ;;  %s3070_s22 = smov 0  }
   0x6   :  { %s3072_s23 = smov 0  }
   0x7 LB: > { %3592 = sst [smem:[#allocation8_spill]] %s2963_s22  ;;  %s2399_s24 = sadd.s32 4294967295, %s2967_s23   ;;  %s2967_s23 = sphi %s3072_s23, %s28_s23   ;;  %s2963_s22 = sphi %s3070_s22, %s3605_s22   ;;  %s2959_s21 = sphi %s3068_s21, %s3604_s21  }
   0x8   : > { %3593 = sst [smem:[#allocation9_spill]] %s2967_s23  ;;  %s40_s25 = sadd.s32 1, %s2963_s22 }
   0x9   : > { %p42_p0 = scmp.ge.s32.totalorder %s40_s25, 2  ;;  %p2401_p1 = scmp.ge.s32.totalorder %s2967_s23, 1 }
   0xa   : > { %p421_p2 = scmp.lt.s32.totalorder %s2967_s23, 3  ;;  %p3093_p4 = scmp.eq.s32.totalorder %s2399_s24, 0 }
   0xb   : > { %s3607_s25 = smov (%p42_p0, %s40_s25), 0  ;;  %s2969_s28 = smov [#allocation2]  }
   0xc   : > { %3594 = sst [smem:[#allocation10_spill]] %s3607_s25  ;;  %p3089_p3 = pnand %p2401_p1, %p421_p2 }
   0xd   : > { %s3596_s27 = scalar_select %p3093_p4, 1, 0 }
   0xe   : > { %s3595_s26 = scalar_select %p3089_p3, 1, 0 }
   0xf   : > { %p2716_p5 = pneg %p3089_p3  ;;  %s433_s29 = sshll.u32 %s2969_s28, 4  ;;  %s434_s29 = int_to_ptr.vmem [resolvable:$true] %s433_s29 }
  0x10   : > { %s2970_s0 = smov [#allocation4]   ;;  %s2881_s20 = scalar_lea.hbm %s3569_s2, 1024 }
  0x11   : > { %p3101_p6 = pnand %p3093_p4, %p2716_p5  ;;  %s455_s17 = sshll.u32 %s2970_s0, 4  ;;  %s3105_s17 = int_to_ptr.vmem [resolvable:$true] %s455_s17 }
  0x12   : > { %p2882_p7 = scmp.ne.s32.totalorder %s3569_s2, %s2881_s20  ;;  %p2888_p11 = scmp.lt.u32.totalorder %s2881_s20, %s3569_s2 }
  0x13   : > { %p2883_p8 = pneg %p3101_p6 }
  0x15   : > { %p2884_p9 = pnand %p2883_p8, %p2882_p7 }
  0x17   : > { %p2885_p10 = pneg %p2884_p9 }
  0x19   : > { %p2890_p12 = pnand %p2888_p11, %p2885_p10 }
  0x1b   : > { %2893 = shalt.err (!%p2890_p12)
}
  0x1c   : > { %s2894_s0 = scalar_lea.vmem %s434_s29, 1024  ;;  %p2902_p2 = scmp.lt.s32.totalorder %s434_s29, %s434_s29 }
  0x1d   : > { %p2895_p13 = scmp.ne.s32.totalorder %s434_s29, %s2894_s0  ;;  %p2903_p5 = scmp.lt.s32.totalorder %s2894_s0, %s2894_s0 }
  0x1f   : > { %p2897_p0 = pnand %p2895_p13, %p2883_p8  ;;  %p2904_p4 = por %p2903_p5, %p2902_p2 }
  0x21   : > { %p2898_p1 = pneg %p2897_p0 }
  0x23   : > { %p2905_p3 = pnand %p2904_p4, %p2898_p1 }
  0x25   : > { %2908 = shalt.err (!%p2905_p3)
}
  0x26   : > { %s2971_s25 = smov 64   ;;  %s2972_s18 = smov 4  }
  0x27   : > { %2719 = dma.hbm_to_vmem [thread:$0]  (!%p3101_p6), %s3569_s2, 1024, %s434_s29, [#allocation3], %s2971_s25, %s2971_s25, %s2972_s18  }
  0x28   : > { %s2909_s28 = scalar_lea.hbm %s3573_s6, 1024 }
  0x29   : > { %p2910_p7 = scmp.ne.s32.totalorder %s3573_s6, %s2909_s28  ;;  %p2916_p9 = scmp.lt.u32.totalorder %s2909_s28, %s3573_s6 }
  0x2b   : > { %p2912_p3 = pnand %p2910_p7, %p2883_p8 }
  0x2d   : > { %p2913_p4 = pneg %p2912_p3 }
  0x2f   : > { %p2918_p10 = pnand %p2916_p9, %p2913_p4 }
  0x31   : > { %2921 = shalt.err (!%p2918_p10)
}
  0x32   : > { %s2922_s29 = scalar_lea.vmem %s3105_s17, 1024  ;;  %p2930_p0 = scmp.lt.s32.totalorder %s3105_s17, %s3105_s17 }
  0x33   : > { %p2923_p11 = scmp.ne.s32.totalorder %s3105_s17, %s2922_s29  ;;  %p2931_p1 = scmp.lt.s32.totalorder %s2922_s29, %s2922_s29 }
  0x35   : > { %p2925_p12 = pnand %p2923_p11, %p2883_p8  ;;  %p2932_p2 = por %p2931_p1, %p2930_p0 }
  0x37   : > { %p2926_p13 = pneg %p2925_p12 }
  0x39   : > { %p2933_p5 = pnand %p2932_p2, %p2926_p13 }
  0x3b   : > { %2936 = shalt.err (!%p2933_p5)
}
  0x3c   : > { %2722 = dma.hbm_to_vmem [thread:$0]  (!%p3101_p6), %s3573_s6, 1024, %s3105_s17, [#allocation5], %s2971_s25, %s2971_s25, %s2972_s18  }
  0x3d   : > { %p3598_p7 = scmp.ne.s32.totalorder %s3595_s26, 0 }
  0x3e   : > { %p3599_p3 = scmp.ne.s32.totalorder (!%p3598_p7), %s3596_s27, 0 }
  0x3f   : > { %515 = sbr.rel (%p3598_p7) target bundleno = 2800 (0xaf0), region = 84 }
  0x46   : > { %2950 = dma.done.wait (%p3599_p3), [#allocation3], 1024  }
  0x47   : > { %2952 = vsyncadd (%p3599_p3), [#allocation3], 4294966272 }
  0x48   : > { %2954 = dma.done.wait (%p3599_p3), [#allocation5], 1024  }
  0x49   : > { %2956 = vsyncadd (%p3599_p3), [#allocation5], 4294966272  ;;  %v2973_v0 = vmov 0.0   ;;  %v2974_v1 = vmov 0   ;;  %vm2975_vm0 = vmmov 0   ;;  %v2768_v4 = vld [vmem:[#allocation2] sm:$0xff]   ;;  %v729_v30 = vlaneseq }
  0x4a   : > { %2572 = vmatprep.subr.bf16.mxu0 %v2973_v0  ;;  %851 = vmatprep.mubr.bf16.mxu1 %v2974_v1  ;;  %v2765_v2 = vld [vmem:[%s3571_s4 + $0x4] ss:$8 sps:$4 sm:$0xff]   ;;  %v2767_v3 = vld [vmem:[%s3571_s4] ss:$8 sps:$4 sm:$0xff]   ;;  %v2769_v5 = vld [vmem:[%s3571_s4 + $0x14] ss:$8 sps:$4 sm:$0xff]  }
  0x4b   : > { %2588 = vmatprep.mubr.msk.bf16.mxu0 %vm2975_vm0, %v2973_v0  ;;  %819 = vmatprep.subr.bf16.mxu1 %v2765_v2  ;;  %v2771_v6 = vld [vmem:[%s3571_s4 + $0x10] ss:$8 sps:$4 sm:$0xff]   ;;  %v2772_v7 = vld [vmem:[#allocation2 + $0x8] sm:$0xff]   ;;  %v2777_v11 = vld [vmem:[%s3571_s4 + $0x34] ss:$8 sps:$4 sm:$0xff]   ;;  %p577_p6 = scmp.lt.s32.totalorder %s2959_s21, 1 }
  0x4c   : > { %820 = vmatpush1.bf16.msra.mxu1 %v2767_v3  ;;  %2573 = vmatpush3.bf16.msra.mxu0 %v2768_v4  ;;  %v2773_v8 = vld [vmem:[%s3571_s4 + $0x24] ss:$8 sps:$4 sm:$0xff]   ;;  %v2775_v9 = vld [vmem:[%s3571_s4 + $0x20] ss:$8 sps:$4 sm:$0xff]   ;;  %v2776_v10 = vld [vmem:[#allocation2 + $0x10] sm:$0xff]   ;;  %s3600_s17 = sld [smem:[#allocation11_spill]] }
  0x4d   : > { %821 = vmatprep.subr.bf16.mxu1 %v2769_v5  ;;  %2574 = vmatprep.subr.bf16.mxu0 %v2973_v0  ;;  %v2779_v12 = vld [vmem:[%s3571_s4 + $0x30] ss:$8 sps:$4 sm:$0xff]   ;;  %v2781_v14 = vld [vmem:[%s3571_s4 + $0x44] ss:$8 sps:$4 sm:$0xff]   ;;  %v2783_v15 = vld [vmem:[%s3571_s4 + $0x40] ss:$8 sps:$4 sm:$0xff]  }
  0x4e   : > { %v2780_v13 = vld [vmem:[#allocation2 + $0x18] sm:$0xff]   ;;  %v2784_v16 = vld [vmem:[#allocation2 + $0x20] sm:$0xff]   ;;  %s3609_s21 = smov (!%p577_p6, %s2959_s21), 1  ;;  %v2788_v19 = vld [vmem:[#allocation2 + $0x28] sm:$0xff]   ;;  %v3245_v31 = vshrl.u32 %v729_v30, 7  ;;  %vm864_vm1 = vcmask 130048  }
  0x4f   : > { %v2785_v17 = vld [vmem:[%s3571_s4 + $0x54] ss:$8 sps:$4 sm:$0xff]   ;;  %v2787_v18 = vld [vmem:[%s3571_s4 + $0x50] ss:$8 sps:$4 sm:$0xff]   ;;  %v2789_v20 = vld [vmem:[%s3571_s4 + $0x64] ss:$8 sps:$4 sm:$0xff]  }
  0x50   : > { %822 = vmatpush1.bf16.msra.mxu1 %v2771_v6  ;;  %2575 = vmatpush3.bf16.msra.mxu0 %v2772_v7  ;;  %s3213_s24 = sshll.u32 %s3609_s21, 3  ;;  %v2791_v21 = vld [vmem:[%s3571_s4 + $0x60] ss:$8 sps:$4 sm:$0xff]   ;;  %v2792_v22 = vld [vmem:[#allocation2 + $0x30] sm:$0xff]   ;;  %v2796_v26 = vld [vmem:[#allocation2 + $0x38] sm:$0xff]   ;;  %v731_v32 = vsub.s32 0, %v3245_v31 }
  0x51   : > { %823 = vmatprep.subr.bf16.mxu1 %v2773_v8  ;;  %2576 = vmatprep.subr.bf16.mxu0 %v2973_v0  ;;  %v2793_v23 = vld [vmem:[%s3571_s4 + $0x74] ss:$8 sps:$4 sm:$0xff]   ;;  %s587_s21 = scalar_lea.vmem %s3568_s1, %s3213_s24  ;;  %v2795_v24 = vld [vmem:[%s3571_s4 + $0x70] ss:$8 sps:$4 sm:$0xff]   ;;  %v727_v33 = vld [vmem:[%s3572_s5] sm:$0x3] }
  0x52   : > { %s583_s27 = scalar_lea.vmem %s3600_s17, %s3213_s24  ;;  %v597_v25 = vld [vmem:[%s587_s21] sm:$0xff]  ;;  %v732_v34 = vrot.slane %v727_v33, %v731_v32  ;;  %v735_v35 = vsub.s32 1, %v3245_v31  ;;  %s2976_s0 = smov 112   ;;  %vm927_vm2 = vcmask 1043456   ;;  %vm911_vm3 = vcmask 64512  }
  0x53   : > { %v3234_v27 = vld [vmem:[%s583_s27] sm:$0xff]  ;;  %v710_v28 = vpack.c.bf16 %v597_v25, %v597_v25  ;;  %s2977_s29 = smov 96   ;;  %s2978_s15 = smov 80   ;;  %vm1773_vm4 = vcmask 261120   ;;  %vm1775_vm5 = vcmask 392192   ;;  %vm1777_vm6 = vcmask 523264  }
  0x54   : > { %824 = vmatpush1.bf16.msra.mxu1 %v2775_v9  ;;  %2577 = vmatpush3.bf16.msra.mxu0 %v2776_v10  ;;  %v598_v29 = vpack.c.bf16 %v3234_v27, %v3234_v27  ;;  %v2411_v36 = vld [vmem:[%s3570_s3] ss:$0 sm:$0xff]  ;;  %v736_v39 = vrot.slane %v727_v33, %v735_v35  ;;  %s2979_s16 = smov 64   ;;  %s2980_s23 = smov 48   ;;  %vm1779_vm7 = vcmask 654336   ;;  %vm1781_vm8 = vcmask 785408  }
  0x55   : > { %825 = vmatprep.subr.bf16.mxu1 %v2777_v11  ;;  %2578 = vmatprep.subr.bf16.mxu0 %v2973_v0  ;;  %s2981_s21 = smov 32   ;;  %s2982_s26 = smov 16   ;;  %vm1783_vm9 = vcmask 916480  }
  0x56   : > { %s3602_s17 = sld [smem:[#allocation13_spill]] }
  0x58   : > { %826 = vmatpush1.bf16.msra.mxu1 %v2779_v12  ;;  %2579 = vmatpush3.bf16.msra.mxu0 %v2780_v13 }
  0x59   : > { %827 = vmatprep.subr.bf16.mxu1 %v2781_v14  ;;  %2580 = vmatprep.subr.bf16.mxu0 %v2973_v0 }
  0x5c   : > { %828 = vmatpush1.bf16.msra.mxu1 %v2783_v15  ;;  %2581 = vmatpush3.bf16.msra.mxu0 %v2784_v16  ;;  %s594_s27 = scalar_lea.vmem %s3602_s17, %s3213_s24 }
  0x5d   : > { %829 = vmatprep.subr.bf16.mxu1 %v2785_v17  ;;  %2582 = vmatprep.subr.bf16.mxu0 %v2973_v0 }
  0x60   : > { %830 = vmatpush1.bf16.msra.mxu1 %v2787_v18  ;;  %2583 = vmatpush3.bf16.msra.mxu0 %v2788_v19 }
  0x61   : > { %831 = vmatprep.subr.bf16.mxu1 %v2789_v20  ;;  %2584 = vmatprep.subr.bf16.mxu0 %v2973_v0 }
  0x64   : > { %832 = vmatpush1.bf16.msra.mxu1 %v2791_v21  ;;  %2585 = vmatpush3.bf16.msra.mxu0 %v2792_v22 }
  0x65   : > { %833 = vmatprep.subr.bf16.mxu1 %v2793_v23  ;;  %2586 = vmatprep.subr.bf16.mxu0 %v2973_v0 }
  0x68   : > { %834 = vmatpush1.bf16.msra.mxu1 %v2795_v24  ;;  %2587 = vmatpush3.bf16.msra.mxu0 %v2796_v26 }
  0x69   : > { %2592 = vmatprep.subr.bf16.mxu1 %v2973_v0  ;;  %2616 = vmatprep.subr.bf16.mxu0 %v2973_v0 }
  0x6b   : > { %852 = vmatmul.mubr.bf16.vlgmr.msra.gmra.mrb[0].mxu1 %v710_v28  ;;  %2589 = vmatmul.mubr.bf16.vlgmr.msra.gmra.mrb[0].mxu0 %v598_v29 }
  0x6c   : > { %2594 = vmatprep.mubr.msk.bf16.mxu1 %vm2975_vm0, %v2973_v0  ;;  %2618 = vmatprep.mubr.msk.bf16.mxu0 %vm2975_vm0, %v2973_v0 }
 0x13e   : > { %v853_v37 = vpop.f32.mrb[0].mxu1  ;;  %v704_v41 = vpop.f32.mrb[0].mxu0 }
 0x13f   : > { %v854_v38 = vadd.f32 %v853_v37, %v732_v34  ;;  %v855_v40 = vpop.f32.mrb[1].mxu1  ;;  %v705_v42 = vadd.f32 %v2411_v36, %v704_v41  ;;  %v2590_v44 = vpop.f32.mrb[1].mxu0 }
 0x140   : > { %v857_v43 = vpop.f32.mrb[2].mxu1  ;;  %v707_v47 = vpop.f32.mrb[2].mxu0  ;;  %v856_v50 = vadd.f32 %v855_v40, %v736_v39 }
 0x141   : > { %v862_v45 = vpack.c.bf16 %v854_v38, %v854_v38  ;;  %v858_v46 = vpop.f32.mrb[3].mxu1  ;;  %v860_v48 = vmul.f32 0.25, %v705_v42  ;;  %v2591_v49 = vpop.f32.mrb[3].mxu0 }
 0x142   : > { %v3262_v53 = vpack.c.bf16 %v856_v50, %v856_v50 }
 0x143   : > { %975 = vrot.lane.b32.xlu1 %v862_v45, %s2976_s0  ;;  %v869_v51 = vsel %vm864_vm1, %v862_v45, 0  ;;  %v861_v52 = vpack.c.bf16 %v860_v48, %v860_v48 }
 0x144   : > { %2593 = vmatpush3.bf16.xpose.msra.mxu1 %v869_v51  ;;  %v929_v54 = vsel %vm927_vm2, %v3262_v53, 0 }
 0x145   : > { %2598 = vmatprep.subr.bf16.mxu1 %v2973_v0 }
 0x147   : > { %972 = vrot.lane.b32.xlu1 %v861_v52, %s2976_s0 }
 0x14b   : > { %1084 = vrot.lane.b32.xlu1 %v861_v52, %s2977_s29  ;;  %2595 = vmatmul.mubr.msk.bf16.vlgmr.msra.gmra.mrb[4].mxu1 %vm864_vm1, %v861_v52 }
 0x14c   : > { %2599 = vmatpush3.bf16.msra.mxu1 %v929_v54  ;;  %2600 = vmatprep.mubr.msk.bf16.mxu1 %vm2975_vm0, %v2973_v0 }
 0x14d   : > { %2604 = vmatprep.subr.bf16.mxu1 %v2973_v0 }
 0x14f   : > { %1196 = vrot.lane.b32.xlu1 %v862_v45, %s2978_s15 }
 0x153   : > { %1194 = vrot.lane.b32.xlu1 %v861_v52, %s2978_s15 }
 0x157   : > { %1306 = vrot.lane.b32.xlu1 %v862_v45, %s2979_s16 }
 0x15b   : > { %1304 = vrot.lane.b32.xlu1 %v861_v52, %s2979_s16 }
 0x15f   : > { %1416 = vrot.lane.b32.xlu1 %v862_v45, %s2980_s23 }
 0x163   : > { %1526 = vrot.lane.b32.xlu1 %v862_v45, %s2981_s21 }
 0x167   : > { %1636 = vrot.lane.b32.xlu1 %v862_v45, %s2982_s26 }
 0x1b5   : > { %v976_v3 = vpop.permute.xlu1 %975 }
 0x1b6   : > { %v981_v16 = vsel %vm864_vm1, %v976_v3, 0 }
 0x1b9   : > { %v973_v4 = vpop.permute.xlu1 %972 }
 0x1bd   : > { %v1085_v5 = vpop.permute.xlu1 %1084 }
 0x1c1   : > { %v1197_v7 = vpop.permute.xlu1 %1196 }
 0x1c2   : > { %v1202_v13 = vsel %vm864_vm1, %v1197_v7, 0 }
 0x1c5   : > { %v1195_v10 = vpop.permute.xlu1 %1194 }
 0x1c9   : > { %v1307_v14 = vpop.permute.xlu1 %1306 }
 0x1ca   : > { %v1312_v18 = vsel %vm864_vm1, %v1307_v14, 0 }
 0x1cd   : > { %v1305_v17 = vpop.permute.xlu1 %1304 }
 0x1d1   : > { %v1417_v19 = vpop.permute.xlu1 %1416 }
 0x1d2   : > { %v1422_v20 = vsel %vm864_vm1, %v1417_v19, 0 }
 0x1d5   : > { %v1527_v21 = vpop.permute.xlu1 %1526 }
 0x1d6   : > { %v1532_v23 = vsel %vm864_vm1, %v1527_v21, 0 }
 0x1d9   : > { %v1637_v24 = vpop.permute.xlu1 %1636 }
 0x1da   : > { %v1642_v26 = vsel %vm864_vm1, %v1637_v24, 0 }
 0x21e   : > { %v905_v55 = vpop.f32.mrb[4].mxu1 }
 0x21f   : > { %v2596_v56 = vpop.f32.mrb[5].mxu1  ;;  %v912_v57 = vsel %vm911_vm3, %v905_v55, -inf }
 0x220   : > { %913 = vmax.xlane.f32.xlu0 %v912_v57  ;;  %v908_v58 = vpop.f32.mrb[6].mxu1 }
 0x221   : > { %v2597_v59 = vpop.f32.mrb[7].mxu1 }
 0x2ad   : > { %v914_v60 = vpop.xlane.xlu0 %913 }
 0x2ae   : > { %v915_v61 = vsub.f32 %v905_v55, %v914_v60 }
 0x2b0   : > { %v916_v62 = vmul.f32 1.442695, %v915_v61 }
 0x2b2   : > { %2845 = vpow2.f32 %v916_v62 }
 0x2bc   : > { %v2846_v63 = vpop.eup %2845 }
 0x2bd   : > { %v918_v2 = vsel %vm911_vm3, %v2846_v63, 0.0 }
 0x2be   : > { %919 = vadd.xlane.f32.xlu0 %v918_v2 }
 0x2d4   : > { %1086 = vrot.lane.b32.xlu0 %v862_v45, %s2977_s29 }
 0x2d8   : > { %1414 = vrot.lane.b32.xlu0 %v861_v52, %s2980_s23 }
 0x2dc   : > { %1524 = vrot.lane.b32.xlu0 %v861_v52, %s2981_s21 }
 0x2e0   : > { %1634 = vrot.lane.b32.xlu0 %v861_v52, %s2982_s26 }
 0x34b   : > { %v920_v6 = vpop.xlane.xlu0 %919 }
 0x34c   : > { %2847 = vrcp.f32 %v920_v6 }
 0x34f   : > { %v1087_v8 = vpop.permute.xlu0 %1086 }
 0x350   : > { %v1092_v9 = vsel %vm864_vm1, %v1087_v8, 0 }
 0x351   : > { %2617 = vmatpush3.bf16.xpose.msra.mxu0 %v1092_v9 }
 0x352   : > { %2628 = vmatprep.subr.bf16.mxu0 %v2973_v0 }
 0x353   : > { %v1415_v22 = vpop.permute.xlu0 %1414 }
 0x356   : > { %v2848_v11 = vpop.eup %2847 }
 0x357   : > { %v922_v12 = vmul.f32 %v2848_v11, %v2846_v63  ;;  %v1525_v25 = vpop.permute.xlu0 %1524 }
 0x358   : > { %2619 = vmatmul.mubr.msk.bf16.vlgmr.msra.gmra.mrb[4].mxu0 %vm864_vm1, %v1085_v5 }
 0x359   : > { %2629 = vmatpush3.bf16.xpose.msra.mxu0 %v1202_v13  ;;  %v923_v15 = vpack.c.bf16 %v922_v12, %v922_v12  ;;  %2630 = vmatprep.mubr.msk.bf16.mxu0 %vm2975_vm0, %v2973_v0 }
 0x35a   : > { %2640 = vmatprep.subr.bf16.mxu0 %v2973_v0 }
 0x35b   : > { %2601 = vmatmul.mubr.msk.bf16.vlgmr.msra.gmra.mrb[8].mxu1 %vm911_vm3, %v923_v15  ;;  %v1635_v28 = vpop.permute.xlu0 %1634 }
 0x35c   : > { %2605 = vmatpush3.bf16.xpose.msra.mxu1 %v981_v16  ;;  %2606 = vmatprep.mubr.msk.bf16.mxu1 %vm2975_vm0, %v2973_v0 }
 0x35d   : > { %2610 = vmatprep.subr.bf16.mxu1 %v2973_v0 }
 0x360   : > { %2631 = vmatmul.mubr.msk.bf16.vlgmr.msra.gmra.mrb[8].mxu0 %vm864_vm1, %v1195_v10 }
 0x361   : > { %2641 = vmatpush3.bf16.xpose.msra.mxu0 %v1312_v18  ;;  %2642 = vmatprep.mubr.msk.bf16.mxu0 %vm2975_vm0, %v2973_v0 }
 0x362   : > { %2652 = vmatprep.subr.bf16.mxu0 %v2973_v0 }
 0x363   : > { %2607 = vmatmul.mubr.msk.bf16.vlgmr.msra.gmra.mrb[12].mxu1 %vm864_vm1, %v973_v4 }
 0x364   : > { %2612 = vmatprep.mubr.msk.bf16.mxu1 %vm2975_vm0, %v2973_v0 }
 0x368   : > { %2643 = vmatmul.mubr.msk.bf16.vlgmr.msra.gmra.mrb[12].mxu0 %vm864_vm1, %v1305_v17 }
 0x369   : > { %2653 = vmatpush3.bf16.xpose.msra.mxu0 %v1422_v20  ;;  %2654 = vmatprep.mubr.msk.bf16.mxu0 %vm2975_vm0, %v2973_v0 }
 0x36a   : > { %2664 = vmatprep.subr.bf16.mxu0 %v2973_v0 }
 0x370   : > { %2655 = vmatmul.mubr.msk.bf16.vlgmr.msra.gmra.mrb[16].mxu0 %vm864_vm1, %v1415_v22 }
 0x371   : > { %2665 = vmatpush3.bf16.xpose.msra.mxu0 %v1532_v23  ;;  %2666 = vmatprep.mubr.msk.bf16.mxu0 %vm2975_vm0, %v2973_v0 }
 0x372   : > { %2676 = vmatprep.subr.bf16.mxu0 %v2973_v0 }
 0x378   : > { %2667 = vmatmul.mubr.msk.bf16.vlgmr.msra.gmra.mrb[20].mxu0 %vm864_vm1, %v1525_v25 }
 0x379   : > { %2677 = vmatpush3.bf16.xpose.msra.mxu0 %v1642_v26  ;;  %2678 = vmatprep.mubr.msk.bf16.mxu0 %vm2975_vm0, %v2973_v0 }
 0x37a   : > { %2688 = vmatprep.subr.bf16.mxu0 %v2973_v0 }
 0x380   : > { %2679 = vmatmul.mubr.msk.bf16.vlgmr.msra.gmra.mrb[24].mxu0 %vm864_vm1, %v1635_v28 }
 0x381   : > { %2704 = vmatprep.mubr.msk.bf16.mxu0 %vm2975_vm0, %v2973_v0 }
 0x42b   : > { %v1128_v29 = vpop.f32.mrb[4].mxu0 }
 0x42c   : > { %v2620_v30 = vpop.f32.mrb[5].mxu0  ;;  %v1134_v33 = vsel %vm911_vm3, %v1128_v29, -inf }
 0x42d   : > { %1135 = vmax.xlane.f32.xlu0 %v1134_v33  ;;  %v1131_v34 = vpop.f32.mrb[6].mxu0 }
 0x42e   : > { %v3324_v36 = vpop.f32.mrb[8].mxu1  ;;  %v2621_v37 = vpop.f32.mrb[7].mxu0 }
 0x42f   : > { %v2602_v38 = vpop.f32.mrb[9].mxu1 }
 0x430   : > { %v968_v39 = vpop.f32.mrb[10].mxu1 }
 0x431   : > { %v2603_v40 = vpop.f32.mrb[11].mxu1 }
 0x433   : > { %v1238_v41 = vpop.f32.mrb[8].mxu0 }
 0x434   : > { %v2632_v42 = vpop.f32.mrb[9].mxu0  ;;  %v1244_v43 = vsel %vm911_vm3, %v1238_v41, -inf }
 0x435   : > { %1245 = vmax.xlane.f32.xlu0 %v1244_v43  ;;  %v1241_v44 = vpop.f32.mrb[10].mxu0 }
 0x436   : > { %v1017_v45 = vpop.f32.mrb[12].mxu1  ;;  %v2633_v46 = vpop.f32.mrb[11].mxu0 }
 0x437   : > { %v2608_v47 = vpop.f32.mrb[13].mxu1  ;;  %v1023_v48 = vsel %vm911_vm3, %v1017_v45, -inf }
 0x438   : > { %1024 = vmax.xlane.f32.xlu1 %v1023_v48  ;;  %v1020_v49 = vpop.f32.mrb[14].mxu1 }
 0x439   : > { %v2609_v50 = vpop.f32.mrb[15].mxu1 }
 0x43b   : > { %v1348_v51 = vpop.f32.mrb[12].mxu0 }
 0x43c   : > { %v2644_v52 = vpop.f32.mrb[13].mxu0  ;;  %v1354_v54 = vsel %vm911_vm3, %v1348_v51, -inf }
 0x43d   : > { %1355 = vmax.xlane.f32.xlu1 %v1354_v54  ;;  %v1351_v55 = vpop.f32.mrb[14].mxu0 }
 0x43e   : > { %v2645_v56 = vpop.f32.mrb[15].mxu0 }
 0x443   : > { %v1458_v57 = vpop.f32.mrb[16].mxu0 }
 0x444   : > { %v2656_v58 = vpop.f32.mrb[17].mxu0  ;;  %v1464_v59 = vsel %vm911_vm3, %v1458_v57, -inf }
 0x445   : > { %1465 = vmax.xlane.f32.xlu0 %v1464_v59  ;;  %v1461_v60 = vpop.f32.mrb[18].mxu0 }
 0x446   : > { %v2657_v61 = vpop.f32.mrb[19].mxu0 }
 0x44b   : > { %v1568_v62 = vpop.f32.mrb[20].mxu0 }
 0x44c   : > { %v2668_v63 = vpop.f32.mrb[21].mxu0  ;;  %v1574_v2 = vsel %vm911_vm3, %v1568_v62, -inf }
 0x44d   : > { %1575 = vmax.xlane.f32.xlu1 %v1574_v2  ;;  %v1571_v3 = vpop.f32.mrb[22].mxu0 }
 0x44e   : > { %v2669_v4 = vpop.f32.mrb[23].mxu0 }
 0x453   : > { %v1678_v5 = vpop.f32.mrb[24].mxu0 }
 0x454   : > { %v2680_v6 = vpop.f32.mrb[25].mxu0  ;;  %v1684_v7 = vsel %vm911_vm3, %v1678_v5, -inf }
 0x455   : > { %1685 = vmax.xlane.f32.xlu0 %v1684_v7  ;;  %v1681_v8 = vpop.f32.mrb[26].mxu0 }
 0x456   : > { %v2681_v9 = vpop.f32.mrb[27].mxu0 }
 0x4ba   : > { %v1136_v10 = vpop.xlane.xlu0 %1135 }
 0x4bb   : > { %v1137_v11 = vsub.f32 %v1128_v29, %v1136_v10 }
 0x4bd   : > { %v1138_v12 = vmul.f32 1.442695, %v1137_v11 }
 0x4bf   : > { %2849 = vpow2.f32 %v1138_v12 }
 0x4c2   : > { %v1246_v13 = vpop.xlane.xlu0 %1245 }
 0x4c3   : > { %v1247_v14 = vsub.f32 %v1238_v41, %v1246_v13 }
 0x4c5   : > { %v1248_v15 = vmul.f32 1.442695, %v1247_v14  ;;  %v1025_v16 = vpop.xlane.xlu1 %1024 }
 0x4c6   : > { %v1026_v17 = vsub.f32 %v1017_v45, %v1025_v16 }
 0x4c7   : > { %2851 = vpow2.f32 %v1248_v15 }
 0x4c8   : > { %v1027_v18 = vmul.f32 1.442695, %v1026_v17 }
 0x4c9   : > { %v3332_v19 = vpop.eup %2849 }
 0x4ca   : > { %2853 = vpow2.f32 %v1027_v18  ;;  %v1356_v20 = vpop.xlane.xlu1 %1355  ;;  %v1140_v21 = vsel %vm911_vm3, %v3332_v19, 0.0 }
 0x4cb   : > { %v1357_v22 = vsub.f32 %v1348_v51, %v1356_v20  ;;  %1141 = vadd.xlane.f32.xlu0 %v1140_v21 }
 0x4cd   : > { %v1358_v23 = vmul.f32 1.442695, %v1357_v22 }
 0x4cf   : > { %2855 = vpow2.f32 %v1358_v23 }
 0x4d1   : > { %v3336_v24 = vpop.eup %2851 }
 0x4d2   : > { %v1466_v25 = vpop.xlane.xlu0 %1465  ;;  %v1250_v26 = vsel %vm911_vm3, %v3336_v24, 0.0 }
 0x4d3   : > { %v1467_v28 = vsub.f32 %v1458_v57, %v1466_v25  ;;  %1251 = vadd.xlane.f32.xlu1 %v1250_v26 }
 0x4d4   : > { %v2854_v29 = vpop.eup %2853 }
 0x4d5   : > { %v1468_v30 = vmul.f32 1.442695, %v1467_v28  ;;  %v1029_v33 = vsel %vm911_vm3, %v2854_v29, 0.0 }
 0x4d7   : > { %2857 = vpow2.f32 %v1468_v30  ;;  %1030 = vadd.xlane.f32.xlu1 %v1029_v33 }
 0x4d9   : > { %v3341_v34 = vpop.eup %2855 }
 0x4da   : > { %v1360_v37 = vsel %vm911_vm3, %v3341_v34, 0.0  ;;  %v1576_v40 = vpop.xlane.xlu1 %1575 }
 0x4db   : > { %1361 = vadd.xlane.f32.xlu0 %v1360_v37  ;;  %v1577_v41 = vsub.f32 %v1568_v62, %v1576_v40 }
 0x4dd   : > { %v1578_v42 = vmul.f32 1.442695, %v1577_v41 }
 0x4df   : > { %2859 = vpow2.f32 %v1578_v42 }
 0x4e1   : > { %v3345_v38 = vpop.eup %2857 }
 0x4e2   : > { %v1470_v39 = vsel %vm911_vm3, %v3345_v38, 0.0  ;;  %v1686_v43 = vpop.xlane.xlu0 %1685 }
 0x4e3   : > { %1471 = vadd.xlane.f32.xlu0 %v1470_v39  ;;  %v1687_v44 = vsub.f32 %v1678_v5, %v1686_v43 }
 0x4e5   : > { %v1688_v46 = vmul.f32 1.442695, %v1687_v44 }
 0x4e7   : > { %2861 = vpow2.f32 %v1688_v46 }
 0x4e8   : > { %1036 = vrot.lane.b32.xlu1 %v3262_v53, %s2976_s0 }
 0x4e9   : > { %v3355_v45 = vpop.eup %2859 }
 0x4ea   : > { %v1580_v47 = vsel %vm911_vm3, %v3355_v45, 0.0 }
 0x4f1   : > { %v3359_v48 = vpop.eup %2861 }
 0x4f2   : > { %v1690_v49 = vsel %vm911_vm3, %v3359_v48, 0.0 }
 0x4f9   : > { %1146 = vrot.lane.b32.xlu0 %v3262_v53, %s2977_s29 }
 0x4fd   : > { %1256 = vrot.lane.b32.xlu0 %v3262_v53, %s2978_s15 }
 0x50c   : > { %1581 = vadd.xlane.f32.xlu1 %v1580_v47  ;;  %v2797_v47 = vld [vmem:[#allocation4] sm:$0xff]  }
 0x50d   : > { %2689 = vmatpush3.bf16.msra.mxu0 %v2797_v47  ;;  %v2828_v47 = vld [vmem:[%s3577_s10 + $0x74] ss:$8 sps:$4 sm:$0xff]  }
 0x50e   : > { %2690 = vmatprep.subr.bf16.mxu0 %v2973_v0 }
 0x51c   : > { %1691 = vadd.xlane.f32.xlu0 %v1690_v49 }
 0x51d   : > { %1366 = vrot.lane.b32.xlu1 %v3262_v53, %s2979_s16 }
 0x521   : > { %1586 = vrot.lane.b32.xlu1 %v3262_v53, %s2981_s21 }
 0x525   : > { %1696 = vrot.lane.b32.xlu1 %v3262_v53, %s2982_s26 }
 0x532   : > { %1476 = vrot.lane.b32.xlu0 %v3262_v53, %s2980_s23 }
 0x558   : > { %v1142_v52 = vpop.xlane.xlu0 %1141 }
 0x560   : > { %v1252_v50 = vpop.xlane.xlu1 %1251 }
 0x564   : > { %v1031_v51 = vpop.xlane.xlu1 %1030 }
 0x565   : > { %2863 = vrcp.f32 %v1031_v51 }
 0x566   : > { %2865 = vrcp.f32 %v1142_v52 }
 0x567   : > { %2867 = vrcp.f32 %v1252_v50 }
 0x568   : > { %v1037_v54 = vpop.permute.xlu1 %1036  ;;  %v1362_v56 = vpop.xlane.xlu0 %1361 }
 0x569   : > { %v1042_v55 = vsel %vm927_vm2, %v1037_v54, 0  ;;  %2869 = vrcp.f32 %v1362_v56  ;;  %v2800_v54 = vld [vmem:[#allocation4 + $0x18] sm:$0xff]   ;;  %v2802_v56 = vld [vmem:[#allocation4 + $0x28] sm:$0xff]  }
 0x56a   : > { %2611 = vmatpush3.bf16.msra.mxu1 %v1042_v55  ;;  %v2801_v55 = vld [vmem:[#allocation4 + $0x20] sm:$0xff]  }
 0x56b   : > { %2622 = vmatprep.subr.bf16.mxu1 %v2973_v0 }
 0x56f   : > { %v2864_v57 = vpop.eup %2863 }
 0x570   : > { %v1033_v58 = vmul.f32 %v2864_v57, %v2854_v29  ;;  %v1472_v59 = vpop.xlane.xlu0 %1471  ;;  %v2866_v61 = vpop.eup %2865  ;;  %v2803_v57 = vld [vmem:[#allocation4 + $0x30] sm:$0xff]  }
 0x571   : > { %v1144_v63 = vmul.f32 %v2866_v61, %v3332_v19  ;;  %v2868_v4 = vpop.eup %2867  ;;  %2871 = vrcp.f32 %v1472_v59 }
 0x572   : > { %v1034_v60 = vpack.c.bf16 %v1033_v58, %v1033_v58  ;;  %v1254_v6 = vmul.f32 %v2868_v4, %v3336_v24 }
 0x573   : > { %v1145_v3 = vpack.c.bf16 %v1144_v63, %v1144_v63  ;;  %v2870_v8 = vpop.eup %2869 }
 0x574   : > { %2613 = vmatmul.mubr.msk.bf16.vlgmr.msra.gmra.mrb[16].mxu1 %vm911_vm3, %v1034_v60  ;;  %v1147_v53 = vpop.permute.xlu0 %1146  ;;  %v1255_v7 = vpack.c.bf16 %v1254_v6, %v1254_v6  ;;  %v1364_v10 = vmul.f32 %v2870_v8, %v3341_v34 }
 0x575   : > { %v1152_v62 = vsel %vm927_vm2, %v1147_v53, 0  ;;  %2624 = vmatprep.mubr.msk.bf16.mxu1 %vm2975_vm0, %v2973_v0  ;;  %v2804_v53 = vld [vmem:[#allocation4 + $0x38] sm:$0xff]  }
 0x576   : > { %2623 = vmatpush3.bf16.msra.mxu1 %v1152_v62  ;;  %v1365_v13 = vpack.c.bf16 %v1364_v10, %v1364_v10 }
 0x577   : > { %2634 = vmatprep.subr.bf16.mxu1 %v2973_v0 }
 0x578   : > { %v1257_v2 = vpop.permute.xlu0 %1256 }
 0x579   : > { %v1262_v5 = vsel %vm927_vm2, %v1257_v2, 0 }
 0x57b   : > { %v2872_v14 = vpop.eup %2871 }
 0x57c   : > { %2625 = vmatmul.mubr.msk.bf16.vlgmr.msra.gmra.mrb[20].mxu1 %vm911_vm3, %v1145_v3  ;;  %v1474_v16 = vmul.f32 %v2872_v14, %v3345_v38 }
 0x57d   : > { %2635 = vmatpush3.bf16.msra.mxu1 %v1262_v5  ;;  %2636 = vmatprep.mubr.msk.bf16.mxu1 %vm2975_vm0, %v2973_v0 }
 0x57e   : > { %2646 = vmatprep.subr.bf16.mxu1 %v2973_v0  ;;  %v1475_v20 = vpack.c.bf16 %v1474_v16, %v1474_v16 }
 0x584   : > { %2637 = vmatmul.mubr.msk.bf16.vlgmr.msra.gmra.mrb[24].mxu1 %vm911_vm3, %v1255_v7 }
 0x585   : > { %2648 = vmatprep.mubr.msk.bf16.mxu1 %vm2975_vm0, %v2973_v0 }
 0x599   : > { %v1582_v9 = vpop.xlane.xlu1 %1581 }
 0x59a   : > { %2873 = vrcp.f32 %v1582_v9 }
 0x59d   : > { %v1367_v11 = vpop.permute.xlu1 %1366 }
 0x59e   : > { %v1372_v12 = vsel %vm927_vm2, %v1367_v11, 0 }
 0x59f   : > { %2647 = vmatpush3.bf16.msra.mxu1 %v1372_v12 }
 0x5a0   : > { %2658 = vmatprep.subr.bf16.mxu1 %v2973_v0 }
 0x5a1   : > { %v1587_v19 = vpop.permute.xlu1 %1586 }
 0x5a2   : > { %2649 = vmatmul.mubr.msk.bf16.vlgmr.msra.gmra.mrb[28].mxu1 %vm911_vm3, %v1365_v13  ;;  %v1592_v22 = vsel %vm927_vm2, %v1587_v19, 0 }
 0x5a3   : > { %2660 = vmatprep.mubr.msk.bf16.mxu1 %vm2975_vm0, %v2973_v0 }
 0x5a4   : > { %v2874_v21 = vpop.eup %2873 }
 0x5a5   : > { %v1584_v23 = vmul.f32 %v2874_v21, %v3355_v45  ;;  %v1697_v24 = vpop.permute.xlu1 %1696 }
 0x5a6   : > { %v1702_v28 = vsel %vm927_vm2, %v1697_v24, 0 }
 0x5a7   : > { %v1585_v25 = vpack.c.bf16 %v1584_v23, %v1584_v23  ;;  %v2452_v23 = vld [vmem:[%s3574_s7] ss:$0 sm:$0xff] }
 0x5a9   : > { %v1692_v15 = vpop.xlane.xlu0 %1691 }
 0x5aa   : > { %2875 = vrcp.f32 %v1692_v15 }
 0x5ad   : > { %v1477_v17 = vpop.permute.xlu0 %1476 }
 0x5ae   : > { %v1482_v18 = vsel %vm927_vm2, %v1477_v17, 0 }
 0x5af   : > { %2659 = vmatpush3.bf16.msra.mxu1 %v1482_v18 }
 0x5b0   : > { %2670 = vmatprep.subr.bf16.mxu1 %v2973_v0 }
 0x5b2   : > { %2661 = vmatmul.mubr.msk.bf16.vlgmr.msra.gmra.mrb[32].mxu1 %vm911_vm3, %v1475_v20 }
 0x5b3   : > { %2671 = vmatpush3.bf16.msra.mxu1 %v1592_v22  ;;  %2672 = vmatprep.mubr.msk.bf16.mxu1 %vm2975_vm0, %v2973_v0  ;;  %v2805_v22 = vld [vmem:[%s3577_s10] ss:$8 sps:$4 sm:$0xff]  }
 0x5b4   : > { %2682 = vmatprep.subr.bf16.mxu1 %v2973_v0  ;;  %v2876_v26 = vpop.eup %2875 }
 0x5b5   : > { %v1694_v29 = vmul.f32 %v2876_v26, %v3359_v48  ;;  %v2799_v48 = vld [vmem:[#allocation4 + $0x10] sm:$0xff]  }
 0x5b7   : > { %v1695_v30 = vpack.c.bf16 %v1694_v29, %v1694_v29 }
 0x5ba   : > { %2673 = vmatmul.mubr.msk.bf16.vlgmr.msra.gmra.mrb[36].mxu1 %vm911_vm3, %v1585_v25 }
 0x5bb   : > { %2683 = vmatpush3.bf16.msra.mxu1 %v1702_v28  ;;  %2684 = vmatprep.mubr.msk.bf16.mxu1 %vm2975_vm0, %v2973_v0 }
 0x5c2   : > { %2685 = vmatmul.mubr.msk.bf16.vlgmr.msra.gmra.mrb[40].mxu1 %vm911_vm3, %v1695_v30 }
 0x5c3   : > { %2070 = vmatprep.mubr.bf16.mxu1 %v2974_v1  ;;  %v2798_v1 = vld [vmem:[#allocation4 + $0x8] sm:$0xff]  }
 0x5c4   : > { %2691 = vmatpush3.bf16.msra.mxu0 %v2798_v1  ;;  %v2826_v1 = vld [vmem:[%s3577_s10 + $0x70] ss:$8 sps:$4 sm:$0xff]  }
 0x5c5   : > { %2692 = vmatprep.subr.bf16.mxu0 %v2973_v0 }
 0x5c8   : > { %2693 = vmatpush3.bf16.msra.mxu0 %v2799_v48  ;;  %v2829_v48 = vld [vmem:[%s3579_s12 + $0x40] sm:$0xff]  }
 0x5c9   : > { %2694 = vmatprep.subr.bf16.mxu0 %v2973_v0 }
 0x5cc   : > { %2695 = vmatpush3.bf16.msra.mxu0 %v2800_v54  ;;  %v2834_v54 = vld [vmem:[%s3579_s12 + $0x10] sm:$0xff]  }
 0x5cd   : > { %2696 = vmatprep.subr.bf16.mxu0 %v2973_v0 }
 0x5d0   : > { %2697 = vmatpush3.bf16.msra.mxu0 %v2801_v55  ;;  %v2835_v55 = vld [vmem:[%s3579_s12 + $0x58] sm:$0xff]  }
 0x5d1   : > { %2698 = vmatprep.subr.bf16.mxu0 %v2973_v0 }
 0x5d4   : > { %2699 = vmatpush3.bf16.msra.mxu0 %v2802_v56  ;;  %v2836_v56 = vld [vmem:[%s3579_s12 + $0x18] sm:$0xff]  }
 0x5d5   : > { %2700 = vmatprep.subr.bf16.mxu0 %v2973_v0 }
 0x5d8   : > { %2701 = vmatpush3.bf16.msra.mxu0 %v2803_v57  ;;  %v2837_v57 = vld [vmem:[%s3579_s12 + $0x60] sm:$0xff]  }
 0x5d9   : > { %2702 = vmatprep.subr.bf16.mxu0 %v2973_v0 }
 0x5dc   : > { %2703 = vmatpush3.bf16.msra.mxu0 %v2804_v53 }
 0x5dd   : > { %2550 = vmatprep.subr.bf16.mxu0 %v2829_v48  ;;  %v2496_v48 = vld [vmem:[%s3581_s14] ss:$0 sm:$0xff] }
 0x647   : > { %v1078_v33 = vpop.f32.mrb[16].mxu1 }
 0x648   : > { %1745 = vrot.lane.b32.xlu1 %v1078_v33, %s2982_s26  ;;  %v2614_v34 = vpop.f32.mrb[17].mxu1 }
 0x649   : > { %v1081_v37 = vpop.f32.mrb[18].mxu1  ;;  %v2810_v34 = vld [vmem:[%s3577_s10 + $0x14] ss:$8 sps:$4 sm:$0xff]  }
 0x64a   : > { %v2615_v38 = vpop.f32.mrb[19].mxu1  ;;  %v2808_v37 = vld [vmem:[%s3577_s10 + $0x10] ss:$8 sps:$4 sm:$0xff]  }
 0x64b   : > { %v2811_v38 = vld [vmem:[%s3577_s10 + $0x20] ss:$8 sps:$4 sm:$0xff]  }
 0x64f   : > { %v1188_v39 = vpop.f32.mrb[20].mxu1 }
 0x650   : > { %1749 = vrot.lane.b32.xlu1 %v1188_v39, %s2981_s21  ;;  %v2626_v40 = vpop.f32.mrb[21].mxu1  ;;  %v2816_v39 = vld [vmem:[%s3577_s10 + $0x34] ss:$8 sps:$4 sm:$0xff]   ;;  %s3601_s21 = sld [smem:[#allocation12_spill]] }
 0x651   : > { %v1191_v41 = vpop.f32.mrb[22].mxu1  ;;  %v2814_v40 = vld [vmem:[%s3577_s10 + $0x30] ss:$8 sps:$4 sm:$0xff]  }
 0x652   : > { %v2627_v42 = vpop.f32.mrb[23].mxu1  ;;  %v2819_v41 = vld [vmem:[%s3577_s10 + $0x44] ss:$8 sps:$4 sm:$0xff]  }
 0x653   : > { %v2817_v42 = vld [vmem:[%s3577_s10 + $0x40] ss:$8 sps:$4 sm:$0xff]  }
 0x657   : > { %v1298_v43 = vpop.f32.mrb[24].mxu1 }
 0x658   : > { %1753 = vrot.lane.b32.xlu0 %v1298_v43, %s2980_s23  ;;  %v2638_v44 = vpop.f32.mrb[25].mxu1  ;;  %v2822_v43 = vld [vmem:[%s3577_s10 + $0x54] ss:$8 sps:$4 sm:$0xff]  }
 0x659   : > { %v1301_v45 = vpop.f32.mrb[26].mxu1  ;;  %v2820_v44 = vld [vmem:[%s3577_s10 + $0x50] ss:$8 sps:$4 sm:$0xff]  }
 0x65a   : > { %v2639_v46 = vpop.f32.mrb[27].mxu1  ;;  %v2825_v45 = vld [vmem:[%s3577_s10 + $0x64] ss:$8 sps:$4 sm:$0xff]  }
 0x65b   : > { %v2823_v46 = vld [vmem:[%s3577_s10 + $0x60] ss:$8 sps:$4 sm:$0xff]  }
 0x675   : > { %v1408_v49 = vpop.f32.mrb[28].mxu1 }
 0x676   : > { %1757 = vrot.lane.b32.xlu1 %v1408_v49, %s2979_s16  ;;  %v2650_v50 = vpop.f32.mrb[29].mxu1  ;;  %v2830_v49 = vld [vmem:[%s3579_s12] sm:$0xff]  }
 0x677   : > { %v1411_v51 = vpop.f32.mrb[30].mxu1  ;;  %v2831_v50 = vld [vmem:[%s3579_s12 + $0x48] sm:$0xff]  }
 0x678   : > { %v2651_v52 = vpop.f32.mrb[31].mxu1  ;;  %v2832_v51 = vld [vmem:[%s3579_s12 + $0x8] sm:$0xff]  }
 0x679   : > { %v2833_v52 = vld [vmem:[%s3579_s12 + $0x50] sm:$0xff]  }
 0x685   : > { %v1518_v58 = vpop.f32.mrb[32].mxu1 }
 0x686   : > { %1761 = vrot.lane.b32.xlu0 %v1518_v58, %s2978_s15  ;;  %v2662_v59 = vpop.f32.mrb[33].mxu1  ;;  %v2838_v58 = vld [vmem:[%s3579_s12 + $0x20] sm:$0xff]  }
 0x687   : > { %v1521_v60 = vpop.f32.mrb[34].mxu1  ;;  %v2839_v59 = vld [vmem:[%s3579_s12 + $0x68] sm:$0xff]  }
 0x688   : > { %v2663_v61 = vpop.f32.mrb[35].mxu1  ;;  %v2840_v60 = vld [vmem:[%s3579_s12 + $0x28] sm:$0xff]  }
 0x68d   : > { %v1628_v62 = vpop.f32.mrb[36].mxu1 }
 0x68e   : > { %1765 = vrot.lane.b32.xlu1 %v1628_v62, %s2977_s29  ;;  %v2674_v63 = vpop.f32.mrb[37].mxu1 }
 0x68f   : > { %v1631_v2 = vpop.f32.mrb[38].mxu1 }
 0x690   : > { %v2675_v3 = vpop.f32.mrb[39].mxu1 }
 0x695   : > { %v1738_v4 = vpop.f32.mrb[40].mxu1 }
 0x696   : > { %1769 = vrot.lane.b32.xlu0 %v1738_v4, %s2976_s0  ;;  %v2686_v5 = vpop.f32.mrb[41].mxu1 }
 0x697   : > { %v1741_v6 = vpop.f32.mrb[42].mxu1 }
 0x698   : > { %v2687_v7 = vpop.f32.mrb[43].mxu1 }
 0x6ba   : > { %v1746_v8 = vpop.permute.xlu1 %1745 }
 0x6bb   : > { %v1772_v11 = vsel %vm864_vm1, %v3324_v36, %v1746_v8  ;;  %v2807_v36 = vld [vmem:[%s3577_s10 + $0x4] ss:$8 sps:$4 sm:$0xff]   ;;  %v2461_v8 = vld [vmem:[%s3575_s8] ss:$0 sm:$0xff] }
 0x6bc   : > { %2038 = vmatprep.subr.bf16.mxu1 %v2807_v36 }
 0x6bd   : > { %2039 = vmatpush1.bf16.msra.mxu1 %v2805_v22 }
 0x6be   : > { %2040 = vmatprep.subr.bf16.mxu1 %v2810_v34 }
 0x6c1   : > { %2041 = vmatpush1.bf16.msra.mxu1 %v2808_v37 }
 0x6c2   : > { %v1750_v9 = vpop.permute.xlu1 %1749 }
 0x6c3   : > { %v1774_v12 = vsel %vm1773_vm4, %v1772_v11, %v1750_v9 }
 0x6ca   : > { %v1754_v10 = vpop.permute.xlu0 %1753 }
 0x6cb   : > { %v1776_v14 = vsel %vm1775_vm5, %v1774_v12, %v1754_v10  ;;  %v2462_v10 = vld [vmem:[%s3576_s9] ss:$0 sm:$0xff] }
 0x6e8   : > { %v1758_v0 = vpop.permute.xlu1 %1757 }
 0x6e9   : > { %v1778_v16 = vsel %vm1777_vm6, %v1776_v14, %v1758_v0  ;;  %v2842_v14 = vld [vmem:[%s3579_s12 + $0x30] sm:$0xff]  }
 0x6f8   : > { %v1762_v13 = vpop.permute.xlu0 %1761 }
 0x6f9   : > { %v1780_v17 = vsel %vm1779_vm7, %v1778_v16, %v1762_v13  ;;  %v2841_v13 = vld [vmem:[%s3579_s12 + $0x70] sm:$0xff]   ;;  %v2844_v16 = vld [vmem:[%s3579_s12 + $0x38] sm:$0xff]  }
 0x700   : > { %v1766_v15 = vpop.permute.xlu1 %1765 }
 0x701   : > { %v1782_v18 = vsel %vm1781_vm8, %v1780_v17, %v1766_v15  ;;  %v2843_v15 = vld [vmem:[%s3579_s12 + $0x78] sm:$0xff]   ;;  %v1946_v17 = vld [vmem:[%s3578_s11] sm:$0x3] }
 0x708   : > { %v1770_v19 = vpop.permute.xlu0 %1769 }
 0x709   : > { %v1784_v20 = vsel %vm1783_vm9, %v1782_v18, %v1770_v19  ;;  %v1951_v18 = vrot.slane %v1946_v17, %v731_v32  ;;  %v1955_v19 = vrot.slane %v1946_v17, %v735_v35  ;;  %v2479_v32 = vld [vmem:[%s3580_s13] ss:$0 sm:$0xff] }
 0x70a   : > { %v1785_v21 = vpack.c.bf16 %v1784_v20, %v1784_v20 }
 0x70c   : > { %2705 = vmatmul.mubr.bf16.vlgmr.msra.gmra.mrb[28].mxu0 %v1785_v21 }
 0x70d   : > { %2551 = vmatpush3.bf16.msra.mxu0 %v2830_v49 }
 0x70e   : > { %2552 = vmatprep.subr.bf16.mxu0 %v2831_v50  ;;  %v2497_v50 = vld [vmem:[%s3601_s21] ss:$0 sm:$0xff] }
 0x711   : > { %2553 = vmatpush3.bf16.msra.mxu0 %v2832_v51 }
 0x712   : > { %2554 = vmatprep.subr.bf16.mxu0 %v2833_v52 }
 0x715   : > { %2555 = vmatpush3.bf16.msra.mxu0 %v2834_v54 }
 0x716   : > { %2556 = vmatprep.subr.bf16.mxu0 %v2835_v55 }
 0x719   : > { %2557 = vmatpush3.bf16.msra.mxu0 %v2836_v56 }
 0x71a   : > { %2558 = vmatprep.subr.bf16.mxu0 %v2837_v57 }
 0x71d   : > { %2559 = vmatpush3.bf16.msra.mxu0 %v2838_v58 }
 0x71e   : > { %2560 = vmatprep.subr.bf16.mxu0 %v2839_v59 }
 0x721   : > { %2561 = vmatpush3.bf16.msra.mxu0 %v2840_v60 }
 0x722   : > { %2562 = vmatprep.subr.bf16.mxu0 %v2841_v13 }
 0x725   : > { %2563 = vmatpush3.bf16.msra.mxu0 %v2842_v14 }
 0x726   : > { %2564 = vmatprep.subr.bf16.mxu0 %v2843_v15 }
 0x729   : > { %2565 = vmatpush3.bf16.msra.mxu0 %v2844_v16 }
 0x7df   : > { %v1891_v24 = vpop.f32.mrb[28].mxu0 }
 0x7e0   : > { %v1892_v25 = vadd.f32 %v2452_v23, %v1891_v24  ;;  %v2706_v26 = vpop.f32.mrb[29].mxu0 }
 0x7e1   : > { %v1894_v28 = vpop.f32.mrb[30].mxu0 }
 0x7e2   : > { %v3436_v29 = vadd.f32 %v1892_v25, %v3234_v27  ;;  %v2707_v30 = vpop.f32.mrb[31].mxu0  ;;  %v2813_v27 = vld [vmem:[%s3577_s10 + $0x24] ss:$8 sps:$4 sm:$0xff]  }
 0x7e3   : > { %2042 = vmatprep.subr.bf16.mxu1 %v2813_v27 }
 0x7e4   : > { %1900 = vadd.xlane.f32.xlu1 %v3436_v29  ;;  %v1904_v33 = vmul.f32 %v3436_v29, %v3436_v29  ;;  %2043 = vmatpush1.bf16.msra.mxu1 %v2811_v38 }
 0x7e5   : > { %2044 = vmatprep.subr.bf16.mxu1 %v2816_v39 }
 0x7e6   : > { %1905 = vadd.xlane.f32.xlu0 %v1904_v33 }
 0x7e8   : > { %2045 = vmatpush1.bf16.msra.mxu1 %v2814_v40 }
 0x7e9   : > { %2046 = vmatprep.subr.bf16.mxu1 %v2819_v41 }
 0x7ec   : > { %2047 = vmatpush1.bf16.msra.mxu1 %v2817_v42 }
 0x7ed   : > { %2048 = vmatprep.subr.bf16.mxu1 %v2822_v43 }
 0x7f0   : > { %2049 = vmatpush1.bf16.msra.mxu1 %v2820_v44 }
 0x7f1   : > { %2050 = vmatprep.subr.bf16.mxu1 %v2825_v45 }
 0x7f4   : > { %2051 = vmatpush1.bf16.msra.mxu1 %v2823_v46 }
 0x7f5   : > { %2052 = vmatprep.subr.bf16.mxu1 %v2828_v47 }
 0x7f8   : > { %2053 = vmatpush1.bf16.msra.mxu1 %v2826_v1 }
 0x871   : > { %v1901_v61 = vpop.xlane.xlu1 %1900 }
 0x872   : > { %v1903_v53 = vmul.f32 0.0078125, %v1901_v61 }
 0x873   : > { %v1906_v62 = vpop.xlane.xlu0 %1905 }
 0x874   : > { %v1908_v63 = vmul.f32 %v1903_v53, %v1903_v53  ;;  %v1907_v2 = vmul.f32 0.0078125, %v1906_v62  ;;  %v1911_v6 = vsub.f32 %v3436_v29, %v1903_v53 }
 0x876   : > { %v1909_v3 = vsub.f32 %v1907_v2, %v1908_v63 }
 0x878   : > { %v1910_v4 = vmax.f32 %v1909_v3, 0.0 }
 0x87a   : > { %v1912_v5 = vadd.f32 1e-06, %v1910_v4 }
 0x87c   : > { %2877 = vrsqrt.f32 %v1912_v5 }
 0x886   : > { %v2878_v7 = vpop.eup %2877 }
 0x887   : > { %v1914_v9 = vmul.f32 %v2878_v7, %v1911_v6 }
 0x889   : > { %v1921_v0 = vmul.f32 %v2461_v8, %v1914_v9 }
 0x88b   : > { %v1928_v11 = vadd.f32 %v2462_v10, %v1921_v0 }
 0x88d   : > { %v1929_v12 = vpack.c.bf16 %v1928_v11, %v1928_v11 }
 0x88f   : > { %2071 = vmatmul.mubr.bf16.vlgmr.msra.gmra.mrb[44].mxu1 %v1929_v12 }
 0x962   : > { %v2072_v20 = vpop.f32.mrb[44].mxu1 }
 0x963   : > { %v2073_v21 = vadd.f32 %v2072_v20, %v1951_v18  ;;  %v2074_v22 = vpop.f32.mrb[45].mxu1 }
 0x964   : > { %v2075_v36 = vadd.f32 %v2074_v22, %v1955_v19  ;;  %v2076_v23 = vpop.f32.mrb[46].mxu1 }
 0x965   : > { %v2079_v24 = vmax.f32 %v2073_v21, 0.0  ;;  %v2077_v25 = vpop.f32.mrb[47].mxu1 }
 0x966   : > { %v2080_v26 = vmax.f32 %v2075_v36, 0.0 }
 0x967   : > { %v2081_v29 = vpack.c.bf16 %v2079_v24, %v2079_v24 }
 0x968   : > { %v2082_v28 = vpack.c.bf16 %v2080_v26, %v2080_v26 }
 0x96a   : > { %2250 = vmatprep.mubr.bf16.mxu0 %v2082_v28 }
 0x96b   : > { %2251 = vmatmul.mubr.bf16.vlgmr.msra.gmra.mrb[32].mxu0 %v2081_v29 }
 0xa3e   : > { %v2566_v30 = vpop.f32.mrb[32].mxu0 }
 0xa3f   : > { %v2567_v33 = vpop.f32.mrb[33].mxu0 }
 0xa40   : > { %v2568_v31 = vadd.f32 %v2567_v33, %v2566_v30  ;;  %v2569_v35 = vpop.f32.mrb[34].mxu0 }
 0xa41   : > { %v2570_v34 = vpop.f32.mrb[35].mxu0 }
 0xa42   : > { %v2253_v37 = vadd.f32 %v2568_v31, %v2479_v32 }
 0xa44   : > { %v2258_v27 = vadd.f32 %v2253_v37, %v1928_v11 }
 0xa46   : > { %2261 = vadd.xlane.f32.xlu0 %v2258_v27  ;;  %v2264_v38 = vmul.f32 %v2258_v27, %v2258_v27 }
 0xa48   : > { %2265 = vadd.xlane.f32.xlu1 %v2264_v38 }
 0xad3   : > { %v2262_v39 = vpop.xlane.xlu0 %2261 }
 0xad4   : > { %v2263_v40 = vmul.f32 0.0078125, %v2262_v39 }
 0xad5   : > { %v2266_v41 = vpop.xlane.xlu1 %2265 }
 0xad6   : > { %v2268_v42 = vmul.f32 %v2263_v40, %v2263_v40  ;;  %v2267_v43 = vmul.f32 0.0078125, %v2266_v41  ;;  %v2271_v47 = vsub.f32 %v2258_v27, %v2263_v40 }
 0xad8   : > { %v2269_v44 = vsub.f32 %v2267_v43, %v2268_v42 }
 0xada   : > { %v2270_v45 = vmax.f32 %v2269_v44, 0.0 }
 0xadc   : > { %v2272_v46 = vadd.f32 1e-06, %v2270_v45 }
 0xade   : > { %2879 = vrsqrt.f32 %v2272_v46 }
 0xae8   : > { %v2880_v1 = vpop.eup %2879 }
 0xae9   : > { %v2274_v49 = vmul.f32 %v2880_v1, %v2271_v47 }
 0xaeb   : > { %v2281_v51 = vmul.f32 %v2496_v48, %v2274_v49 }
 0xaed   : > { %v2288_v52 = vadd.f32 %v2497_v50, %v2281_v51 }
 0xaef   : > { %2289 = vst [vmem:[%s594_s27] sm:$0xff] %v2288_v52 }
 0xaf0 PF: > { %s3603_s25 = sld [smem:[#allocation9_spill]]  ;;  %s3604_s21 = sld [smem:[#allocation8_spill]] }
 0xaf1   : > { %s3605_s22 = sld [smem:[#allocation10_spill]] }
 0xaf6   : > { %s28_s23 = sadd.s32 1, %s3603_s25  }
 0xaf7   : > { %p25_p8 = scmp.ge.s32.totalorder %s28_s23, 4  }
 0xaf9   :  { %27 = sbr.rel (!%p25_p8) target bundleno = 7 (0x7), region = 126 }
 0xb00   :  { %2315 = vsyncpa [#allocation3], 1 }
 0xb01   :  { %2317 = vsyncpa [#allocation3 + $0x1], 1 }
 0xb02   :  { %2318 = vsyncpa [#allocation5], 1 }

</bundles_post_ra>
